<compile_context>
chip_gen: v5e
topology: v5e:2x2
jax: 0.10.0
libtpu: 0.0.40
codegen_flags: <defaults>
</compile_context>

<pallas_src>
import functools

import jax
import jax.numpy as jnp
from jax import lax
from jax.experimental import pallas as pl
from jax.experimental.pallas import tpu as pltpu

LANE = 128  # TPU lane width


def _round_up(x, m):
    return (x + m - 1) // m * m


def basic_block_kernel(*refs, H, W, Wp, has_downsample):
    """One grid step = one batch element.

    The zero-padded input is flattened row-major with row stride Wp and the
    three dx shifts are pre-packed into the lane (channel) axis by the
    wrapper, so a 3x3 conv is 3 deep-K matmuls (one per dy) on contiguous
    row-shifted slabs.

    refs (downsample variant):
      x_ref  : (1, Lc, Kc1)    bf16  dx-fused, padded, flattened input
      w1_ref : (3, Kc1, P_p)   bf16  conv1 weights (dy, 3*Cin, P), bn1 folded
      b1_ref : (1, P_p)        f32   folded conv1 bias + bn1
      w2_ref : (3, 3*P_p, P_p) bf16  conv2 weights (dy, 3*P, P), bn2 folded
      b2_ref : (1, P_p)        f32
      wd_ref : (Kc1, P_p)      bf16  1x1 downsample (centre slot), bn3 folded
      b3_ref : (1, P_p)        f32
      o_ref  : (1, L, P_p)     bf16  output in flat layout (wrapper crops)
      mid_ref: (Lm, P_p)       bf16  VMEM scratch: padded conv1 output
    """
    if has_downsample:
        (x_ref, w1_ref, b1_ref, w2_ref, b2_ref, wd_ref, b3_ref,
         o_ref, mid_ref) = refs
    else:
        (x_ref, w1_ref, b1_ref, w2_ref, b2_ref, o_ref, mid_ref) = refs
        wd_ref = b3_ref = None

    f32 = jnp.float32
    L = o_ref.shape[1]          # H * Wp
    Pp = o_ref.shape[2]

    # ---- conv1 (3x3) + folded bn1 + ReLU: 3 deep-K matmuls ------------------
    acc1 = jnp.dot(x_ref[0, 0:L, :], w1_ref[0], preferred_element_type=f32)
    acc1 = acc1 + jnp.dot(x_ref[0, Wp:Wp + L, :], w1_ref[1],
                          preferred_element_type=f32)
    acc1 = acc1 + jnp.dot(x_ref[0, 2 * Wp:2 * Wp + L, :], w1_ref[2],
                          preferred_element_type=f32)
    out1 = jnp.maximum(acc1 + b1_ref[...], 0.0).astype(mid_ref.dtype)

    # ---- stage the padded conv1 output for conv2 ----------------------------
    head = Wp + 1
    Lm = mid_ref.shape[0]
    mid_ref[0:head, :] = jnp.zeros((head, Pp), mid_ref.dtype)
    mid_ref[head + L:Lm, :] = jnp.zeros((Lm - head - L, Pp), mid_ref.dtype)
    mid_ref[head:head + L, :] = out1
    # Zero the junk flat columns (x >= W): in the flat layout they alias the
    # left/right halo columns of neighbouring rows, which conv2 relies on
    # being zero.  A few tiny stores replace the old (L,1) f32 mask input.
    zrun = jnp.zeros((Wp - W, Pp), mid_ref.dtype)
    for y in range(H):  # TODO(synk): fori_loop for very large H
        mid_ref[head + y * Wp + W:head + (y + 1) * Wp, :] = zrun

    # ---- conv2 (3x3) + folded bn2: dx fused in-lane, 3 deep-K matmuls -------
    def dy_slab(dy):
        k = dy * Wp
        return jnp.concatenate(
            [mid_ref[k:k + L, :],
             mid_ref[k + 1:k + 1 + L, :],
             mid_ref[k + 2:k + 2 + L, :]], axis=-1)

    acc2 = jnp.dot(dy_slab(0), w2_ref[0], preferred_element_type=f32)
    acc2 = acc2 + jnp.dot(dy_slab(1), w2_ref[1], preferred_element_type=f32)
    acc2 = acc2 + jnp.dot(dy_slab(2), w2_ref[2], preferred_element_type=f32)
    acc2 = acc2 + b2_ref[...]

    # ---- residual: 1x1-conv downsample (+ folded bn3) or identity slice -----
    if has_downsample:
        ident = jnp.dot(x_ref[0, Wp:Wp + L, :], wd_ref[...],
                        preferred_element_type=f32) + b3_ref[...]
    else:
        # centre-first lane packing => identity channels sit at lane offset 0;
        # lanes >= Cin only pollute output channels that the wrapper crops.
        ident = x_ref[0, Wp:Wp + L, 0:Pp].astype(f32)

    res = jnp.maximum(acc2 + ident, 0.0)
    o_ref[...] = res.reshape(1, L, Pp).astype(o_ref.dtype)


def basic_block_pallas(x_nchw, params):
    """x_nchw: (N, Cin, H, W) float32.  Returns (N, P, H, W) float32."""
    (w1, b1, g1, be1, m1, v1,
     w2, b2, g2, be2, m2, v2,
     wd, g3, be3, m3, v3) = params
    eps = 1e-5
    f32, bf16 = jnp.float32, jnp.bfloat16

    N, Cin, H, W = x_nchw.shape
    P = w1.shape[0]

    # Flat row stride; round up to a sublane multiple only when the extra
    # masked columns are cheap (keeps dy*Wp tap offsets 8-aligned).
    Wp = W + 2
    Wp_al = _round_up(Wp, 8)
    if Wp_al - Wp <= max(2, Wp // 8):
        Wp = Wp_al

    L = H * Wp                          # flat output-slab length
    Kc1 = _round_up(3 * Cin, LANE)      # dx-fused conv1 contraction depth
    P_p = _round_up(P, LANE)
    Kc2 = 3 * P_p                       # conv2 contraction depth
    # TODO(synk): pack conv2's K tightly (3*P instead of 3*P_p) when P < 128.
    Lc0 = (H + 2) * Wp                  # input rows covered by the 3 dy slabs
    Lc = _round_up(Lc0, 8)
    Lm = _round_up(2 * Wp + 2 + L, 8)   # staging scratch rows

    has_ds = wd is not None
    if not has_ds:
        assert Cin == P, "identity residual requires inplanes == planes"

    # ---- fold conv bias + eval-mode BN: scale into weights, rest into bias --
    s1 = g1 / jnp.sqrt(v1 + eps)
    bb1 = be1 + s1 * (b1 - m1)
    s2 = g2 / jnp.sqrt(v2 + eps)
    bb2 = be2 + s2 * (b2 - m2)

    # conv1: OIHW -> (ky, kx, Cin, P); kx reordered centre-first (1, 0, 2) to
    # match the lane order of the dx-fused input; flatten (kx, Cin) into K.
    w1_t = jnp.transpose(w1, (2, 3, 1, 0)) * s1[None, None, None, :]
    w1_t = w1_t[:, jnp.array([1, 0, 2])].reshape(3, 3 * Cin, P)
    w1_p = jnp.pad(w1_t, ((0, 0), (0, Kc1 - 3 * Cin),
                          (0, P_p - P))).astype(bf16)

    # conv2: pad channels to P_p *before* flattening kx so each dx slab
    # occupies a full 128-lane block (matches the in-kernel lane concat,
    # dx order 0, 1, 2).
    w2_t = jnp.transpose(w2, (2, 3, 1, 0)) * s2[None, None, None, :]
    w2_t = jnp.pad(w2_t, ((0, 0), (0, 0), (0, P_p - P), (0, P_p - P)))
    w2_p = w2_t.reshape(3, Kc2, P_p).astype(bf16)

    b1_p = jnp.pad(bb1, (0, P_p - P)).reshape(1, P_p).astype(f32)
    b2_p = jnp.pad(bb2, (0, P_p - P)).reshape(1, P_p).astype(f32)

    # ---- input: bf16 NCHW -> NHWC, zero-pad, flatten rows, dx-fuse lanes ----
    x = jnp.transpose(x_nchw.astype(bf16), (0, 2, 3, 1))        # NHWC, bf16
    x = jnp.pad(x, ((0, 0), (1, 2), (1, Wp - W - 1), (0, 0)))   # halo + stride
    xf = x.reshape(N, (H + 3) * Wp, Cin)
    xcat = jnp.concatenate(                                     # lanes: dx=1,0,2
        [xf[:, 1:1 + Lc0], xf[:, 0:Lc0], xf[:, 2:2 + Lc0]], axis=-1)
    xcat = jnp.pad(xcat, ((0, 0), (0, Lc - Lc0), (0, Kc1 - 3 * Cin)))

    in_specs = [
        pl.BlockSpec((1, Lc, Kc1), lambda n: (n, 0, 0)),
        pl.BlockSpec((3, Kc1, P_p), lambda n: (0, 0, 0)),
        pl.BlockSpec((1, P_p), lambda n: (0, 0)),
        pl.BlockSpec((3, Kc2, P_p), lambda n: (0, 0, 0)),
        pl.BlockSpec((1, P_p), lambda n: (0, 0)),
    ]
    args = [xcat, w1_p, b1_p, w2_p, b2_p]

    if has_ds:
        s3 = g3 / jnp.sqrt(v3 + eps)
        bb3 = be3 - s3 * m3                                     # conv1x1: no bias
        wd_t = jnp.transpose(wd[:, :, 0, 0], (1, 0)) * s3[None, :]   # (Cin, P)
        wd_p = jnp.pad(wd_t, ((0, Kc1 - Cin), (0, P_p - P))).astype(bf16)
        b3_p = jnp.pad(bb3, (0, P_p - P)).reshape(1, P_p).astype(f32)
        in_specs += [pl.BlockSpec((Kc1, P_p), lambda n: (0, 0)),
                     pl.BlockSpec((1, P_p), lambda n: (0, 0))]
        args += [wd_p, b3_p]

    kernel = functools.partial(basic_block_kernel, H=H, W=W, Wp=Wp,
                               has_downsample=has_ds)

    # explicit VMEM budget: double-buffered blocks + weights + scratch + temps
    w_bytes = (3 * Kc1 * P_p + 3 * Kc2 * P_p
               + (Kc1 * P_p if has_ds else 0)) * 2 + 3 * P_p * 4
    need = (2 * (Lc * Kc1 * 2) + 2 * (L * P_p * 2) + 2 * w_bytes
            + Lm * P_p * 2 + 6 * L * P_p * 4 + 2 * L * Kc2 * 2)
    vmem_limit = int(min(max(need * 5 // 4, 32 << 20), 64 << 20))

    out_flat = pl.pallas_call(
        kernel,
        out_shape=jax.ShapeDtypeStruct((N, L, P_p), bf16),
        grid_spec=pltpu.PrefetchScalarGridSpec(
            num_scalar_prefetch=0,
            grid=(N,),
            in_specs=in_specs,
            out_specs=pl.BlockSpec((1, L, P_p), lambda n: (n, 0, 0)),
            scratch_shapes=[pltpu.VMEM((Lm, P_p), bf16)],
        ),
        compiler_params=pltpu.CompilerParams(
            dimension_semantics=("parallel",),
            vmem_limit_bytes=vmem_limit),
    )(*args)

    # crop junk width columns / padded channels (still bf16), back to NCHW,
    # cast to f32 last so the relayout traffic runs at half width.
    out = out_flat.reshape(N, H, Wp, P_p)[:, :, :W, :P]
    return jnp.transpose(out, (0, 3, 1, 2)).astype(f32)


def basic_block_reference(x_nchw, params):
    """Pure-JAX f32 reference (lax.conv, unfolded BN) for correctness check."""
    (w1, b1, g1, be1, m1, v1,
     w2, b2, g2, be2, m2, v2,
     wd, g3, be3, m3, v3) = params
    eps = 1e-5

    def conv(x, w, pad):
        return lax.conv_general_dilated(
            x, w, window_strides=(1, 1), padding=((pad, pad), (pad, pad)),
            dimension_numbers=("NCHW", "OIHW", "NCHW"))

    def bn(x, g, be, m, v):
        return (x - m[None, :, None, None]) / jnp.sqrt(v + eps)[None, :, None, None] \
               * g[None, :, None, None] + be[None, :, None, None]

    out = conv(x_nchw, w1, 1) + b1[None, :, None, None]
    out = jnp.maximum(bn(out, g1, be1, m1, v1), 0.0)
    out = conv(out, w2, 1) + b2[None, :, None, None]
    out = bn(out, g2, be2, m2, v2)
    if wd is None:
        identity = x_nchw
    else:
        identity = bn(conv(x_nchw, wd, 0), g3, be3, m3, v3)
    return jnp.maximum(out + identity, 0.0)


def make_params(key, inplanes, planes):
    K = 3
    ks = jax.random.split(key, 8)
    w1 = jax.random.normal(ks[0], (planes, inplanes, K, K), jnp.float32) * 0.1
    b1 = jax.random.normal(ks[1], (planes,), jnp.float32) * 0.05
    w2 = jax.random.normal(ks[2], (planes, planes, K, K), jnp.float32) * 0.1
    b2 = jax.random.normal(ks[3], (planes,), jnp.float32) * 0.05
    g1 = 1.0 + 0.1 * jax.random.normal(ks[4], (planes,), jnp.float32)
    be1 = 0.05 * jax.random.normal(ks[5], (planes,), jnp.float32)
    m1 = 0.1 * jax.random.normal(ks[6], (planes,), jnp.float32)
    v1 = 1.0 + 0.1 * jnp.abs(jax.random.normal(ks[7], (planes,), jnp.float32))
    g2, be2, m2, v2 = g1 * 0.9, be1 * 0.5, m1 * 0.3, v1 * 1.1
    g3, be3, m3, v3 = g1 * 1.1, be1 * 0.2, m1 * 0.7, v1 * 0.9
    if inplanes != planes:
        wd = jax.random.normal(jax.random.PRNGKey(42),
                               (planes, inplanes, 1, 1), jnp.float32) * 0.2
    else:
        wd = None
    return (w1, b1, g1, be1, m1, v1,
            w2, b2, g2, be2, m2, v2,
            wd, g3, be3, m3, v3)


if __name__ == "__main__":
    key = jax.random.PRNGKey(0)
    kx1, kp1, kx2, kp2 = jax.random.split(key, 4)

    # Case 1: inplanes != planes -> 1x1-conv downsample residual path.
    N, inplanes, planes, H, W = 2, 4, 8, 16, 16
    x1 = jax.random.normal(kx1, (N, inplanes, H, W), jnp.float32)
    p1 = make_params(kp1, inplanes, planes)
    o1 = jax.block_until_ready(basic_block_pallas(x1, p1))
    r1 = basic_block_reference(x1, p1)
    assert o1.shape == (N, planes, H, W)
    err1 = float(jnp.max(jnp.abs(o1 - r1)))
    # bf16 MXU inputs / bf16 output (f32 accumulation) vs f32 reference
    assert jnp.allclose(o1, r1, rtol=2e-2, atol=2e-2), err1

    # Case 2: inplanes == planes -> identity residual (lane slice, no matmul).
    x2 = jax.random.normal(kx2, (N, planes, H, W), jnp.float32)
    p2 = make_params(kp2, planes, planes)
    o2 = jax.block_until_ready(basic_block_pallas(x2, p2))
    r2 = basic_block_reference(x2, p2)
    assert o2.shape == (N, planes, H, W)
    err2 = float(jnp.max(jnp.abs(o2 - r2)))
    assert jnp.allclose(o2, r2, rtol=2e-2, atol=2e-2), err2

    print("KERNEL_OK")
</pallas_src>

<mosaic_0001>
module attributes {stable_mosaic.version = 11 : i64} {
  func.func @basic_block_kernel(%arg0: i32, %arg1: memref<1x328x128xbf16, #tpu.memory_space<vmem>>, %arg2: memref<3x128x128xbf16, #tpu.memory_space<vmem>>, %arg3: memref<1x128xf32, #tpu.memory_space<vmem>>, %arg4: memref<3x384x128xbf16, #tpu.memory_space<vmem>>, %arg5: memref<1x128xf32, #tpu.memory_space<vmem>>, %arg6: memref<128x128xbf16, #tpu.memory_space<vmem>>, %arg7: memref<1x128xf32, #tpu.memory_space<vmem>>, %arg8: memref<1x288x128xbf16, #tpu.memory_space<vmem>>, %arg9: memref<328x128xbf16, #tpu.memory_space<vmem>>) attributes {dimension_semantics = [#tpu.dimension_semantics<parallel>], iteration_bounds = array<i64: 2>, scalar_prefetch = 0 : i64, scratch_operands = 1 : i64, tpu.core_type = #tpu.core_type<tc>, window_params = [{transform_indices = @transform_0, window_bounds = array<i64: 1, 328, 128>}, {pipeline_mode = #tpu.pipeline_mode<synchronous>, transform_indices = @transform_1, window_bounds = array<i64: 3, 128, 128>}, {pipeline_mode = #tpu.pipeline_mode<synchronous>, transform_indices = @transform_2, window_bounds = array<i64: 1, 128>}, {pipeline_mode = #tpu.pipeline_mode<synchronous>, transform_indices = @transform_3, window_bounds = array<i64: 3, 384, 128>}, {pipeline_mode = #tpu.pipeline_mode<synchronous>, transform_indices = @transform_4, window_bounds = array<i64: 1, 128>}, {pipeline_mode = #tpu.pipeline_mode<synchronous>, transform_indices = @transform_5, window_bounds = array<i64: 128, 128>}, {pipeline_mode = #tpu.pipeline_mode<synchronous>, transform_indices = @transform_6, window_bounds = array<i64: 1, 128>}, {transform_indices = @transform_7, window_bounds = array<i64: 1, 288, 128>}]} {
    %c0 = arith.constant 0 : index
    %c0_0 = arith.constant 0 : index
    %c0_1 = arith.constant 0 : index
    %0 = vector.load %arg1[%c0, %c0_0, %c0_1] : memref<1x328x128xbf16, #tpu.memory_space<vmem>>, vector<1x288x128xbf16>
    %1 = vector.shape_cast %0 : vector<1x288x128xbf16> to vector<288x128xbf16>
    %c0_2 = arith.constant 0 : index
    %c0_3 = arith.constant 0 : index
    %c0_4 = arith.constant 0 : index
    %2 = vector.load %arg2[%c0_2, %c0_3, %c0_4] : memref<3x128x128xbf16, #tpu.memory_space<vmem>>, vector<1x128x128xbf16>
    %3 = vector.shape_cast %2 : vector<1x128x128xbf16> to vector<128x128xbf16>
    %cst = arith.constant dense<0.000000e+00> : vector<288x128xf32>
    %4 = tpu.matmul %1, %3, %cst {dimension_numbers = #tpu.dot_dimension_numbers<[1], [0], [0], [1], [0, 0, 1, 1], [], []>} : vector<288x128xbf16>, vector<128x128xbf16>, vector<288x128xf32> -> vector<288x128xf32>
    %c0_5 = arith.constant 0 : index
    %c18 = arith.constant 18 : index
    %c0_6 = arith.constant 0 : index
    %5 = vector.load %arg1[%c0_5, %c18, %c0_6] : memref<1x328x128xbf16, #tpu.memory_space<vmem>>, vector<1x288x128xbf16>
    %6 = vector.shape_cast %5 : vector<1x288x128xbf16> to vector<288x128xbf16>
    %c1 = arith.constant 1 : index
    %c0_7 = arith.constant 0 : index
    %c0_8 = arith.constant 0 : index
    %7 = vector.load %arg2[%c1, %c0_7, %c0_8] : memref<3x128x128xbf16, #tpu.memory_space<vmem>>, vector<1x128x128xbf16>
    %8 = vector.shape_cast %7 : vector<1x128x128xbf16> to vector<128x128xbf16>
    %cst_9 = arith.constant dense<0.000000e+00> : vector<288x128xf32>
    %9 = tpu.matmul %6, %8, %cst_9 {dimension_numbers = #tpu.dot_dimension_numbers<[1], [0], [0], [1], [0, 0, 1, 1], [], []>} : vector<288x128xbf16>, vector<128x128xbf16>, vector<288x128xf32> -> vector<288x128xf32>
    %10 = arith.addf %4, %9 : vector<288x128xf32>
    %c0_10 = arith.constant 0 : index
    %c36 = arith.constant 36 : index
    %c0_11 = arith.constant 0 : index
    %11 = vector.load %arg1[%c0_10, %c36, %c0_11] : memref<1x328x128xbf16, #tpu.memory_space<vmem>>, vector<1x288x128xbf16>
    %12 = vector.shape_cast %11 : vector<1x288x128xbf16> to vector<288x128xbf16>
    %c2 = arith.constant 2 : index
    %c0_12 = arith.constant 0 : index
    %c0_13 = arith.constant 0 : index
    %13 = vector.load %arg2[%c2, %c0_12, %c0_13] : memref<3x128x128xbf16, #tpu.memory_space<vmem>>, vector<1x128x128xbf16>
    %14 = vector.shape_cast %13 : vector<1x128x128xbf16> to vector<128x128xbf16>
    %cst_14 = arith.constant dense<0.000000e+00> : vector<288x128xf32>
    %15 = tpu.matmul %12, %14, %cst_14 {dimension_numbers = #tpu.dot_dimension_numbers<[1], [0], [0], [1], [0, 0, 1, 1], [], []>} : vector<288x128xbf16>, vector<128x128xbf16>, vector<288x128xf32> -> vector<288x128xf32>
    %16 = arith.addf %10, %15 : vector<288x128xf32>
    %c0_15 = arith.constant 0 : index
    %c0_16 = arith.constant 0 : index
    %17 = vector.load %arg3[%c0_15, %c0_16] : memref<1x128xf32, #tpu.memory_space<vmem>>, vector<1x128xf32>
    %18 = vector.broadcast %17 : vector<1x128xf32> to vector<288x128xf32>
    %19 = arith.addf %16, %18 : vector<288x128xf32>
    %cst_17 = arith.constant 0.000000e+00 : f32
    %20 = vector.broadcast %cst_17 : f32 to vector<288x128xf32>
    %21 = arith.maximumf %19, %20 : vector<288x128xf32>
    %22 = arith.truncf %21 : vector<288x128xf32> to vector<288x128xbf16>
    %cst_18 = arith.constant 0.000000e+00 : bf16
    %23 = vector.broadcast %cst_18 : bf16 to vector<19x128xbf16>
    %c0_19 = arith.constant 0 : index
    %c0_20 = arith.constant 0 : index
    %24 = vector.load %arg9[%c0_19, %c0_20] : memref<328x128xbf16, #tpu.memory_space<vmem>>, vector<19x128xbf16>
    tpu.vector_store %arg9[%c0_19, %c0_20], %23 {strides = array<i32>} : memref<328x128xbf16, #tpu.memory_space<vmem>>, vector<19x128xbf16>,
    %cst_21 = arith.constant 0.000000e+00 : bf16
    %25 = vector.broadcast %cst_21 : bf16 to vector<21x128xbf16>
    %c307 = arith.constant 307 : index
    %c0_22 = arith.constant 0 : index
    %26 = vector.load %arg9[%c307, %c0_22] : memref<328x128xbf16, #tpu.memory_space<vmem>>, vector<21x128xbf16>
    tpu.vector_store %arg9[%c307, %c0_22], %25 {strides = array<i32>} : memref<328x128xbf16, #tpu.memory_space<vmem>>, vector<21x128xbf16>,
    %c19 = arith.constant 19 : index
    %c0_23 = arith.constant 0 : index
    %27 = vector.load %arg9[%c19, %c0_23] : memref<328x128xbf16, #tpu.memory_space<vmem>>, vector<288x128xbf16>
    tpu.vector_store %arg9[%c19, %c0_23], %22 {strides = array<i32>} : memref<328x128xbf16, #tpu.memory_space<vmem>>, vector<288x128xbf16>,
    %cst_24 = arith.constant 0.000000e+00 : bf16
    %28 = vector.broadcast %cst_24 : bf16 to vector<2x128xbf16>
    %c35 = arith.constant 35 : index
    %c0_25 = arith.constant 0 : index
    %29 = vector.load %arg9[%c35, %c0_25] : memref<328x128xbf16, #tpu.memory_space<vmem>>, vector<2x128xbf16>
    tpu.vector_store %arg9[%c35, %c0_25], %28 {strides = array<i32>} : memref<328x128xbf16, #tpu.memory_space<vmem>>, vector<2x128xbf16>,
    %c53 = arith.constant 53 : index
    %c0_26 = arith.constant 0 : index
    %30 = vector.load %arg9[%c53, %c0_26] : memref<328x128xbf16, #tpu.memory_space<vmem>>, vector<2x128xbf16>
    tpu.vector_store %arg9[%c53, %c0_26], %28 {strides = array<i32>} : memref<328x128xbf16, #tpu.memory_space<vmem>>, vector<2x128xbf16>,
    %c71 = arith.constant 71 : index
    %c0_27 = arith.constant 0 : index
    %31 = vector.load %arg9[%c71, %c0_27] : memref<328x128xbf16, #tpu.memory_space<vmem>>, vector<2x128xbf16>
    tpu.vector_store %arg9[%c71, %c0_27], %28 {strides = array<i32>} : memref<328x128xbf16, #tpu.memory_space<vmem>>, vector<2x128xbf16>,
    %c89 = arith.constant 89 : index
    %c0_28 = arith.constant 0 : index
    %32 = vector.load %arg9[%c89, %c0_28] : memref<328x128xbf16, #tpu.memory_space<vmem>>, vector<2x128xbf16>
    tpu.vector_store %arg9[%c89, %c0_28], %28 {strides = array<i32>} : memref<328x128xbf16, #tpu.memory_space<vmem>>, vector<2x128xbf16>,
    %c107 = arith.constant 107 : index
    %c0_29 = arith.constant 0 : index
    %33 = vector.load %arg9[%c107, %c0_29] : memref<328x128xbf16, #tpu.memory_space<vmem>>, vector<2x128xbf16>
    tpu.vector_store %arg9[%c107, %c0_29], %28 {strides = array<i32>} : memref<328x128xbf16, #tpu.memory_space<vmem>>, vector<2x128xbf16>,
    %c125 = arith.constant 125 : index
    %c0_30 = arith.constant 0 : index
    %34 = vector.load %arg9[%c125, %c0_30] : memref<328x128xbf16, #tpu.memory_space<vmem>>, vector<2x128xbf16>
    tpu.vector_store %arg9[%c125, %c0_30], %28 {strides = array<i32>} : memref<328x128xbf16, #tpu.memory_space<vmem>>, vector<2x128xbf16>,
    %c143 = arith.constant 143 : index
    %c0_31 = arith.constant 0 : index
    %35 = vector.load %arg9[%c143, %c0_31] : memref<328x128xbf16, #tpu.memory_space<vmem>>, vector<2x128xbf16>
    tpu.vector_store %arg9[%c143, %c0_31], %28 {strides = array<i32>} : memref<328x128xbf16, #tpu.memory_space<vmem>>, vector<2x128xbf16>,
    %c161 = arith.constant 161 : index
    %c0_32 = arith.constant 0 : index
    %36 = vector.load %arg9[%c161, %c0_32] : memref<328x128xbf16, #tpu.memory_space<vmem>>, vector<2x128xbf16>
    tpu.vector_store %arg9[%c161, %c0_32], %28 {strides = array<i32>} : memref<328x128xbf16, #tpu.memory_space<vmem>>, vector<2x128xbf16>,
    %c179 = arith.constant 179 : index
    %c0_33 = arith.constant 0 : index
    %37 = vector.load %arg9[%c179, %c0_33] : memref<328x128xbf16, #tpu.memory_space<vmem>>, vector<2x128xbf16>
    tpu.vector_store %arg9[%c179, %c0_33], %28 {strides = array<i32>} : memref<328x128xbf16, #tpu.memory_space<vmem>>, vector<2x128xbf16>,
    %c197 = arith.constant 197 : index
    %c0_34 = arith.constant 0 : index
    %38 = vector.load %arg9[%c197, %c0_34] : memref<328x128xbf16, #tpu.memory_space<vmem>>, vector<2x128xbf16>
    tpu.vector_store %arg9[%c197, %c0_34], %28 {strides = array<i32>} : memref<328x128xbf16, #tpu.memory_space<vmem>>, vector<2x128xbf16>,
    %c215 = arith.constant 215 : index
    %c0_35 = arith.constant 0 : index
    %39 = vector.load %arg9[%c215, %c0_35] : memref<328x128xbf16, #tpu.memory_space<vmem>>, vector<2x128xbf16>
    tpu.vector_store %arg9[%c215, %c0_35], %28 {strides = array<i32>} : memref<328x128xbf16, #tpu.memory_space<vmem>>, vector<2x128xbf16>,
    %c233 = arith.constant 233 : index
    %c0_36 = arith.constant 0 : index
    %40 = vector.load %arg9[%c233, %c0_36] : memref<328x128xbf16, #tpu.memory_space<vmem>>, vector<2x128xbf16>
    tpu.vector_store %arg9[%c233, %c0_36], %28 {strides = array<i32>} : memref<328x128xbf16, #tpu.memory_space<vmem>>, vector<2x128xbf16>,
    %c251 = arith.constant 251 : index
    %c0_37 = arith.constant 0 : index
    %41 = vector.load %arg9[%c251, %c0_37] : memref<328x128xbf16, #tpu.memory_space<vmem>>, vector<2x128xbf16>
    tpu.vector_store %arg9[%c251, %c0_37], %28 {strides = array<i32>} : memref<328x128xbf16, #tpu.memory_space<vmem>>, vector<2x128xbf16>,
    %c269 = arith.constant 269 : index
    %c0_38 = arith.constant 0 : index
    %42 = vector.load %arg9[%c269, %c0_38] : memref<328x128xbf16, #tpu.memory_space<vmem>>, vector<2x128xbf16>
    tpu.vector_store %arg9[%c269, %c0_38], %28 {strides = array<i32>} : memref<328x128xbf16, #tpu.memory_space<vmem>>, vector<2x128xbf16>,
    %c287 = arith.constant 287 : index
    %c0_39 = arith.constant 0 : index
    %43 = vector.load %arg9[%c287, %c0_39] : memref<328x128xbf16, #tpu.memory_space<vmem>>, vector<2x128xbf16>
    tpu.vector_store %arg9[%c287, %c0_39], %28 {strides = array<i32>} : memref<328x128xbf16, #tpu.memory_space<vmem>>, vector<2x128xbf16>,
    %c305 = arith.constant 305 : index
    %c0_40 = arith.constant 0 : index
    %44 = vector.load %arg9[%c305, %c0_40] : memref<328x128xbf16, #tpu.memory_space<vmem>>, vector<2x128xbf16>
    tpu.vector_store %arg9[%c305, %c0_40], %28 {strides = array<i32>} : memref<328x128xbf16, #tpu.memory_space<vmem>>, vector<2x128xbf16>,
    %c0_41 = arith.constant 0 : index
    %c0_42 = arith.constant 0 : index
    %45 = vector.load %arg9[%c0_41, %c0_42] : memref<328x128xbf16, #tpu.memory_space<vmem>>, vector<288x128xbf16>
    %c1_43 = arith.constant 1 : index
    %c0_44 = arith.constant 0 : index
    %46 = vector.load %arg9[%c1_43, %c0_44] : memref<328x128xbf16, #tpu.memory_space<vmem>>, vector<288x128xbf16>
    %c2_45 = arith.constant 2 : index
    %c0_46 = arith.constant 0 : index
    %47 = vector.load %arg9[%c2_45, %c0_46] : memref<328x128xbf16, #tpu.memory_space<vmem>>, vector<288x128xbf16>
    %48 = tpu.concatenate %45, %46, %47 in 1 : vector<288x128xbf16>, vector<288x128xbf16>, vector<288x128xbf16> -> vector<288x384xbf16>
    %c0_47 = arith.constant 0 : index
    %c0_48 = arith.constant 0 : index
    %c0_49 = arith.constant 0 : index
    %49 = vector.load %arg4[%c0_47, %c0_48, %c0_49] : memref<3x384x128xbf16, #tpu.memory_space<vmem>>, vector<1x384x128xbf16>
    %50 = vector.shape_cast %49 : vector<1x384x128xbf16> to vector<384x128xbf16>
    %cst_50 = arith.constant dense<0.000000e+00> : vector<288x128xf32>
    %51 = tpu.matmul %48, %50, %cst_50 {dimension_numbers = #tpu.dot_dimension_numbers<[1], [0], [0], [1], [0, 0, 1, 1], [], []>} : vector<288x384xbf16>, vector<384x128xbf16>, vector<288x128xf32> -> vector<288x128xf32>
    %c18_51 = arith.constant 18 : index
    %c0_52 = arith.constant 0 : index
    %52 = vector.load %arg9[%c18_51, %c0_52] : memref<328x128xbf16, #tpu.memory_space<vmem>>, vector<288x128xbf16>
    %c19_53 = arith.constant 19 : index
    %c0_54 = arith.constant 0 : index
    %53 = vector.load %arg9[%c19_53, %c0_54] : memref<328x128xbf16, #tpu.memory_space<vmem>>, vector<288x128xbf16>
    %c20 = arith.constant 20 : index
    %c0_55 = arith.constant 0 : index
    %54 = vector.load %arg9[%c20, %c0_55] : memref<328x128xbf16, #tpu.memory_space<vmem>>, vector<288x128xbf16>
    %55 = tpu.concatenate %52, %53, %54 in 1 : vector<288x128xbf16>, vector<288x128xbf16>, vector<288x128xbf16> -> vector<288x384xbf16>
    %c1_56 = arith.constant 1 : index
    %c0_57 = arith.constant 0 : index
    %c0_58 = arith.constant 0 : index
    %56 = vector.load %arg4[%c1_56, %c0_57, %c0_58] : memref<3x384x128xbf16, #tpu.memory_space<vmem>>, vector<1x384x128xbf16>
    %57 = vector.shape_cast %56 : vector<1x384x128xbf16> to vector<384x128xbf16>
    %cst_59 = arith.constant dense<0.000000e+00> : vector<288x128xf32>
    %58 = tpu.matmul %55, %57, %cst_59 {dimension_numbers = #tpu.dot_dimension_numbers<[1], [0], [0], [1], [0, 0, 1, 1], [], []>} : vector<288x384xbf16>, vector<384x128xbf16>, vector<288x128xf32> -> vector<288x128xf32>
    %59 = arith.addf %51, %58 : vector<288x128xf32>
    %c36_60 = arith.constant 36 : index
    %c0_61 = arith.constant 0 : index
    %60 = vector.load %arg9[%c36_60, %c0_61] : memref<328x128xbf16, #tpu.memory_space<vmem>>, vector<288x128xbf16>
    %c37 = arith.constant 37 : index
    %c0_62 = arith.constant 0 : index
    %61 = vector.load %arg9[%c37, %c0_62] : memref<328x128xbf16, #tpu.memory_space<vmem>>, vector<288x128xbf16>
    %c38 = arith.constant 38 : index
    %c0_63 = arith.constant 0 : index
    %62 = vector.load %arg9[%c38, %c0_63] : memref<328x128xbf16, #tpu.memory_space<vmem>>, vector<288x128xbf16>
    %63 = tpu.concatenate %60, %61, %62 in 1 : vector<288x128xbf16>, vector<288x128xbf16>, vector<288x128xbf16> -> vector<288x384xbf16>
    %c2_64 = arith.constant 2 : index
    %c0_65 = arith.constant 0 : index
    %c0_66 = arith.constant 0 : index
    %64 = vector.load %arg4[%c2_64, %c0_65, %c0_66] : memref<3x384x128xbf16, #tpu.memory_space<vmem>>, vector<1x384x128xbf16>
    %65 = vector.shape_cast %64 : vector<1x384x128xbf16> to vector<384x128xbf16>
    %cst_67 = arith.constant dense<0.000000e+00> : vector<288x128xf32>
    %66 = tpu.matmul %63, %65, %cst_67 {dimension_numbers = #tpu.dot_dimension_numbers<[1], [0], [0], [1], [0, 0, 1, 1], [], []>} : vector<288x384xbf16>, vector<384x128xbf16>, vector<288x128xf32> -> vector<288x128xf32>
    %67 = arith.addf %59, %66 : vector<288x128xf32>
    %c0_68 = arith.constant 0 : index
    %c0_69 = arith.constant 0 : index
    %68 = vector.load %arg5[%c0_68, %c0_69] : memref<1x128xf32, #tpu.memory_space<vmem>>, vector<1x128xf32>
    %69 = vector.broadcast %68 : vector<1x128xf32> to vector<288x128xf32>
    %70 = arith.addf %67, %69 : vector<288x128xf32>
    %c0_70 = arith.constant 0 : index
    %c18_71 = arith.constant 18 : index
    %c0_72 = arith.constant 0 : index
    %71 = vector.load %arg1[%c0_70, %c18_71, %c0_72] : memref<1x328x128xbf16, #tpu.memory_space<vmem>>, vector<1x288x128xbf16>
    %72 = vector.shape_cast %71 : vector<1x288x128xbf16> to vector<288x128xbf16>
    %c0_73 = arith.constant 0 : index
    %c0_74 = arith.constant 0 : index
    %73 = vector.load %arg6[%c0_73, %c0_74] : memref<128x128xbf16, #tpu.memory_space<vmem>>, vector<128x128xbf16>
    %cst_75 = arith.constant dense<0.000000e+00> : vector<288x128xf32>
    %74 = tpu.matmul %72, %73, %cst_75 {dimension_numbers = #tpu.dot_dimension_numbers<[1], [0], [0], [1], [0, 0, 1, 1], [], []>} : vector<288x128xbf16>, vector<128x128xbf16>, vector<288x128xf32> -> vector<288x128xf32>
    %c0_76 = arith.constant 0 : index
    %c0_77 = arith.constant 0 : index
    %75 = vector.load %arg7[%c0_76, %c0_77] : memref<1x128xf32, #tpu.memory_space<vmem>>, vector<1x128xf32>
    %76 = vector.broadcast %75 : vector<1x128xf32> to vector<288x128xf32>
    %77 = arith.addf %74, %76 : vector<288x128xf32>
    %78 = arith.addf %70, %77 : vector<288x128xf32>
    %cst_78 = arith.constant 0.000000e+00 : f32
    %79 = vector.broadcast %cst_78 : f32 to vector<288x128xf32>
    %80 = arith.maximumf %78, %79 : vector<288x128xf32>
    %81 = vector.shape_cast %80 : vector<288x128xf32> to vector<1x288x128xf32>
    %82 = arith.truncf %81 : vector<1x288x128xf32> to vector<1x288x128xbf16>
    %c0_79 = arith.constant 0 : index
    %c0_80 = arith.constant 0 : index
    %c0_81 = arith.constant 0 : index
    %83 = vector.load %arg8[%c0_79, %c0_80, %c0_81] : memref<1x288x128xbf16, #tpu.memory_space<vmem>>, vector<1x288x128xbf16>
    tpu.vector_store %arg8[%c0_79, %c0_80, %c0_81], %82 {strides = array<i32>} : memref<1x288x128xbf16, #tpu.memory_space<vmem>>, vector<1x288x128xbf16>,
    return
  }
  func.func @transform_0(%arg0: i32) -> (i32, i32, i32) {
    %c0_i32 = arith.constant 0 : i32
    %c0_i32_0 = arith.constant 0 : i32
    %c0_i32_1 = arith.constant 0 : i32
    return %arg0, %c0_i32, %c0_i32_0 : i32, i32, i32
  }
  func.func @transform_1(%arg0: i32) -> (i32, i32, i32) {
    %c0_i32 = arith.constant 0 : i32
    %c0_i32_0 = arith.constant 0 : i32
    %c0_i32_1 = arith.constant 0 : i32
    %c0_i32_2 = arith.constant 0 : i32
    return %c0_i32, %c0_i32_0, %c0_i32_1 : i32, i32, i32
  }
  func.func @transform_2(%arg0: i32) -> (i32, i32) {
    %c0_i32 = arith.constant 0 : i32
    %c0_i32_0 = arith.constant 0 : i32
    %c0_i32_1 = arith.constant 0 : i32
    return %c0_i32, %c0_i32_0 : i32, i32
  }
  func.func @transform_3(%arg0: i32) -> (i32, i32, i32) {
    %c0_i32 = arith.constant 0 : i32
    %c0_i32_0 = arith.constant 0 : i32
    %c0_i32_1 = arith.constant 0 : i32
    %c0_i32_2 = arith.constant 0 : i32
    return %c0_i32, %c0_i32_0, %c0_i32_1 : i32, i32, i32
  }
  func.func @transform_4(%arg0: i32) -> (i32, i32) {
    %c0_i32 = arith.constant 0 : i32
    %c0_i32_0 = arith.constant 0 : i32
    %c0_i32_1 = arith.constant 0 : i32
    return %c0_i32, %c0_i32_0 : i32, i32
  }
  func.func @transform_5(%arg0: i32) -> (i32, i32) {
    %c0_i32 = arith.constant 0 : i32
    %c0_i32_0 = arith.constant 0 : i32
    %c0_i32_1 = arith.constant 0 : i32
    return %c0_i32, %c0_i32_0 : i32, i32
  }
  func.func @transform_6(%arg0: i32) -> (i32, i32) {
    %c0_i32 = arith.constant 0 : i32
    %c0_i32_0 = arith.constant 0 : i32
    %c0_i32_1 = arith.constant 0 : i32
    return %c0_i32, %c0_i32_0 : i32, i32
  }
  func.func @transform_7(%arg0: i32) -> (i32, i32, i32) {
    %c0_i32 = arith.constant 0 : i32
    %c0_i32_0 = arith.constant 0 : i32
    %c0_i32_1 = arith.constant 0 : i32
    return %arg0, %c0_i32, %c0_i32_0 : i32, i32, i32
  }
}

</mosaic_0001>

<bundles_post_ra>
// kernel: tpu_custom_call.1
= control target key start
LH: loop header
LB: loop body
LE: loop exit
PB: predicated region body
PF: predicated region fallthrough
CT: control target
= control target key end

     0   :  { %s8797_s0 = inlined_call_operand.hbm [shape: bf16[2,328,128], index: 0, kind: input, shape index: {}]   ;;  %s8798_s1 = inlined_call_operand.hbm [shape: bf16[3,128,128], index: 1, kind: input, shape index: {}]   ;;  %s8799_s2 = inlined_call_operand.vmem [shape: f32[1,128], index: 2, kind: input, shape index: {}]   ;;  %s8800_s3 = inlined_call_operand.hbm [shape: bf16[3,384,128], index: 3, kind: input, shape index: {}]   ;;  %s8801_s4 = inlined_call_operand.vmem [shape: f32[1,128], index: 4, kind: input, shape index: {}]   ;;  %s8802_s5 = inlined_call_operand.hbm [shape: bf16[128,128], index: 5, kind: input, shape index: {}]   ;;  %s8803_s6 = inlined_call_operand.vmem [shape: f32[1,128], index: 6, kind: input, shape index: {}]   ;;  %s8804_s7 = inlined_call_operand.hbm [shape: bf16[2,288,128], index: 7, kind: output, shape index: {}]  }
   0x1   :  { %8874 = sst [smem:[#allocation57_spill]] %s8798_s1 }
   0x2   :  { %8875 = sst [smem:[#allocation58_spill]] %s8800_s3 }
   0x3   :  { %8876 = sst [smem:[#allocation59_spill]] %s8802_s5 }
   0x4   :  { %12 = vsyncpa [#allocation4], 0 }
   0x5   :  { %14 = vsyncpa [#allocation4 + $0x1], 0 }
   0x6   :  { %15 = vsyncpa [#allocation7], 0 }
   0x7   :  { %16 = vsyncpa [#allocation10], 0 }
   0x8   :  { %17 = vsyncpa [#allocation5], 0 }
   0x9   :  { %19 = vsyncpa [#allocation5 + $0x1], 0  ;;  %s6604_s24 = smov 0   ;;  %s6606_s25 = smov 0  }
   0xa   :  { %s6608_s26 = smov 0   ;;  %s6610_s27 = smov 0  }
   0xb LB: > { %s6625_s28 = sadd.s32 4294967295, %s6554_s27   ;;  %s5113_s29 = sadd.s32 4294967294, %s6554_s27   ;;  %s6554_s27 = sphi %s6610_s27, %s9066_s27   ;;  %s6550_s26 = sphi %s6608_s26, %s9065_s26   ;;  %s6546_s25 = sphi %s6606_s25, %s9064_s25   ;;  %s6542_s24 = sphi %s6604_s24, %s9063_s24  }
   0xc   : > { %p45_p0 = scmp.ne.s32.totalorder %s6546_s25, %s6542_s24  ;;  %p46_p1 = scmp.eq.s32.totalorder %s6625_s28, 0 }
   0xd   : > { %p195_p2 = scmp.eq.s32.totalorder %s6625_s28, 1  ;;  %p201_p3 = scmp.eq.s32.totalorder %s5113_s29, 1 }
   0xe   : > { %p6634_p4 = por %p46_p1, %p45_p0  ;;  %p5114_p5 = scmp.ge.s32.totalorder %s6554_s27, 1 }
   0xf   : > { %p6639_p6 = por %p201_p3, %p45_p0  ;;  %p208_p7 = scmp.lt.s32.totalorder %s6554_s27, 3 }
  0x10   : > { %s8879_s1 = sld [smem:[#allocation57_spill]]  ;;  %s6556_s13 = smov [#allocation6]  }
  0x11   : > { %p6647_p8 = pnand %p5114_p5, %p208_p7  ;;  %s221_s14 = sshll.u32 %s6556_s13, 4  ;;  %s222_s14 = int_to_ptr.vmem [resolvable:$true] %s221_s14 }
  0x12   : > { %s8882_s3 = sld [smem:[#allocation58_spill]]  ;;  %s8805_s19 = smov 64  }
  0x13   : > { %p6259_p9 = pneg %p6647_p8  ;;  %s8806_s20 = smov 4  }
  0x14   : > { %s6559_s21 = smov [#allocation8]   ;;  %s8883_s5 = sld [smem:[#allocation59_spill]] }
  0x15   : > { %p6655_p10 = pnand %p6259_p9, %p46_p1  ;;  %s238_s22 = sshll.u32 %s6559_s21, 4  ;;  %s239_s22 = int_to_ptr.vmem [resolvable:$true] %s238_s22 }
  0x16   : > { %s219_s11 = sshll.u32 %s8879_s1, 4  ;;  %s6560_s10 = smov [#allocation9]   ;;  %s220_s11 = int_to_ptr.hbm [resolvable:$true] %s219_s11 }
  0x17   : > { %6262 = dma.hbm_to_vmem [thread:$0]  (!%p6655_p10), %s220_s11, 3072, %s222_s14, [#allocation7], %s8805_s19, %s8805_s19, %s8806_s20  }
  0x18   : > { %s236_s18 = sshll.u32 %s8882_s3, 4  ;;  %s255_s11 = sshll.u32 %s6560_s10, 4  ;;  %s237_s18 = int_to_ptr.hbm [resolvable:$true] %s236_s18  ;;  %s256_s11 = int_to_ptr.vmem [resolvable:$true] %s255_s11 }
  0x19   : > { %6265 = dma.hbm_to_vmem [thread:$0]  (!%p6655_p10), %s237_s18, 9216, %s239_s22, [#allocation7], %s8805_s19, %s8805_s19, %s8806_s20  }
  0x1a   : > { %s253_s9 = sshll.u32 %s8883_s5, 4  ;;  %s6677_s13 = sadd.s32 1, %s6554_s27   ;;  %s254_s9 = int_to_ptr.hbm [resolvable:$true] %s253_s9 }
  0x1b   : > { %6268 = dma.hbm_to_vmem [thread:$0]  (!%p6655_p10), %s254_s9, 1024, %s256_s11, [#allocation10], %s8805_s19, %s8805_s19, %s8806_s20  }
  0x1c   : > { %s29_s14 = ssub.s32 %s6554_s27, %s6677_s13  ;;  %s32_s16 = sadd.s32 1, %s6550_s26 }
  0x1d   : > { %p30_p12 = scmp.eq.s32.totalorder %s29_s14, 0  ;;  %p39_p13 = scmp.ne.s32.totalorder %s6550_s26, %s6546_s25 }
  0x1e   : > { %p40_p0 = scmp.eq.s32.totalorder %s6554_s27, 0  ;;  %p6280_p3 = scmp.lt.s32.totalorder %s6554_s27, 2 }
  0x1f   : > { %s6692_s17 = scalar_select %p30_p12, %s6550_s26, %s32_s16  }
  0x20   : > { %p41_p5 = por %p40_p0, %p39_p13  ;;  %p6696_p7 = por %p195_p2, %p39_p13 }
  0x21   : > { %s272_s15 = sand.u32 1, %s6550_s26   ;;  %s6239_s21 = smul.u32 164, %s6554_s27 }
  0x22   : > { %s6238_s22 = smul.u32 164, %s272_s15  ;;  %p6705_p9 = pnand %p6280_p3, %p41_p5 }
  0x23   : > { %s281_s9 = scalar_lea.hbm %s8797_s0, %s6239_s21  ;;  %s273_s19 = scalar_lea.sflag [#allocation4], %s272_s15 }
  0x24   : > { %s282_s11 = sshll.u32 %s281_s9, 4  ;;  %s276_s14 = scalar_lea.vmem [#allocation3], %s6238_s22  ;;  %s283_s11 = int_to_ptr.hbm [resolvable:$true] %s282_s11 }
  0x25   : > { %s284_s16 = sshll.u32 %s276_s14, 4  ;;  %s6450_s20 = sshra.s32 %s283_s11, 4  ;;  %s285_s16 = int_to_ptr.vmem [resolvable:$true] %s284_s16  ;;  %s6451_s20 = int_to_ptr.hbm [resolvable:$true] %s6450_s20 }
  0x26   : > { %s6452_s1 = scalar_lea.hbm %s6451_s20, 164  ;;  %p6454_p10 = pneg %p6705_p9 }
  0x27   : > { %p6453_p2 = scmp.ne.s32.totalorder %s6451_s20, %s6452_s1  ;;  %s6457_s29 = scalar_lea.hbm %s8797_s0, 328 }
  0x28   : > { %p6458_p0 = scmp.lt.s32.totalorder %s6451_s20, %s8797_s0  ;;  %p6459_p3 = scmp.lt.s32.totalorder %s6457_s29, %s6452_s1 }
  0x29   : > { %p6455_p12 = pnand %p6454_p10, %p6453_p2 }
  0x2a   : > { %p6460_p5 = por %p6459_p3, %p6458_p0 }
  0x2b   : > { %p6456_p13 = pneg %p6455_p12 }
  0x2d   : > { %p6461_p11 = pnand %p6460_p5, %p6456_p13 }
  0x2f   : > { %6464 = shalt.err (!%p6461_p11)
}
  0x30   : > { %s8886_s15 = smov 4   ;;  %s8887_s22 = smov 64  }
  0x31   : > { %6272 = dma.hbm_to_vmem [thread:$0]  (!%p6705_p9), %s283_s11, 2624, %s285_s16, %s273_s19, %s8887_s22, %s8887_s22, %s8886_s15  }
  0x32   : > { %296 = sbr.rel (%p6647_p8) target bundleno = 1384 (0x568), region = 48 }
  0x37   : > { %s6725_s9 = sand.u32 1, %s6546_s25  }
  0x38   : > { %s6240_s3 = smul.u32 164, %s6725_s9  ;;  %s299_s1 = scalar_lea.sflag [#allocation4], %s6725_s9 }
  0x3a   : > { %s6729_s5 = scalar_lea.vmem [#allocation3], %s6240_s3 }
  0x3b   : > { %6525 = dma.done.wait (%p6634_p4), %s299_s1, 2624  }
  0x3c   : > { %6527 = vsyncadd (%p6634_p4), %s299_s1, 4294964672 }
  0x3d   : > { %6529 = dma.done.wait (%p46_p1), [#allocation7], 12288  }
  0x3e   : > { %6531 = vsyncadd (%p46_p1), [#allocation7], 4294955008 }
  0x3f   : > { %6533 = dma.done.wait (%p46_p1), [#allocation10], 1024  }
  0x40   : > { %6535 = vsyncadd (%p46_p1), [#allocation10], 4294966272  ;;  %v5928_v0 = vld [vmem:[#allocation6 + $0x78] sm:$0xff]  ;;  %v5927_v1 = vld [vmem:[#allocation6 + $0x70] sm:$0xff]  ;;  %vm516_vm0 = vcmask 1046528   ;;  %vm1039_vm1 = vcmask 1045504  }
  0x41   : > { %6214 = vmatpush.bf16.msra.mxu1 %v5928_v0  ;;  %6215 = vmatpush.bf16.msra.mxu2 %v5928_v0  ;;  %v5926_v2 = vld [vmem:[#allocation6 + $0x68] sm:$0xff]  ;;  %v5925_v3 = vld [vmem:[#allocation6 + $0x60] sm:$0xff]  ;;  %v5924_v4 = vld [vmem:[#allocation6 + $0x58] sm:$0xff]  ;;  %vm1392_vm2 = vcmask 1041408   ;;  %vm1393_vm3 = vsmask.f32 1280 }
  0x42   : > { %620 = vmatpush.bf16.msra.mxu0 %v5928_v0  ;;  %6216 = vmatpush.bf16.msra.mxu3 %v5928_v0  ;;  %v5923_v5 = vld [vmem:[#allocation6 + $0x50] sm:$0xff]  ;;  %v5922_v6 = vld [vmem:[#allocation6 + $0x48] sm:$0xff]  ;;  %v6753_v10 = vld [vmem:[%s6729_s5 + $0x60] sm:$0xff]  ;;  %vm1398_vm5 = vcmask 1043457   ;;  %vm1399_vm6 = vsmask.f32 7942 }
  0x43   : > { %v6744_v7 = vld [vmem:[%s6729_s5 + $0x30] sm:$0xff]  ;;  %v6747_v8 = vld [vmem:[%s6729_s5 + $0x38] sm:$0xff]  ;;  %v5921_v11 = vld [vmem:[#allocation6 + $0x40] sm:$0xff]  ;;  %v538_v15 = vrot.slane %v6753_v10, 1  ;;  %vm1406_vm8 = vsmask.f32 5392 }
  0x44   : > { %v6750_v9 = vld [vmem:[%s6729_s5 + $0x58] sm:$0xff]  ;;  %v526_v12 = vrot.slane %v6744_v7, 1  ;;  %v528_v13 = vrot.slane %v6747_v8, 1  ;;  %v5952_v22 = vld [vmem:[#allocation6 + $0xa8] sm:$0xff]  ;;  %v6766_v24 = vld [vmem:[%s6729_s5 + $0x40] sm:$0xff]  ;;  %vm1845_vm10 = vcmask 1042433  }
  0x45   : > { %6217 = vmatpush.bf16.msra.mxu1 %v5927_v1  ;;  %6218 = vmatpush.bf16.msra.mxu2 %v5927_v1  ;;  %v536_v14 = vrot.slane %v6750_v9, 1  ;;  %v5954_v16 = vld [vmem:[#allocation6 + $0xb8] sm:$0xff]  ;;  %v5953_v20 = vld [vmem:[#allocation6 + $0xb0] sm:$0xff]  ;;  %v5917_v23 = vld [vmem:[#allocation6 + $0x28] sm:$0xff]  ;;  %v530_v28 = vrot.slane %v6766_v24, 1  ;;  %vm1851_vm13 = vcmask 1043458  }
  0x46   : > { %621 = vmatpush.bf16.msra.mxu0 %v5927_v1  ;;  %6219 = vmatpush.bf16.msra.mxu3 %v5927_v1  ;;  %v5919_v17 = vld [vmem:[#allocation6 + $0x38] sm:$0xff]  ;;  %v529_v18 = vsel %vm516_vm0, %v526_v12, %v528_v13  ;;  %v5918_v21 = vld [vmem:[#allocation6 + $0x30] sm:$0xff]  ;;  %v6769_v25 = vld [vmem:[%s6729_s5 + $0x68] sm:$0xff]  ;;  %vm1846_vm11 = vsmask.f32 2310  ;;  %s6241_s29 = smul.u32 144, %s6725_s9 }
  0x47   : > { %v539_v19 = vsel %vm516_vm0, %v536_v14, %v538_v15  ;;  %v5951_v26 = vld [vmem:[#allocation6 + $0xa0] sm:$0xff]  ;;  %v540_v29 = vrot.slane %v6769_v25, 1  ;;  %v5950_v30 = vld [vmem:[#allocation6 + $0x98] sm:$0xff]  ;;  %v531_v32 = vsel %vm516_vm0, %v528_v13, %v530_v28  ;;  %v5949_v34 = vld [vmem:[#allocation6 + $0x90] sm:$0xff]  ;;  %vm1852_vm14 = vsmask.f32 3338 }
  0x48   : > { %v5916_v27 = vld [vmem:[#allocation6 + $0x20] sm:$0xff]  ;;  %v5915_v31 = vld [vmem:[#allocation6 + $0x18] sm:$0xff]  ;;  %v5914_v35 = vld [vmem:[#allocation6 + $0x10] sm:$0xff]  ;;  %s8561_s15 = scalar_lea.vmem [#allocation11], %s6241_s29  ;;  %s6242_s22 = smul.u32 144, %s6625_s28 }
  0x49   : > { %6220 = vmatpush.bf16.msra.mxu1 %v5926_v2  ;;  %6221 = vmatpush.bf16.msra.mxu2 %v5926_v2  ;;  %v541_v33 = vsel %vm516_vm0, %v538_v15, %v540_v29  ;;  %v5948_v36 = vld [vmem:[#allocation6 + $0x88] sm:$0xff]  ;;  %v5947_v44 = vld [vmem:[#allocation6 + $0x80] sm:$0xff]  ;;  %v5909_v53 = vld [vmem:[%s6729_s5 + $0x78] sm:$0xff]  ;;  %s5008_s30 = sshll.u32 %s8561_s15, 4  ;;  %s4996_s28 = scalar_lea.sflag [#allocation5], %s6725_s9  ;;  %s5009_s30 = int_to_ptr.vmem [resolvable:$true] %s5008_s30 }
  0x4a   : > { %622 = vmatpush.bf16.msra.mxu0 %v5926_v2  ;;  %6222 = vmatpush.bf16.msra.mxu3 %v5926_v2  ;;  %v6776_v37 = vld [vmem:[%s6729_s5 + $0x48] sm:$0xff]  ;;  %v6779_v38 = vld [vmem:[%s6729_s5 + $0x70] sm:$0xff]  ;;  %v544_v56 = vrot.slane %v5909_v53, 1  ;;  %v5897_v59 = vld [vmem:[%s6729_s5 + $0x18] sm:$0xff]  ;;  %s6500_s14 = scalar_lea.hbm %s8804_s7, 288 }
  0x4b   : > { %v532_v39 = vrot.slane %v6776_v37, 1  ;;  %v542_v40 = vrot.slane %v6779_v38, 1  ;;  %v5913_v43 = vld [vmem:[#allocation6 + $0x8] sm:$0xff]  ;;  %v6212_v47 = vld [vmem:[%s6729_s5 + $0x8] sm:$0xe]  ;;  %v520_v60 = vrot.slane %v5897_v59, 1  ;;  %vm6871_vm4 = vmand %vm1392_vm2, %vm1393_vm3 }
  0x4c   : > { %v6211_v45 = vld [vmem:[%s6729_s5 + $0x8] sm:$0xf0]  ;;  %v5896_v46 = vld [vmem:[%s6729_s5 + $0x10] sm:$0xff]  ;;  %v6799_v62 = vld [vmem:[%s6729_s5 + $0x80] sm:$0xff] }
  0x4d   : > { %6223 = vmatpush.bf16.msra.mxu1 %v5925_v3  ;;  %6224 = vmatpush.bf16.msra.mxu2 %v5925_v3  ;;  %v533_v41 = vsel %vm516_vm0, %v530_v28, %v532_v39  ;;  %v543_v42 = vsel %vm516_vm0, %v540_v29, %v542_v40  ;;  %v5912_v48 = vld [vmem:[#allocation6] sm:$0xff]  ;;  %v6213_v49 = vor.u32 %v6212_v47, %v6211_v45  ;;  %v518_v50 = vrot.slane %v5896_v46, 1  ;;  %v6789_v52 = vld [vmem:[%s6729_s5 + $0x50] sm:$0xff]  ;;  %vm6879_vm7 = vmand %vm1398_vm5, %vm1399_vm6 }
  0x4e   : > { %623 = vmatpush.bf16.msra.mxu0 %v5925_v3  ;;  %6225 = vmatpush.bf16.msra.mxu3 %v5925_v3  ;;  %v534_v55 = vrot.slane %v6789_v52, 1  ;;  %v545_v58 = vsel %vm516_vm0, %v542_v40, %v544_v56  ;;  %v546_v63 = vrot.slane %v6799_v62, 1  ;;  %v5898_v2 = vld [vmem:[%s6729_s5 + $0x20] sm:$0xff]  ;;  %v5262_v3 = vld [vmem:[%s6729_s5 + $0x10] sm:$0xc]  ;;  %v5936_v53 = vld [vmem:[%s6729_s5 + $0x48] sm:$0xff] }
  0x4f   : > { %v517_v51 = vrot.slane %v6213_v49, 1  ;;  %v521_v61 = vsel %vm516_vm0, %v518_v50, %v520_v60  ;;  %v5935_v45 = vld [vmem:[%s6729_s5 + $0x40] sm:$0xff]  ;;  %vm6922_vm9 = vmor %vm1393_vm3, %vm1406_vm8  ;;  %vm2068_vm3 = vsmask.f32 7424  ;;  %vm1857_vm5 = vcmask 1043459  }
  0x50   : > { %v535_v57 = vsel %vm516_vm0, %v532_v39, %v534_v55  ;;  %v537_v0 = vsel %vm516_vm0, %v534_v55, %v536_v14  ;;  %v547_v1 = vsel %vm516_vm0, %v544_v56, %v546_v63  ;;  %v5934_v39 = vld [vmem:[%s6729_s5 + $0x38] sm:$0xff]  ;;  %vm6940_vm12 = vmand %vm1845_vm10, %vm1846_vm11  ;;  %vm1858_vm6 = vsmask.f32 7950 }
  0x51   : > { %6226 = vmatpush.bf16.msra.mxu1 %v5924_v4  ;;  %6227 = vmatpush.bf16.msra.mxu2 %v5924_v4  ;;  %v519_v54 = vsel %vm516_vm0, %v517_v51, %v518_v50  ;;  %vm6977_vm15 = vmand %vm1851_vm13, %vm1852_vm14  ;;  %vm1863_vm8 = vcmask 1040384   ;;  %vm1864_vm10 = vsmask.f32 256  ;;  %vm1869_vm13 = vsmask.f32 1282 }
  0x52   : > { %624 = vmatpush.bf16.msra.mxu0 %v5924_v4  ;;  %6228 = vmatpush.bf16.msra.mxu3 %v5924_v4  ;;  %v5929_v4 = vld [vmem:[%s6729_s5 + $0x10] sm:$0xf0]  ;;  %vm7059_vm11 = vmand %vm1863_vm8, %vm1864_vm10 }
  0x53   : > { %v5263_v13 = vor.u32 %v5929_v4, %v5262_v3  ;;  %vm7100_vm14 = vmand %vm1392_vm2, %vm1869_vm13 }
  0x55   : > { %6229 = vmatpush.bf16.msra.mxu1 %v5923_v5  ;;  %6230 = vmatpush.bf16.msra.mxu2 %v5923_v5  ;;  %v1040_v15 = vrot.slane %v5263_v13, 2 }
  0x56   : > { %625 = vmatpush.bf16.msra.mxu0 %v5923_v5  ;;  %6231 = vmatpush.bf16.msra.mxu3 %v5923_v5  ;;  %v522_v5 = vrot.slane %v5898_v2, 1 }
  0x59   : > { %6232 = vmatpush.bf16.msra.mxu1 %v5922_v6  ;;  %6233 = vmatpush.bf16.msra.mxu2 %v5922_v6 }
  0x5a   : > { %626 = vmatpush.bf16.msra.mxu0 %v5922_v6  ;;  %6234 = vmatpush.bf16.msra.mxu3 %v5922_v6  ;;  %v523_v6 = vsel %vm516_vm0, %v520_v60, %v522_v5 }
  0x5d   : > { %6235 = vmatpush.bf16.msra.mxu1 %v5921_v11  ;;  %6236 = vmatpush.bf16.msra.mxu2 %v5921_v11 }
  0x5e   : > { %627 = vmatpush.bf16.msra.mxu0 %v5921_v11  ;;  %6237 = vmatpush.bf16.msra.mxu3 %v5921_v11  ;;  %v5930_v11 = vld [vmem:[%s6729_s5 + $0x18] sm:$0xff] }
  0x5f   : > { %v1041_v14 = vrot.slane %v5930_v11, 2 }
  0x60   : > { %653 = vmatmul.bf16.vlgmr.msra.gmra.mxu1 %v529_v18  ;;  %678 = vmatmul.bf16.vlgmr.msra.gmra.mxu2 %v539_v19  ;;  %v5899_v18 = vld [vmem:[%s6729_s5 + $0x28] sm:$0xff] }
  0x61   : > { %1143 = vmatpush.bf16.msrb.mxu2 %v5954_v16  ;;  %793 = vmatpush.bf16.msrb.mxu1 %v5919_v17  ;;  %v5895_v16 = vld [vmem:[%s6729_s5] sm:$0xff]  ;;  %v1042_v17 = vsel %vm1039_vm1, %v1040_v15, %v1041_v14  ;;  %v524_v19 = vrot.slane %v5899_v18, 1 }
  0x62   : > { %628 = vmatmul.bf16.vlgmr.msra.gmra.mxu0 %v519_v54  ;;  %v1053_v54 = vrot.slane %v5936_v53, 2 }
  0x63   : > { %v527_v29 = vsel %vm516_vm0, %v524_v19, %v526_v12  ;;  %v1049_v12 = vrot.slane %v5934_v39, 2  ;;  %v405_v39 = vld [vmem:[%s6729_s5 + $0x98] sm:$0x1] }
  0x65   : > { %1144 = vmatpush.bf16.msrb.mxu2 %v5953_v20  ;;  %794 = vmatpush.bf16.msrb.mxu1 %v5918_v21  ;;  %v525_v20 = vsel %vm516_vm0, %v522_v5, %v524_v19  ;;  %v5931_v21 = vld [vmem:[%s6729_s5 + $0x20] sm:$0xff]  ;;  %v1401_v5 = vld [vmem:[#allocation2 + $0x98] sm:$0xe]  ;;  %v5938_v19 = vld [vmem:[%s6729_s5 + $0x58] sm:$0xff] }
  0x69   : > { %1145 = vmatpush.bf16.msrb.mxu2 %v5952_v22  ;;  %795 = vmatpush.bf16.msrb.mxu1 %v5917_v23  ;;  %v1043_v22 = vrot.slane %v5931_v21, 2  ;;  %v6189_v23 = vld [vmem:[%s6729_s5 + $0x8] sm:$0xff]  }
  0x6d   : > { %1146 = vmatpush.bf16.msrb.mxu2 %v5951_v26  ;;  %796 = vmatpush.bf16.msrb.mxu1 %v5916_v27  ;;  %v1044_v26 = vsel %vm1039_vm1, %v1041_v14, %v1043_v22  ;;  %v5932_v27 = vld [vmem:[%s6729_s5 + $0x28] sm:$0xff] }
  0x6e   : > { %v1045_v28 = vrot.slane %v5932_v27, 2  ;;  %v6561_v27 = vmov 0  }
  0x6f   : > { %1390 = vst [vmem:[#allocation2] sm:$0xf] %v6561_v27 }
  0x70   : > { %658 = vmatmul.bf16.gmra.mxu1 %v531_v32  ;;  %683 = vmatmul.bf16.gmra.mxu2 %v541_v33  ;;  %1391 = vst [vmem:[#allocation2 + $0x4] sm:$0xf] %v6561_v27 }
  0x71   : > { %1147 = vmatpush.bf16.msrb.mxu2 %v5950_v30  ;;  %797 = vmatpush.bf16.msrb.mxu1 %v5915_v31  ;;  %v1046_v30 = vsel %vm1039_vm1, %v1043_v22, %v1045_v28  ;;  %v5933_v31 = vld [vmem:[%s6729_s5 + $0x30] sm:$0xff]  ;;  %v6003_v22 = vld [vmem:[#allocation8 + $0xf8] sm:$0xff]  ;;  %1404 = vst [vmem:[#allocation2 + $0x9c] sm:$0xf] %v6561_v27 }
  0x72   : > { %633 = vmatmul.bf16.gmra.mxu0 %v521_v61  ;;  %v1047_v32 = vrot.slane %v5933_v31, 2  ;;  %v5937_v61 = vld [vmem:[%s6729_s5 + $0x50] sm:$0xff]  ;;  %2704 = vmatpush.bf16.msrb.mxu3 %v6003_v22  ;;  %1405 = vst [vmem:[#allocation2 + $0xa0] sm:$0xf] %v6561_v27 }
  0x73   : > { %v1055_v3 = vrot.slane %v5937_v61, 2 }
  0x75   : > { %1148 = vmatpush.bf16.msrb.mxu2 %v5949_v34  ;;  %798 = vmatpush.bf16.msrb.mxu1 %v5914_v35  ;;  %v1048_v34 = vsel %vm1039_vm1, %v1045_v28, %v1047_v32  ;;  %v1056_v13 = vsel %vm1039_vm1, %v1053_v54, %v1055_v3  ;;  %v6010_v28 = vld [vmem:[#allocation8 + $0x130] sm:$0xff] }
  0x79   : > { %1149 = vmatpush.bf16.msrb.mxu2 %v5948_v36  ;;  %799 = vmatpush.bf16.msrb.mxu1 %v5913_v43 }
  0x7d   : > { %1150 = vmatpush.bf16.msrb.mxu2 %v5947_v44  ;;  %800 = vmatpush.bf16.msrb.mxu1 %v5912_v48 }
  0x80   : > { %663 = vmatmul.bf16.gmra.mxu1 %v533_v41  ;;  %688 = vmatmul.bf16.gmra.mxu2 %v543_v42  ;;  %v1050_v42 = vsel %vm1039_vm1, %v1047_v32, %v1049_v12  ;;  %v6001_v32 = vld [vmem:[#allocation8 + $0xe8] sm:$0xff] }
  0x82   : > { %638 = vmatmul.bf16.gmra.mxu0 %v523_v6  ;;  %v1402_v6 = vsel %vm6879_vm7, 0, %v1401_v5 }
  0x83   : > { %1403 = vst [vmem:[#allocation2 + $0x98] sm:$0xe] %v1402_v6 }
  0x90   : > { %668 = vmatmul.bf16.gmra.mxu1 %v535_v57  ;;  %693 = vmatmul.bf16.gmra.mxu2 %v545_v58 }
  0x92   : > { %643 = vmatmul.bf16.gmra.mxu0 %v525_v20 }
  0xa0   : > { %673 = vmatmul.bf16.gmra.mxu1 %v537_v0  ;;  %698 = vmatmul.bf16.gmra.mxu2 %v547_v1 }
  0xa2   : > { %648 = vmatmul.bf16.gmra.mxu0 %v527_v29  ;;  %v6002_v29 = vld [vmem:[#allocation8 + $0xf0] sm:$0xff] }
  0xa3   : > { %2705 = vmatpush.bf16.msrb.mxu3 %v6002_v29 }
  0xa7   : > { %2706 = vmatpush.bf16.msrb.mxu3 %v6001_v32 }
  0xb0   : > { %801 = vmatmul.bf16.vlgmr.msrb.gmra.mxu1 %v5895_v16  ;;  %1151 = vmatmul.bf16.vlgmr.msrb.gmra.mxu2 %v1042_v17  ;;  %v6011_v16 = vld [vmem:[#allocation8 + $0x138] sm:$0xff]  ;;  %v5920_v17 = vld [vmem:[%s6729_s5 + $0x90] sm:$0xff] }
  0xb1   : > { %2803 = vmatpush.bf16.msrb.mxu0 %v6011_v16  ;;  %v550_v20 = vrot.slane %v5920_v17, 1 }
  0xb5   : > { %2804 = vmatpush.bf16.msrb.mxu0 %v6010_v28 }
  0xc0   : > { %806 = vmatmul.bf16.gmra.mxu1 %v6189_v23  ;;  %1156 = vmatmul.bf16.gmra.mxu2 %v1044_v26  ;;  %v1057_v23 = vrot.slane %v5938_v19, 2  ;;  %v6009_v19 = vld [vmem:[#allocation8 + $0x128] sm:$0xff] }
  0xc1   : > { %2805 = vmatpush.bf16.msrb.mxu0 %v6009_v19 }
  0xc2   : > { %v1058_v31 = vsel %vm1039_vm1, %v1055_v3, %v1057_v23 }
  0xd0   : > { %811 = vmatmul.bf16.gmra.mxu1 %v5896_v46  ;;  %1161 = vmatmul.bf16.gmra.mxu2 %v1046_v30  ;;  %v1051_v46 = vrot.slane %v5935_v45, 2 }
  0xd2   : > { %v1052_v49 = vsel %vm1039_vm1, %v1049_v12, %v1051_v46  ;;  %v1054_v57 = vsel %vm1039_vm1, %v1051_v46, %v1053_v54  ;;  %v496_v12 = vunpack.c.l.b16 %v405_v39 }
  0xd4   : > { %v515_v53 = vpack.c.b16 %v496_v12, %v496_v12 }
  0xd6   : > { %v552_v61 = vrot.slane %v515_v53, 1 }
  0xdd   : > { %v6826_v33 = vpop.f32.mrf.mxu1 }
  0xdf   : > { %v629_v15 = vpop.f32.mrf.mxu0 }
  0xe0   : > { %816 = vmatmul.bf16.gmra.mxu1 %v5897_v59  ;;  %1166 = vmatmul.bf16.gmra.mxu2 %v1048_v34  ;;  %v5911_v59 = vld [vmem:[%s6729_s5 + $0x88] sm:$0xff] }
  0xe1   : > { %v548_v0 = vrot.slane %v5911_v59, 1  ;;  %v6907_v59 = vld [vmem:[%s6729_s5 + $0x60] sm:$0xff] }
  0xe2   : > { %v1059_v3 = vrot.slane %v6907_v59, 2  ;;  %v6918_v59 = vld [vmem:[%s6729_s5 + $0x68] sm:$0xff] }
  0xe3   : > { %v6829_v35 = vpop.f32.mrf.mxu2  ;;  %v549_v1 = vsel %vm516_vm0, %v546_v63, %v548_v0  ;;  %v551_v21 = vsel %vm516_vm0, %v548_v0, %v550_v20  ;;  %v553_v0 = vsel %vm516_vm0, %v550_v20, %v552_v61 }
  0xe4   : > { %703 = vmatmul.bf16.vlgmr.msra.gmra.mxu3 %v549_v1  ;;  %v5999_v1 = vld [vmem:[#allocation8 + $0xd8] sm:$0xff]  ;;  %v1060_v22 = vsel %vm1039_vm1, %v1057_v23, %v1059_v3 }
  0xe5   : > { %v6831_v36 = vpop.f32.mrf.mxu1 }
  0xe7   : > { %v631_v26 = vpop.f32.mrf.mxu0 }
  0xeb   : > { %v6834_v40 = vpop.f32.mrf.mxu2 }
  0xed   : > { %v6836_v41 = vpop.f32.mrf.mxu1 }
  0xef   : > { %v634_v46 = vpop.f32.mrf.mxu0 }
  0xf0   : > { %821 = vmatmul.bf16.gmra.mxu1 %v5898_v2  ;;  %1171 = vmatmul.bf16.gmra.mxu2 %v1050_v42  ;;  %v6904_v42 = vld [vmem:[%s8799_s2] ss:$0 sm:$0xff] }
  0xf3   : > { %v6839_v43 = vpop.f32.mrf.mxu2 }
  0xf4   : > { %708 = vmatmul.bf16.gmra.mxu3 %v551_v21 }
  0xf5   : > { %v6841_v44 = vpop.f32.mrf.mxu1 }
  0xf7   : > { %v636_v27 = vpop.f32.mrf.mxu0 }
  0xfb   : > { %v6844_v47 = vpop.f32.mrf.mxu2 }
  0xfd   : > { %v6846_v48 = vpop.f32.mrf.mxu1 }
 0x100   : > { %826 = vmatmul.bf16.gmra.mxu1 %v5899_v18  ;;  %1176 = vmatmul.bf16.gmra.mxu2 %v1052_v49  ;;  %v6000_v49 = vld [vmem:[#allocation8 + $0xe0] sm:$0xff] }
 0x101   : > { %2707 = vmatpush.bf16.msrb.mxu3 %v6000_v49 }
 0x103   : > { %v6849_v50 = vpop.f32.mrf.mxu2 }
 0x104   : > { %713 = vmatmul.bf16.gmra.mxu3 %v553_v0 }
 0x105   : > { %v6851_v51 = vpop.f32.mrf.mxu1  ;;  %2708 = vmatpush.bf16.msrb.mxu3 %v5999_v1 }
 0x10b   : > { %v6854_v55 = vpop.f32.mrf.mxu2 }
 0x10d   : > { %v6856_v56 = vpop.f32.mrf.mxu1 }
 0x110   : > { %831 = vmatmul.bf16.gmra.mxu1 %v6744_v7  ;;  %1181 = vmatmul.bf16.gmra.mxu2 %v1054_v57  ;;  %v1395_v7 = vld [vmem:[#allocation2 + $0x8] sm:$0x3] }
 0x111   : > { %v1396_v4 = vsel %vm6871_vm4, 0, %v1395_v7 }
 0x112   : > { %1397 = vst [vmem:[#allocation2 + $0x8] sm:$0x3] %v1396_v4 }
 0x113   : > { %v6860_v58 = vpop.f32.mrf.mxu2 }
 0x115   : > { %v6863_v60 = vpop.f32.mrf.mxu1 }
 0x11b   : > { %v6877_v62 = vpop.f32.mrf.mxu2 }
 0x11d   : > { %v6885_v11 = vpop.f32.mrf.mxu1 }
 0x120   : > { %836 = vmatmul.bf16.gmra.mxu1 %v6747_v8  ;;  %1186 = vmatmul.bf16.gmra.mxu2 %v1056_v13  ;;  %v5998_v13 = vld [vmem:[#allocation8 + $0xd0] sm:$0xff] }
 0x121   : > { %2709 = vmatpush.bf16.msrb.mxu3 %v5998_v13 }
 0x123   : > { %v6889_v14 = vpop.f32.mrf.mxu2 }
 0x125   : > { %v6892_v18 = vpop.f32.mrf.mxu1 }
 0x12b   : > { %v6896_v8 = vpop.f32.mrf.mxu2 }
 0x12d   : > { %v802_v30 = vpop.f32.mrf.mxu1 }
 0x12e   : > { %v803_v34 = vadd.f32 %v802_v30, %v629_v15  ;;  %v1804_v30 = vld [vmem:[#allocation2 + $0x8] sm:$0xe] }
 0x130   : > { %841 = vmatmul.bf16.gmra.mxu1 %v6766_v24  ;;  %1191 = vmatmul.bf16.gmra.mxu2 %v1058_v31  ;;  %v5997_v31 = vld [vmem:[#allocation8 + $0xc8] sm:$0xff] }
 0x131   : > { %2710 = vmatpush.bf16.msrb.mxu3 %v5997_v31 }
 0x133   : > { %v1152_v45 = vpop.f32.mrf.mxu2 }
 0x134   : > { %v1242_v54 = vadd.f32 %v1152_v45, %v803_v34  ;;  %v5996_v45 = vld [vmem:[#allocation8 + $0xc0] sm:$0xff] }
 0x135   : > { %v804_v57 = vpop.f32.mrf.mxu1  ;;  %2711 = vmatpush.bf16.msrb.mxu3 %v5996_v45 }
 0x136   : > { %v1282_v24 = vadd.f32 %v6904_v42, %v1242_v54  ;;  %v805_v5 = vadd.f32 %v804_v57, %v631_v26 }
 0x138   : > { %v1318_v7 = vmax.f32 %v1282_v24, 0.0  ;;  %v639_v24 = vpop.f32.mrf.mxu0 }
 0x13a   : > { %v1354_v4 = vpack.c.bf16 %v1318_v7, %v1318_v7 }
 0x13b   : > { %v1154_v6 = vpop.f32.mrf.mxu2 }
 0x13c   : > { %v1409_v15 = vshrl.u32 %v1354_v4, 16  ;;  %v1412_v16 = vshll.u32 %v1354_v4, 16  ;;  %v1243_v17 = vadd.f32 %v1154_v6, %v805_v5  ;;  %v6008_v4 = vld [vmem:[#allocation8 + $0x120] sm:$0xff]  ;;  %v1061_v5 = vrot.slane %v6918_v59, 2 }
 0x13d   : > { %v807_v21 = vpop.f32.mrf.mxu1  ;;  %2806 = vmatpush.bf16.msrb.mxu0 %v6008_v4 }
 0x13e   : > { %v1411_v20 = vrot.slane %v1409_v15, 6  ;;  %v1414_v28 = vrot.slane %v1412_v16, 7  ;;  %v1283_v29 = vadd.f32 %v6904_v42, %v1243_v17  ;;  %v808_v34 = vadd.f32 %v807_v21, %v634_v46 }
 0x140   : > { %v1415_v32 = vor.u32 %v1414_v28, %v1411_v20  ;;  %v1319_v26 = vmax.f32 %v1283_v29, 0.0  ;;  %846 = vmatmul.bf16.gmra.mxu1 %v6776_v37  ;;  %1196 = vmatmul.bf16.gmra.mxu2 %v1060_v22  ;;  %v6007_v22 = vld [vmem:[#allocation8 + $0x118] sm:$0xff]  ;;  %v1062_v28 = vsel %vm1039_vm1, %v1059_v3, %v1061_v5 }
 0x141   : > { %2807 = vmatpush.bf16.msrb.mxu0 %v6007_v22 }
 0x142   : > { %v1805_v23 = vsel %vm6879_vm7, %v1415_v32, %v1804_v30  ;;  %v1355_v39 = vpack.c.bf16 %v1319_v26, %v1319_v26  ;;  %v1416_v0 = vrot.slane %v1415_v32, 4  ;;  %vm7029_vm7 = vmand %vm1857_vm5, %vm1858_vm6 }
 0x143   : > { %1806 = vst [vmem:[#allocation2 + $0x8] sm:$0xe] %v1805_v23  ;;  %v1157_v12 = vpop.f32.mrf.mxu2  ;;  %v6006_v23 = vld [vmem:[#allocation8 + $0x110] sm:$0xff] }
 0x144   : > { %v1418_v49 = vshrl.u32 %v1355_v39, 16  ;;  %v1421_v53 = vshll.u32 %v1355_v39, 16  ;;  %v1244_v54 = vadd.f32 %v1157_v12, %v808_v34  ;;  %v641_v39 = vpop.f32.mrf.mxu0 }
 0x145   : > { %v809_v57 = vpop.f32.mrf.mxu1  ;;  %2808 = vmatpush.bf16.msrb.mxu0 %v6006_v23 }
 0x146   : > { %v1420_v46 = vrot.slane %v1418_v49, 6  ;;  %v1423_v61 = vrot.slane %v1421_v53, 7  ;;  %v1284_v37 = vadd.f32 %v6904_v42, %v1244_v54  ;;  %v810_v15 = vadd.f32 %v809_v57, %v636_v27  ;;  %v6005_v57 = vld [vmem:[#allocation8 + $0x108] sm:$0xff] }
 0x148   : > { %v1424_v1 = vor.u32 %v1423_v61, %v1420_v46  ;;  %v1320_v7 = vmax.f32 %v1284_v37, 0.0  ;;  %v6937_v61 = vld [vmem:[%s6729_s5 + $0x70] sm:$0xff] }
 0x149   : > { %2809 = vmatpush.bf16.msrb.mxu0 %v6005_v57 }
 0x14a   : > { %v1425_v6 = vsel %vm6922_vm9, %v1416_v0, %v1424_v1  ;;  %v1356_v13 = vpack.c.bf16 %v1320_v7, %v1320_v7  ;;  %v1426_v32 = vrot.slane %v1424_v1, 4 }
 0x14b   : > { %1807 = vst [vmem:[#allocation2 + $0xc] sm:$0xf] %v1425_v6  ;;  %v1159_v16 = vpop.f32.mrf.mxu2  ;;  %v6004_v6 = vld [vmem:[#allocation8 + $0x100] sm:$0xff] }
 0x14c   : > { %v1428_v17 = vshrl.u32 %v1356_v13, 16  ;;  %v1431_v19 = vshll.u32 %v1356_v13, 16  ;;  %v1245_v21 = vadd.f32 %v1159_v16, %v810_v15  ;;  %v1063_v13 = vrot.slane %v6937_v61, 2 }
 0x14d   : > { %v812_v20 = vpop.f32.mrf.mxu1  ;;  %2810 = vmatpush.bf16.msrb.mxu0 %v6004_v6 }
 0x14e   : > { %v1430_v29 = vrot.slane %v1428_v17, 6  ;;  %v1433_v30 = vrot.slane %v1431_v19, 7  ;;  %v1285_v31 = vadd.f32 %v6904_v42, %v1245_v21  ;;  %v813_v34 = vadd.f32 %v812_v20, %v639_v24  ;;  %v644_v20 = vpop.f32.mrf.mxu0 }
 0x150   : > { %v1434_v26 = vor.u32 %v1433_v30, %v1430_v29  ;;  %v1321_v27 = vmax.f32 %v1285_v31, 0.0  ;;  %851 = vmatmul.bf16.gmra.mxu1 %v6789_v52  ;;  %1201 = vmatmul.bf16.gmra.mxu2 %v1062_v28  ;;  %v2341_v29 = vld [vmem:[#allocation2 + $0x8] sm:$0xe] }
 0x152   : > { %v1435_v12 = vsel %vm6922_vm9, %v1426_v32, %v1434_v26  ;;  %v1357_v45 = vpack.c.bf16 %v1321_v27, %v1321_v27  ;;  %v1436_v0 = vrot.slane %v1434_v26, 4  ;;  %v6190_v21 = vld [vmem:[#allocation2 + $0x8] sm:$0xff]  }
 0x153   : > { %1808 = vst [vmem:[#allocation2 + $0x10] sm:$0xf] %v1435_v12  ;;  %v1162_v3 = vpop.f32.mrf.mxu2  ;;  %v2346_v26 = vld [vmem:[#allocation2 + $0x8] sm:$0xc]  ;;  %v6098_v23 = vunpack.c.h.b16 %v6190_v21  ;;  %v6967_v21 = vld [vmem:[%s6729_s5 + $0x78] sm:$0xff] }
 0x154   : > { %v1438_v49 = vshrl.u32 %v1357_v45, 16  ;;  %v1441_v53 = vshll.u32 %v1357_v45, 16  ;;  %v1246_v54 = vadd.f32 %v1162_v3, %v813_v34  ;;  %v1064_v34 = vsel %vm1039_vm1, %v1061_v5, %v1063_v13 }
 0x155   : > { %v814_v46 = vpop.f32.mrf.mxu1  ;;  %v2351_v3 = vunpack.c.l.b16 %v2341_v29 }
 0x156   : > { %v1440_v52 = vrot.slane %v1438_v49, 6  ;;  %v1443_v37 = vrot.slane %v1441_v53, 7  ;;  %v1286_v24 = vadd.f32 %v6904_v42, %v1246_v54  ;;  %v815_v19 = vadd.f32 %v814_v46, %v641_v39 }
 0x157   : > { %v2386_v49 = vunpack.c.l.b16 %v2346_v26 }
 0x158   : > { %v1444_v7 = vor.u32 %v1443_v37, %v1440_v52  ;;  %v1322_v4 = vmax.f32 %v1286_v24, 0.0  ;;  %v6956_v52 = vpack.c.b16 %v6098_v23, %v2351_v3 }
 0x159   : > { %v2387_v37 = vpack.c.b16 %v6098_v23, %v2386_v49  ;;  %v1065_v23 = vrot.slane %v6967_v21, 2 }
 0x15a   : > { %v1848_v15 = vld [vmem:[#allocation2 + $0x10] sm:$0x6]  ;;  %v1445_v16 = vsel %vm6922_vm9, %v1436_v0, %v1444_v7  ;;  %v1358_v17 = vpack.c.bf16 %v1322_v4, %v1322_v4  ;;  %v1446_v53 = vrot.slane %v1444_v7, 4 }
 0x15b   : > { %v1849_v22 = vsel %vm6940_vm12, 0, %v1848_v15  ;;  %1809 = vst [vmem:[#allocation2 + $0x14] sm:$0xf] %v1445_v16  ;;  %v1164_v28 = vpop.f32.mrf.mxu2  ;;  %v5978_v15 = vld [vmem:[#allocation8 + $0x38] sm:$0xff] }
 0x15c   : > { %1850 = vst [vmem:[#allocation2 + $0x10] sm:$0x6] %v1849_v22  ;;  %v1448_v30 = vshrl.u32 %v1358_v17, 16  ;;  %v1451_v31 = vshll.u32 %v1358_v17, 16  ;;  %v1247_v32 = vadd.f32 %v1164_v28, %v815_v19  ;;  %v2443_v19 = vrot.slane %v6956_v52, 1  ;;  %3145 = vmatpush.bf16.msra.mxu2 %v5978_v15 }
 0x15d   : > { %v817_v27 = vpop.f32.mrf.mxu1  ;;  %v2388_v22 = vrot.slane %v2387_v37, 1 }
 0x15e   : > { %v1450_v39 = vrot.slane %v1448_v30, 6  ;;  %v1453_v12 = vrot.slane %v1451_v31, 7  ;;  %v1287_v45 = vadd.f32 %v6904_v42, %v1247_v32  ;;  %v818_v46 = vadd.f32 %v817_v27, %v644_v20 }
 0x160   : > { %v1454_v54 = vor.u32 %v1453_v12, %v1450_v39  ;;  %v1323_v57 = vmax.f32 %v1287_v45, 0.0  ;;  %856 = vmatmul.bf16.gmra.mxu1 %v6750_v9  ;;  %1206 = vmatmul.bf16.gmra.mxu2 %v1064_v34  ;;  %v646_v9 = vpop.f32.mrf.mxu0 }
 0x162   : > { %v1455_v59 = vsel %vm6922_vm9, %v1446_v53, %v1454_v54  ;;  %v1359_v5 = vpack.c.bf16 %v1323_v57, %v1323_v57  ;;  %v1456_v32 = vrot.slane %v1454_v54, 4  ;;  %v2364_v54 = vshll.u32 %v6956_v52, 16 }
 0x163   : > { %1810 = vst [vmem:[#allocation2 + $0x18] sm:$0xf] %v1455_v59  ;;  %v1167_v24 = vpop.f32.mrf.mxu2  ;;  %v6960_v0 = vld [vmem:[#allocation2 + $0x10] sm:$0xff] }
 0x164   : > { %v1458_v7 = vshrl.u32 %v1359_v5, 16  ;;  %v1461_v4 = vshll.u32 %v1359_v5, 16  ;;  %v1248_v6 = vadd.f32 %v1167_v24, %v818_v46  ;;  %v6963_v17 = vrot.slane %v6960_v0, 1 }
 0x165   : > { %v819_v16 = vpop.f32.mrf.mxu1  ;;  %v1066_v5 = vsel %vm1039_vm1, %v1063_v13, %v1065_v23 }
 0x166   : > { %v1460_v20 = vrot.slane %v1458_v7, 6  ;;  %v1463_v28 = vrot.slane %v1461_v4, 7  ;;  %v1288_v29 = vadd.f32 %v6904_v42, %v1248_v6  ;;  %v2444_v30 = vsel %vm516_vm0, %v2443_v19, %v6963_v17 }
 0x167   : > { %v6974_v31 = vsel %vm516_vm0, %v2388_v22, %v6963_v17  ;;  %2712 = vmatmul.bf16.vlgmr.msrb.gmra.mxu3 %v2444_v30  ;;  %v820_v3 = vadd.f32 %v819_v16, %v646_v9  ;;  %v2085_v6 = vshll.u32 %v6960_v0, 16  ;;  %v2366_v9 = vrot.slane %v2364_v54, 1  ;;  %v5994_v54 = vld [vmem:[#allocation8 + $0xb8] sm:$0xff] }
 0x168   : > { %v1464_v27 = vor.u32 %v1463_v28, %v1460_v20  ;;  %v1324_v34 = vmax.f32 %v1288_v29, 0.0  ;;  %v649_v15 = vpop.f32.mrf.mxu0  ;;  %v6995_v28 = vld [vmem:[#allocation2 + $0x14] sm:$0xf]  ;;  %v2362_v30 = vshrl.u32 %v6956_v52, 16  ;;  %3343 = vmatpush.bf16.msra.mxu0 %v5994_v54 }
 0x169   : > { %v6999_v29 = vrot.slane %v2085_v6, 1 }
 0x16a   : > { %v1854_v39 = vld [vmem:[#allocation2 + $0x18] sm:$0xc]  ;;  %v1465_v12 = vsel %vm6922_vm9, %v1456_v32, %v1464_v27  ;;  %v1360_v45 = vpack.c.bf16 %v1324_v34, %v1324_v34  ;;  %v1466_v16 = vrot.slane %v1464_v27, 4  ;;  %v3480_v32 = vld [vmem:[#allocation2 + $0x10] sm:$0x8] }
 0x16b   : > { %v1855_v49 = vsel %vm6977_vm15, 0, %v1854_v39  ;;  %1811 = vst [vmem:[#allocation2 + $0x1c] sm:$0xf] %v1465_v12  ;;  %v1169_v53 = vpop.f32.mrf.mxu2 }
 0x16c   : > { %1856 = vst [vmem:[#allocation2 + $0x18] sm:$0xc] %v1855_v49  ;;  %v1468_v57 = vshrl.u32 %v1360_v45, 16  ;;  %v1471_v46 = vshll.u32 %v1360_v45, 16  ;;  %v1249_v37 = vadd.f32 %v1169_v53, %v820_v3  ;;  %v5986_v3 = vld [vmem:[#allocation8 + $0x78] sm:$0xff]  ;;  %v2367_v49 = vor.u32 %v2366_v9, %v2362_v30 }
 0x16d   : > { %v822_v59 = vpop.f32.mrf.mxu1  ;;  %v6019_v53 = vld [vmem:[#allocation8 + $0x178] sm:$0xff]  ;;  %3244 = vmatpush.bf16.msra.mxu3 %v5986_v3 }
 0x16e   : > { %v1470_v24 = vrot.slane %v1468_v57, 6  ;;  %v1473_v7 = vrot.slane %v1471_v46, 7  ;;  %v1289_v4 = vadd.f32 %v6904_v42, %v1249_v37  ;;  %v823_v20 = vadd.f32 %v822_v59, %v649_v15  ;;  %v7009_v59 = vld [vmem:[%s6729_s5 + $0x80] sm:$0xff]  ;;  %2902 = vmatpush.bf16.msra.mxu1 %v6019_v53 }
 0x16f   : > { %v2089_v46 = vshrl.u32 %v6960_v0, 16  ;;  %v2368_v15 = vsel %vm2068_vm3, %v2367_v49, %v6999_v29 }
 0x170   : > { %v1474_v19 = vor.u32 %v1473_v7, %v1470_v24  ;;  %v1325_v22 = vmax.f32 %v1289_v4, 0.0  ;;  %861 = vmatmul.bf16.gmra.mxu1 %v6753_v10  ;;  %1211 = vmatmul.bf16.gmra.mxu2 %v1066_v5  ;;  %v8807_v10 = vunpack.c.l.b16 %v6995_v28  ;;  %v3729_v24 = vunpack.c.l.b16 %v3480_v32  ;;  %v651_v32 = vpop.f32.mrf.mxu0 }
 0x171   : > { %v2091_v9 = vor.u32 %v2089_v46, %v6999_v29 }
 0x172   : > { %v1475_v61 = vsel %vm6922_vm9, %v1466_v16, %v1474_v19  ;;  %v1361_v13 = vpack.c.bf16 %v1325_v22, %v1325_v22  ;;  %v3730_v22 = vpack.c.b16 %v8807_v10, %v3729_v24 }
 0x173   : > { %1812 = vst [vmem:[#allocation2 + $0x20] sm:$0xf] %v1475_v61  ;;  %v1172_v27 = vpop.f32.mrf.mxu2  ;;  %v7002_v34 = vld [vmem:[#allocation2 + $0x18] sm:$0xff] }
 0x174   : > { %v1478_v39 = vshrl.u32 %v1361_v13, 16  ;;  %v1481_v12 = vshll.u32 %v1361_v13, 16  ;;  %v1250_v45 = vadd.f32 %v1172_v27, %v823_v20  ;;  %v2243_v52 = vrot.slane %v7002_v34, 1  ;;  %v7011_v5 = vld [vmem:[#allocation2 + $0x18] sm:$0xff] }
 0x175   : > { %v824_v57 = vpop.f32.mrf.mxu1  ;;  %v2093_v37 = vshll.u32 %v7002_v34, 16  ;;  %v1476_v20 = vrot.slane %v1474_v19, 4  ;;  %v3732_v19 = vrot.slane %v7011_v5, 1  ;;  %v3731_v24 = vrot.slane %v3730_v22, 1 }
 0x176   : > { %v1480_v7 = vrot.slane %v1478_v39, 6  ;;  %v1483_v4 = vrot.slane %v1481_v12, 7  ;;  %v1290_v6 = vadd.f32 %v6904_v42, %v1250_v45  ;;  %v7020_v0 = vsel %vm516_vm0, %v6963_v17, %v2243_v52 }
 0x177   : > { %v7023_v16 = vrot.slane %v2093_v37, 1  ;;  %2717 = vmatmul.bf16.gmra.mxu3 %v7020_v0  ;;  %v2445_v39 = vrot.slane %v2368_v15, 1  ;;  %v1067_v12 = vrot.slane %v7009_v59, 2  ;;  %v825_v53 = vadd.f32 %v824_v57, %v651_v32 }
 0x178   : > { %v1484_v13 = vor.u32 %v1483_v4, %v1480_v7  ;;  %v1326_v30 = vmax.f32 %v1290_v6, 0.0  ;;  %v7056_v22 = vsel %vm516_vm0, %v3731_v24, %v3732_v19 }
 0x179   : > { %v7036_v27 = vsel %vm2068_vm3, %v2091_v9, %v7023_v16  ;;  %v1068_v57 = vsel %vm1039_vm1, %v1065_v23, %v1067_v12 }
 0x17a   : > { %v1860_v45 = vld [vmem:[#allocation2 + $0x20] sm:$0x8]  ;;  %v1485_v3 = vsel %vm6922_vm9, %v1476_v20, %v1484_v13  ;;  %v1362_v49 = vpack.c.bf16 %v1326_v30, %v1326_v30  ;;  %v2446_v54 = vrot.slane %v7036_v27, 1 }
 0x17b   : > { %v1861_v46 = vsel %vm7029_vm7, 0, %v1860_v45  ;;  %1813 = vst [vmem:[#allocation2 + $0x24] sm:$0xf] %v1485_v3  ;;  %v1174_v37 = vpop.f32.mrf.mxu2 }
 0x17c   : > { %1862 = vst [vmem:[#allocation2 + $0x20] sm:$0x8] %v1861_v46  ;;  %v1488_v7 = vshrl.u32 %v1362_v49, 16  ;;  %v1491_v4 = vshll.u32 %v1362_v49, 16  ;;  %v1251_v6 = vadd.f32 %v1174_v37, %v825_v53  ;;  %v2447_v15 = vsel %vm516_vm0, %v2445_v39, %v2446_v54 }
 0x17d   : > { %v827_v9 = vpop.f32.mrf.mxu1  ;;  %2811 = vmatmul.bf16.vlgmr.msrb.gmra.mxu0 %v2447_v15  ;;  %v1486_v39 = vrot.slane %v1484_v13, 4  ;;  %v7070_v15 = vld [vmem:[%s6729_s5 + $0x88] sm:$0xff] }
 0x17e   : > { %v1490_v20 = vrot.slane %v1488_v7, 6  ;;  %v1493_v30 = vrot.slane %v1491_v4, 7  ;;  %v1291_v32 = vadd.f32 %v6904_v42, %v1251_v6  ;;  %v828_v46 = vadd.f32 %v827_v9, %v6826_v33 }
 0x17f   : > { %v1069_v33 = vrot.slane %v7070_v15, 2 }
 0x180   : > { %v1494_v3 = vor.u32 %v1493_v30, %v1490_v20  ;;  %v1327_v49 = vmax.f32 %v1291_v32, 0.0  ;;  %866 = vmatmul.bf16.gmra.mxu1 %v6769_v25  ;;  %1216 = vmatmul.bf16.gmra.mxu2 %v1068_v57 }
 0x182   : > { %v1866_v21 = vld [vmem:[#allocation2 + $0x24] sm:$0x1]  ;;  %v1495_v23 = vsel %vm6922_vm9, %v1486_v39, %v1494_v3  ;;  %v1363_v53 = vpack.c.bf16 %v1327_v49, %v1327_v49  ;;  %v1496_v30 = vrot.slane %v1494_v3, 4  ;;  %v1070_v3 = vsel %vm1039_vm1, %v1067_v12, %v1069_v33 }
 0x183   : > { %v1867_v13 = vsel %vm7059_vm11, 0, %v1866_v21  ;;  %1814 = vst [vmem:[#allocation2 + $0x28] sm:$0xf] %v1495_v23  ;;  %v1177_v37 = vpop.f32.mrf.mxu2 }
 0x184   : > { %1868 = vst [vmem:[#allocation2 + $0x24] sm:$0x1] %v1867_v13  ;;  %v1498_v24 = vshrl.u32 %v1363_v53, 16  ;;  %v1501_v7 = vshll.u32 %v1363_v53, 16  ;;  %v1252_v4 = vadd.f32 %v1177_v37, %v828_v46 }
 0x185   : > { %v829_v6 = vpop.f32.mrf.mxu1 }
 0x186   : > { %v1500_v25 = vrot.slane %v1498_v24, 6  ;;  %v1503_v57 = vrot.slane %v1501_v7, 7  ;;  %v1292_v20 = vadd.f32 %v6904_v42, %v1252_v4  ;;  %v830_v21 = vadd.f32 %v829_v6, %v6831_v36 }
 0x187   : > { %v2097_v4 = vshrl.u32 %v7002_v34, 16 }
 0x188   : > { %v1504_v32 = vor.u32 %v1503_v57, %v1500_v25  ;;  %v1328_v39 = vmax.f32 %v1292_v20, 0.0 }
 0x189   : > { %v2099_v59 = vor.u32 %v2097_v4, %v7023_v16 }
 0x18a   : > { %v1505_v9 = vsel %vm6922_vm9, %v1496_v30, %v1504_v32  ;;  %v1364_v49 = vpack.c.bf16 %v1328_v39, %v1328_v39  ;;  %v1506_v30 = vrot.slane %v1504_v32, 4 }
 0x18b   : > { %1815 = vst [vmem:[#allocation2 + $0x2c] sm:$0xf] %v1505_v9  ;;  %v1179_v23 = vpop.f32.mrf.mxu2  ;;  %v7077_v53 = vld [vmem:[#allocation2 + $0x20] sm:$0xff] }
 0x18c   : > { %v1508_v46 = vshrl.u32 %v1364_v49, 16  ;;  %v1511_v13 = vshll.u32 %v1364_v49, 16  ;;  %v1253_v37 = vadd.f32 %v1179_v23, %v830_v21  ;;  %v2245_v7 = vrot.slane %v7077_v53, 1 }
 0x18d   : > { %v832_v24 = vpop.f32.mrf.mxu1  ;;  %v2101_v36 = vshll.u32 %v7077_v53, 16 }
 0x18e   : > { %v1510_v6 = vrot.slane %v1508_v46, 6  ;;  %v1513_v25 = vrot.slane %v1511_v13, 7  ;;  %v1293_v57 = vadd.f32 %v6904_v42, %v1253_v37  ;;  %v7093_v20 = vsel %vm516_vm0, %v2243_v52, %v2245_v7  ;;  %v7110_v52 = vld [vmem:[#allocation2 + $0x20] sm:$0xff] }
 0x18f   : > { %v7096_v12 = vrot.slane %v2101_v36, 1  ;;  %2722 = vmatmul.bf16.gmra.mxu3 %v7093_v20  ;;  %v833_v23 = vadd.f32 %v832_v24, %v6836_v41  ;;  %v7124_v24 = vld [vmem:[%s6729_s5 + $0x90] sm:$0xff] }
 0x190   : > { %v1514_v9 = vor.u32 %v1513_v25, %v1510_v6  ;;  %v1329_v49 = vmax.f32 %v1293_v57, 0.0  ;;  %871 = vmatmul.bf16.gmra.mxu1 %v6779_v38  ;;  %1221 = vmatmul.bf16.gmra.mxu2 %v1070_v3  ;;  %v5977_v6 = vld [vmem:[#allocation8 + $0x30] sm:$0xff] }
 0x191   : > { %v7108_v34 = vsel %vm2068_vm3, %v2099_v59, %v7096_v12  ;;  %v5985_v25 = vld [vmem:[#allocation8 + $0x70] sm:$0xff]  ;;  %3146 = vmatpush.bf16.msra.mxu2 %v5977_v6 }
 0x192   : > { %v1871_v16 = vld [vmem:[#allocation2 + $0x2c] sm:$0x3]  ;;  %v1515_v32 = vsel %vm6922_vm9, %v1506_v30, %v1514_v9  ;;  %v1365_v21 = vpack.c.bf16 %v1329_v49, %v1329_v49  ;;  %v2451_v46 = vrot.slane %v7108_v34, 1  ;;  %v6018_v57 = vld [vmem:[#allocation8 + $0x170] sm:$0xff]  ;;  %v3734_v30 = vrot.slane %v7110_v52, 1  ;;  %3245 = vmatpush.bf16.msra.mxu3 %v5985_v25 }
 0x193   : > { %v1872_v38 = vsel %vm7100_vm14, 0, %v1871_v16  ;;  %1816 = vst [vmem:[#allocation2 + $0x30] sm:$0xf] %v1515_v32  ;;  %v1182_v13 = vpop.f32.mrf.mxu2  ;;  %v5993_v59 = vld [vmem:[#allocation8 + $0xb0] sm:$0xff]  ;;  %2903 = vmatpush.bf16.msra.mxu1 %v6018_v57 }
 0x194   : > { %1873 = vst [vmem:[#allocation2 + $0x2c] sm:$0x3] %v1872_v38  ;;  %v1518_v37 = vshrl.u32 %v1365_v21, 16  ;;  %v1521_v3 = vshll.u32 %v1365_v21, 16  ;;  %v1254_v4 = vadd.f32 %v1182_v13, %v833_v23  ;;  %v2452_v36 = vsel %vm516_vm0, %v2446_v54, %v2451_v46  ;;  %3344 = vmatpush.bf16.msra.mxu0 %v5993_v59  ;;  %v6017_v13 = vld [vmem:[#allocation8 + $0x168] sm:$0xff] }
 0x195   : > { %v834_v41 = vpop.f32.mrf.mxu1  ;;  %2816 = vmatmul.bf16.gmra.mxu0 %v2452_v36  ;;  %v7133_v54 = vsel %vm516_vm0, %v3732_v19, %v3734_v30  ;;  %v1516_v21 = vrot.slane %v1514_v9, 4  ;;  %v5976_v36 = vld [vmem:[#allocation8 + $0x28] sm:$0xff] }
 0x196   : > { %v1520_v49 = vrot.slane %v1518_v37, 6  ;;  %v1523_v16 = vrot.slane %v1521_v3, 7  ;;  %v1294_v32 = vadd.f32 %v6904_v42, %v1254_v4  ;;  %v3824_v37 = vrot.slane %v7133_v54, 2  ;;  %3147 = vmatpush.bf16.msra.mxu2 %v5976_v36 }
 0x197   : > { %v1071_v3 = vrot.slane %v7124_v24, 2  ;;  %v3823_v4 = vrot.slane %v7056_v22, 2  ;;  %v835_v5 = vadd.f32 %v834_v41, %v6841_v44  ;;  %2904 = vmatpush.bf16.msra.mxu1 %v6017_v13 }
 0x198   : > { %v1524_v23 = vor.u32 %v1523_v16, %v1520_v49  ;;  %v1330_v38 = vmax.f32 %v1294_v32, 0.0  ;;  %v6016_v16 = vld [vmem:[#allocation8 + $0x160] sm:$0xff] }
 0x199   : > { %v7146_v57 = vsel %vm1039_vm1, %v3823_v4, %v3824_v37  ;;  %v5975_v32 = vld [vmem:[#allocation8 + $0x20] sm:$0xff]  ;;  %v1072_v44 = vsel %vm1039_vm1, %v1069_v33, %v1071_v3 }
 0x19a   : > { %v1525_v6 = vsel %vm6922_vm9, %v1516_v21, %v1524_v23  ;;  %v1366_v25 = vpack.c.bf16 %v1330_v38, %v1330_v38  ;;  %8904 = vst [vmem:[#allocation16_spill] sm:$0xff] %v7146_v57  ;;  %v2105_v38 = vshrl.u32 %v7077_v53, 16  ;;  %3148 = vmatpush.bf16.msra.mxu2 %v5975_v32  ;;  %v5983_v57 = vld [vmem:[#allocation8 + $0x60] sm:$0xff] }
 0x19b   : > { %1817 = vst [vmem:[#allocation2 + $0x34] sm:$0xf] %v1525_v6  ;;  %v1184_v19 = vpop.f32.mrf.mxu2  ;;  %v7141_v9 = vld [vmem:[#allocation2 + $0x28] sm:$0xff]  ;;  %2905 = vmatpush.bf16.msra.mxu1 %v6016_v16 }
 0x19c   : > { %v1528_v59 = vshrl.u32 %v1366_v25, 16  ;;  %v1531_v49 = vshll.u32 %v1366_v25, 16  ;;  %v1255_v22 = vadd.f32 %v1184_v19, %v835_v5  ;;  %v2247_v41 = vrot.slane %v7141_v9, 1 }
 0x19d   : > { %v837_v21 = vpop.f32.mrf.mxu1  ;;  %v2109_v13 = vshll.u32 %v7141_v9, 16  ;;  %v2107_v33 = vor.u32 %v2105_v38, %v7096_v12  ;;  %v1526_v5 = vrot.slane %v1524_v23, 4 }
 0x19e   : > { %v1530_v36 = vrot.slane %v1528_v59, 6  ;;  %v1533_v4 = vrot.slane %v1531_v49, 7  ;;  %v1295_v6 = vadd.f32 %v6904_v42, %v1255_v22  ;;  %v7162_v15 = vsel %vm516_vm0, %v2245_v7, %v2247_v41  ;;  %v6328_v59 = vld [vmem:[%s6729_s5 + $0x78] sm:$0xff]  ;;  %v7173_v7 = vld [vmem:[#allocation2 + $0x28] sm:$0xff] }
 0x19f   : > { %8905 = vst [vmem:[#allocation17_spill] sm:$0xff] %v7162_v15  ;;  %v7165_v25 = vrot.slane %v2109_v13, 1  ;;  %v6015_v49 = vld [vmem:[#allocation8 + $0x158] sm:$0xff]  ;;  %2727 = vmatmul.bf16.gmra.mxu3 %v7162_v15  ;;  %v838_v32 = vadd.f32 %v837_v21, %v6846_v48  ;;  %v5973_v21 = vld [vmem:[#allocation8 + $0x10] sm:$0xff] }
 0x1a0   : > { %v1534_v19 = vor.u32 %v1533_v4, %v1530_v36  ;;  %v1331_v10 = vmax.f32 %v1295_v6, 0.0  ;;  %876 = vmatmul.bf16.gmra.mxu1 %v6328_v59  ;;  %1226 = vmatmul.bf16.gmra.mxu2 %v1072_v44  ;;  %v5974_v22 = vld [vmem:[#allocation8 + $0x18] sm:$0xff]  ;;  %v3736_v59 = vrot.slane %v7173_v7, 1 }
 0x1a1   : > { %v7171_v53 = vsel %vm2068_vm3, %v2107_v33, %v7165_v25  ;;  %3149 = vmatpush.bf16.msra.mxu2 %v5974_v22  ;;  %2906 = vmatpush.bf16.msra.mxu1 %v6015_v49 }
 0x1a2   : > { %v1874_v12 = vld [vmem:[#allocation2 + $0x34] sm:$0x6]  ;;  %v1535_v16 = vsel %vm6922_vm9, %v1526_v5, %v1534_v19  ;;  %v1367_v23 = vpack.c.bf16 %v1331_v10, %v1331_v10  ;;  %v2455_v44 = vrot.slane %v7171_v53, 1  ;;  %v6014_v10 = vld [vmem:[#allocation8 + $0x150] sm:$0xff] }
 0x1a3   : > { %v1875_v38 = vsel %vm6940_vm12, 0, %v1874_v12  ;;  %1818 = vst [vmem:[#allocation2 + $0x38] sm:$0xf] %v1535_v16  ;;  %v1187_v13 = vpop.f32.mrf.mxu2  ;;  %v7187_v5 = vld [vmem:[%s6729_s5 + $0x98] sm:$0xff]  ;;  %v1536_v16 = vrot.slane %v1534_v19, 4 }
 0x1a4   : > { %1876 = vst [vmem:[#allocation2 + $0x34] sm:$0x6] %v1875_v38  ;;  %v1538_v36 = vshrl.u32 %v1367_v23, 16  ;;  %v1541_v4 = vshll.u32 %v1367_v23, 16  ;;  %v1256_v6 = vadd.f32 %v1187_v13, %v838_v32  ;;  %v2456_v48 = vsel %vm516_vm0, %v2451_v46, %v2455_v44  ;;  %v6013_v38 = vld [vmem:[#allocation8 + $0x148] sm:$0xff] }
 0x1a5   : > { %v839_v33 = vpop.f32.mrf.mxu1  ;;  %2821 = vmatmul.bf16.gmra.mxu0 %v2456_v48  ;;  %3150 = vmatpush.bf16.msra.mxu2 %v5973_v21  ;;  %v7196_v46 = vsel %vm516_vm0, %v3734_v30, %v3736_v59  ;;  %v5972_v13 = vld [vmem:[#allocation8 + $0x8] sm:$0xff] }
 0x1a6   : > { %v1540_v22 = vrot.slane %v1538_v36, 6  ;;  %v1543_v49 = vrot.slane %v1541_v4, 7  ;;  %v1296_v12 = vadd.f32 %v6904_v42, %v1256_v6  ;;  %2907 = vmatpush.bf16.msra.mxu1 %v6014_v10  ;;  %v3830_v48 = vrot.slane %v7196_v46, 2 }
 0x1a7   : > { %v8808_v36 = vrot.slane %v7187_v5, 2  ;;  %v840_v10 = vadd.f32 %v839_v33, %v6851_v51  ;;  %v2113_v33 = vshrl.u32 %v7141_v9, 16 }
 0x1a8   : > { %v1544_v23 = vor.u32 %v1543_v49, %v1540_v22  ;;  %v1332_v32 = vmax.f32 %v1296_v12, 0.0  ;;  %v7208_v52 = vsel %vm1039_vm1, %v3824_v37, %v3830_v48  ;;  %v6012_v12 = vld [vmem:[#allocation8 + $0x140] sm:$0xff] }
 0x1a9   : > { %3151 = vmatpush.bf16.msra.mxu2 %v5972_v13  ;;  %8906 = vst [vmem:[#allocation18_spill] sm:$0xff] %v7208_v52  ;;  %v1074_v54 = vsel %vm1039_vm1, %v1071_v3, %v8808_v36  ;;  %v2115_v3 = vor.u32 %v2113_v33, %v7165_v25 }
 0x1aa   : > { %v1545_v4 = vsel %vm6922_vm9, %v1536_v16, %v1544_v23  ;;  %v1368_v6 = vpack.c.bf16 %v1332_v32, %v1332_v32  ;;  %2908 = vmatpush.bf16.msra.mxu1 %v6013_v38  ;;  %v5971_v16 = vld [vmem:[#allocation8] sm:$0xff] }
 0x1ab   : > { %1819 = vst [vmem:[#allocation2 + $0x3c] sm:$0xf] %v1545_v4  ;;  %v1189_v30 = vpop.f32.mrf.mxu2  ;;  %v7210_v19 = vld [vmem:[#allocation2 + $0x30] sm:$0xff] }
 0x1ac   : > { %v1548_v21 = vshrl.u32 %v1368_v6, 16  ;;  %v1551_v22 = vshll.u32 %v1368_v6, 16  ;;  %v1257_v49 = vadd.f32 %v1189_v30, %v840_v10  ;;  %v2249_v37 = vrot.slane %v7210_v19, 1  ;;  %v928_v6 = vld [vmem:[%s6729_s5 + $0xa0] sm:$0x3] }
 0x1ad   : > { %v842_v51 = vpop.f32.mrf.mxu1  ;;  %v2117_v32 = vshll.u32 %v7210_v19, 16  ;;  %3152 = vmatpush.bf16.msra.mxu2 %v5971_v16  ;;  %v1546_v30 = vrot.slane %v1544_v23, 4  ;;  %v1019_v9 = vunpack.c.l.b16 %v928_v6 }
 0x1ae   : > { %v1550_v38 = vrot.slane %v1548_v21, 6  ;;  %v1553_v13 = vrot.slane %v1551_v22, 7  ;;  %v1297_v4 = vadd.f32 %v6904_v42, %v1257_v49  ;;  %v7227_v24 = vsel %vm516_vm0, %v2247_v41, %v2249_v37  ;;  %2909 = vmatpush.bf16.msra.mxu1 %v6012_v12  ;;  %v6329_v22 = vld [vmem:[%s6729_s5 + $0x80] sm:$0xff]  ;;  %v7238_v41 = vld [vmem:[#allocation2 + $0x30] sm:$0xff] }
 0x1af   : > { %8907 = vst [vmem:[#allocation19_spill] sm:$0xff] %v7227_v24  ;;  %v7230_v10 = vrot.slane %v2117_v32, 1  ;;  %2732 = vmatmul.bf16.gmra.mxu3 %v7227_v24  ;;  %v843_v23 = vadd.f32 %v842_v51, %v6856_v56  ;;  %v7244_v32 = vpop.f32.mrf.mxu3  ;;  %v1038_v51 = vpack.c.b16 %v1019_v9, %v1019_v9 }
 0x1b0   : > { %v1554_v36 = vor.u32 %v1553_v13, %v1550_v38  ;;  %v1333_v21 = vmax.f32 %v1297_v4, 0.0  ;;  %881 = vmatmul.bf16.gmra.mxu1 %v6329_v22  ;;  %1231 = vmatmul.bf16.gmra.mxu2 %v1074_v54 }
 0x1b1   : > { %v7236_v49 = vsel %vm2068_vm3, %v2115_v3, %v7230_v10 }
 0x1b2   : > { %8908 = vst [vmem:[#allocation20_spill] sm:$0xff] %v7236_v49  ;;  %v1877_v16 = vld [vmem:[#allocation2 + $0x3c] sm:$0xc]  ;;  %v1555_v25 = vsel %vm6922_vm9, %v1546_v30, %v1554_v36  ;;  %v1369_v12 = vpack.c.bf16 %v1333_v21, %v1333_v21  ;;  %v2459_v33 = vrot.slane %v7236_v49, 1  ;;  %v3738_v30 = vrot.slane %v7238_v41, 1 }
 0x1b3   : > { %v1878_v54 = vsel %vm6977_vm15, 0, %v1877_v16  ;;  %1820 = vst [vmem:[#allocation2 + $0x40] sm:$0xf] %v1555_v25  ;;  %v1192_v38 = vpop.f32.mrf.mxu2 }
 0x1b4   : > { %1879 = vst [vmem:[#allocation2 + $0x3c] sm:$0xc] %v1878_v54  ;;  %v1558_v13 = vshrl.u32 %v1369_v12, 16  ;;  %v1561_v4 = vshll.u32 %v1369_v12, 16  ;;  %v1258_v6 = vadd.f32 %v1192_v38, %v843_v23  ;;  %v2460_v3 = vsel %vm516_vm0, %v2455_v44, %v2459_v33 }
 0x1b5   : > { %v844_v56 = vpop.f32.mrf.mxu1  ;;  %2826 = vmatmul.bf16.gmra.mxu0 %v2460_v3  ;;  %v7260_v25 = vsel %vm516_vm0, %v3736_v59, %v3738_v30  ;;  %v1556_v12 = vrot.slane %v1554_v36, 4  ;;  %v1075_v38 = vrot.slane %v1038_v51, 2 }
 0x1b6   : > { %v1560_v21 = vrot.slane %v1558_v13, 6  ;;  %v1563_v22 = vrot.slane %v1561_v4, 7  ;;  %v1298_v16 = vadd.f32 %v6904_v42, %v1258_v6  ;;  %v8809_v44 = vrot.slane %v7260_v25, 2 }
 0x1b7   : > { %v845_v4 = vadd.f32 %v844_v56, %v6863_v60  ;;  %v7275_v51 = vpop.f32.mrf.mxu3  ;;  %v8910_v60 = vrot.slane %v7187_v5, 2 }
 0x1b8   : > { %v1564_v23 = vor.u32 %v1563_v22, %v1560_v21  ;;  %v1334_v54 = vmax.f32 %v1298_v16, 0.0  ;;  %v7271_v42 = vsel %vm1039_vm1, %v3830_v48, %v8809_v44  ;;  %v5984_v21 = vld [vmem:[#allocation8 + $0x68] sm:$0xff]  ;;  %v2121_v48 = vshrl.u32 %v7210_v19, 16 }
 0x1b9   : > { %8909 = vst [vmem:[#allocation21_spill] sm:$0xff] %v7271_v42  ;;  %v5992_v22 = vld [vmem:[#allocation8 + $0xa8] sm:$0xff]  ;;  %v1076_v56 = vsel %vm1039_vm1, %v8910_v60, %v1075_v38  ;;  %3246 = vmatpush.bf16.msra.mxu3 %v5984_v21 }
 0x1ba   : > { %v1565_v9 = vsel %vm6922_vm9, %v1556_v12, %v1564_v23  ;;  %v1370_v13 = vpack.c.bf16 %v1334_v54, %v1334_v54  ;;  %3345 = vmatpush.bf16.msra.mxu0 %v5992_v22  ;;  %v2123_v38 = vor.u32 %v2121_v48, %v7230_v10  ;;  %v6331_v44 = vld [vmem:[%s6729_s5 + $0x88] sm:$0xff] }
 0x1bb   : > { %1821 = vst [vmem:[#allocation2 + $0x44] sm:$0xf] %v1565_v9  ;;  %v1194_v7 = vpop.f32.mrf.mxu2  ;;  %v7273_v59 = vld [vmem:[#allocation2 + $0x38] sm:$0xff] }
 0x1bc   : > { %v1568_v36 = vshrl.u32 %v1370_v13, 16  ;;  %v1571_v6 = vshll.u32 %v1370_v13, 16  ;;  %v1259_v3 = vadd.f32 %v1194_v7, %v845_v4  ;;  %v8810_v46 = vrot.slane %v7273_v59, 1  ;;  %v7286_v13 = vld [vmem:[%s8799_s2] ss:$0 sm:$0xff]  ;;  %v7302_v21 = vld [vmem:[#allocation2 + $0x38] sm:$0xff] }
 0x1bd   : > { %v847_v16 = vpop.f32.mrf.mxu1  ;;  %v2125_v12 = vshll.u32 %v7273_v59, 16  ;;  %3247 = vmatpush.bf16.msra.mxu3 %v5983_v57 }
 0x1be   : > { %v1570_v54 = vrot.slane %v1568_v36, 6  ;;  %v1573_v9 = vrot.slane %v1571_v6, 7  ;;  %v1299_v4 = vadd.f32 %v7286_v13, %v1259_v3  ;;  %v7294_v5 = vsel %vm516_vm0, %v2249_v37, %v8810_v46 }
 0x1bf   : > { %8911 = vst [vmem:[#allocation22_spill] sm:$0xff] %v7294_v5  ;;  %v2127_v7 = vrot.slane %v2125_v12, 1  ;;  %v1566_v36 = vrot.slane %v1564_v23, 4  ;;  %2737 = vmatmul.bf16.gmra.mxu3 %v7294_v5  ;;  %v848_v10 = vadd.f32 %v847_v16, %v6885_v11  ;;  %v8812_v11 = vrot.slane %v7302_v21, 1 }
 0x1c0   : > { %v1574_v6 = vor.u32 %v1573_v9, %v1570_v54  ;;  %v1335_v60 = vmax.f32 %v1299_v4, 0.0  ;;  %886 = vmatmul.bf16.gmra.mxu1 %v6331_v44  ;;  %1236 = vmatmul.bf16.gmra.mxu2 %v1076_v56 }
 0x1c1   : > { %v7300_v3 = vsel %vm2068_vm3, %v2123_v38, %v2127_v7 }
 0x1c2   : > { %8912 = vst [vmem:[#allocation23_spill] sm:$0xff] %v7300_v3  ;;  %v1880_v22 = vld [vmem:[#allocation2 + $0x44] sm:$0x8]  ;;  %v1575_v37 = vsel %vm6922_vm9, %v1566_v36, %v1574_v6  ;;  %v1371_v46 = vpack.c.bf16 %v1335_v60, %v1335_v60  ;;  %v8813_v23 = vrot.slane %v7300_v3, 1  ;;  %v7317_v60 = vpop.f32.mrf.mxu3 }
 0x1c3   : > { %v1881_v44 = vsel %vm7029_vm7, 0, %v1880_v22  ;;  %1822 = vst [vmem:[#allocation2 + $0x48] sm:$0xf] %v1575_v37  ;;  %v1197_v56 = vpop.f32.mrf.mxu2  ;;  %v1576_v22 = vrot.slane %v1574_v6, 4 }
 0x1c4   : > { %1882 = vst [vmem:[#allocation2 + $0x44] sm:$0x8] %v1881_v44  ;;  %v1578_v48 = vshrl.u32 %v1371_v46, 16  ;;  %v1581_v12 = vshll.u32 %v1371_v46, 16  ;;  %v1260_v54 = vadd.f32 %v1197_v56, %v848_v10  ;;  %v2464_v9 = vsel %vm516_vm0, %v2459_v33, %v8813_v23 }
 0x1c5   : > { %v849_v4 = vpop.f32.mrf.mxu1  ;;  %2831 = vmatmul.bf16.gmra.mxu0 %v2464_v9  ;;  %v7324_v46 = vsel %vm516_vm0, %v3738_v30, %v8812_v11  ;;  %v8814_v30 = vrot.slane %v7020_v0, 1 }
 0x1c6   : > { %v1580_v16 = vrot.slane %v1578_v48, 6  ;;  %v1583_v38 = vrot.slane %v1581_v12, 7  ;;  %v1300_v36 = vadd.f32 %v7286_v13, %v1260_v54  ;;  %v8811_v10 = vrot.slane %v7324_v46, 2 }
 0x1c7   : > { %v850_v12 = vadd.f32 %v849_v4, %v6892_v18  ;;  %v8913_v54 = vrot.slane %v7260_v25, 2 }
 0x1c8   : > { %v1584_v37 = vor.u32 %v1583_v38, %v1580_v16  ;;  %v1336_v33 = vmax.f32 %v1300_v36, 0.0 }
 0x1c9   : > { %v7335_v41 = vsel %vm1039_vm1, %v8913_v54, %v8811_v10 }
 0x1ca   : > { %v1883_v44 = vld [vmem:[#allocation2 + $0x48] sm:$0x1]  ;;  %v1585_v56 = vsel %vm6922_vm9, %v1576_v22, %v1584_v37  ;;  %v1372_v48 = vpack.c.bf16 %v1336_v33, %v1336_v33  ;;  %8914 = vst [vmem:[#allocation24_spill] sm:$0xff] %v7335_v41  ;;  %v2448_v22 = vrot.slane %v6974_v31, 1  ;;  %v2129_v33 = vshrl.u32 %v7273_v59, 16 }
 0x1cb   : > { %v1884_v6 = vsel %vm7059_vm11, 0, %v1883_v44  ;;  %1823 = vst [vmem:[#allocation2 + $0x4c] sm:$0xf] %v1585_v56  ;;  %v1199_v9 = vpop.f32.mrf.mxu2  ;;  %v7340_v16 = vld [vmem:[#allocation2 + $0x40] sm:$0xff]  ;;  %v1586_v23 = vrot.slane %v1584_v37, 4 }
 0x1cc   : > { %1885 = vst [vmem:[#allocation2 + $0x48] sm:$0x1] %v1884_v6  ;;  %v1588_v38 = vshrl.u32 %v1372_v48, 16  ;;  %v1591_v36 = vshll.u32 %v1372_v48, 16  ;;  %v1261_v18 = vadd.f32 %v1199_v9, %v850_v12  ;;  %v8815_v25 = vrot.slane %v7340_v16, 1  ;;  %v6092_v6 = vld [vmem:[#allocation2] sm:$0xff]  }
 0x1cd   : > { %v852_v4 = vpop.f32.mrf.mxu1  ;;  %v2133_v54 = vshll.u32 %v7340_v16, 16  ;;  %v2450_v56 = vsel %vm516_vm0, %v2448_v22, %v8814_v30  ;;  %v8915_v48 = vrot.slane %v7273_v59, 1  ;;  %v2131_v12 = vor.u32 %v2129_v33, %v2127_v7 }
 0x1ce   : > { %v1590_v10 = vrot.slane %v1588_v38, 6  ;;  %v1593_v11 = vrot.slane %v1591_v36, 7  ;;  %v1301_v44 = vadd.f32 %v7286_v13, %v1261_v18  ;;  %v7357_v36 = vpop.f32.mrf.mxu3 }
 0x1cf   : > { %v7355_v31 = vsel %vm516_vm0, %v8915_v48, %v8815_v25  ;;  %v2135_v9 = vrot.slane %v2133_v54, 1  ;;  %v853_v48 = vadd.f32 %v852_v4, %v6829_v35  ;;  %v6025_v35 = vld [vmem:[#allocation2 + $0x40] sm:$0xff] }
 0x1d0   : > { %v1594_v41 = vor.u32 %v1593_v11, %v1590_v10  ;;  %v1337_v38 = vmax.f32 %v1301_v44, 0.0  ;;  %2910 = vmatmul.bf16.vlgmr.msra.gmra.mxu1 %v2450_v56  ;;  %3153 = vmatmul.bf16.vlgmr.msra.gmra.mxu2 %v6092_v6  ;;  %v8917_v44 = vrot.slane %v7300_v3, 1  ;;  %v3742_v52 = vrot.slane %v6025_v35, 1  ;;  %v5991_v3 = vld [vmem:[#allocation8 + $0xa0] sm:$0xff] }
 0x1d1   : > { %2742 = vmatmul.bf16.gmra.mxu3 %v7355_v31  ;;  %v7361_v18 = vsel %vm2068_vm3, %v2131_v12, %v2135_v9  ;;  %3346 = vmatpush.bf16.msra.mxu0 %v5991_v3 }
 0x1d2   : > { %8916 = vst [vmem:[#allocation25_spill] sm:$0xff] %v7361_v18  ;;  %v1595_v22 = vsel %vm6922_vm9, %v1586_v23, %v1594_v41  ;;  %v1373_v30 = vpack.c.bf16 %v1337_v38, %v1337_v38  ;;  %v8816_v7 = vrot.slane %v7361_v18, 1 }
 0x1d3   : > { %1824 = vst [vmem:[#allocation2 + $0x50] sm:$0xf] %v1595_v22  ;;  %v1202_v11 = vpop.f32.mrf.mxu2  ;;  %v7367_v37 = vld [vmem:[#allocation2 + $0x48] sm:$0xff]  ;;  %v1596_v22 = vrot.slane %v1594_v41, 4 }
 0x1d4   : > { %v1598_v10 = vshrl.u32 %v1373_v30, 16  ;;  %v1601_v33 = vshll.u32 %v1373_v30, 16  ;;  %v1262_v54 = vadd.f32 %v1202_v11, %v853_v48  ;;  %v2468_v56 = vsel %vm516_vm0, %v8917_v44, %v8816_v7  ;;  %v7379_v11 = vld [vmem:[#allocation2 + $0x48] sm:$0xff] }
 0x1d5   : > { %v854_v6 = vpop.f32.mrf.mxu1  ;;  %2836 = vmatmul.bf16.gmra.mxu0 %v2468_v56  ;;  %v2141_v23 = vshll.u32 %v7367_v37, 16  ;;  %v2137_v30 = vshrl.u32 %v7340_v16, 16 }
 0x1d6   : > { %v1600_v4 = vrot.slane %v1598_v10, 6  ;;  %v1603_v12 = vrot.slane %v1601_v33, 7  ;;  %v1302_v38 = vadd.f32 %v7286_v13, %v1262_v54  ;;  %v855_v33 = vadd.f32 %v854_v6, %v6834_v40  ;;  %v7385_v54 = vpop.f32.mrf.mxu3 }
 0x1d7   : > { %v7377_v48 = vrot.slane %v2141_v23, 1 }
 0x1d8   : > { %v1604_v25 = vor.u32 %v1603_v12, %v1600_v4  ;;  %v1338_v42 = vmax.f32 %v1302_v38, 0.0  ;;  %v2139_v12 = vor.u32 %v2137_v30, %v2135_v9  ;;  %v8920_v30 = vrot.slane %v7093_v20, 1 }
 0x1da   : > { %v1886_v56 = vld [vmem:[#allocation2 + $0x50] sm:$0x3]  ;;  %v1605_v7 = vsel %vm6922_vm9, %v1596_v22, %v1604_v25  ;;  %v1374_v10 = vpack.c.bf16 %v1338_v42, %v1338_v42  ;;  %v7392_v40 = vsel %vm2068_vm3, %v2139_v12, %v7377_v48  ;;  %v8919_v42 = vrot.slane %v7302_v21, 1 }
 0x1db   : > { %v1887_v41 = vsel %vm7100_vm14, 0, %v1886_v56  ;;  %1825 = vst [vmem:[#allocation2 + $0x54] sm:$0xf] %v1605_v7  ;;  %v1204_v23 = vpop.f32.mrf.mxu2  ;;  %v8819_v7 = vrot.slane %v7379_v11, 1  ;;  %v8923_v21 = vrot.slane %v7340_v16, 1  ;;  %v8820_v57 = vrot.slane %v7392_v40, 1 }
 0x1dc   : > { %1888 = vst [vmem:[#allocation2 + $0x50] sm:$0x3] %v1887_v41  ;;  %v1608_v35 = vshrl.u32 %v1374_v10, 16  ;;  %v1611_v38 = vshll.u32 %v1374_v10, 16  ;;  %v1263_v44 = vadd.f32 %v1204_v23, %v855_v33  ;;  %v3743_v6 = vsel %vm516_vm0, %v8919_v42, %v3742_v52 }
 0x1dd   : > { %v857_v22 = vpop.f32.mrf.mxu1  ;;  %8918 = vst [vmem:[#allocation26_spill] sm:$0xff] %v7392_v40  ;;  %v8921_v10 = vrot.slane %v7020_v0, 1  ;;  %v1606_v41 = vrot.slane %v1604_v25, 4  ;;  %v8922_v23 = vrot.slane %v7367_v37, 1  ;;  %v8925_v25 = vrot.slane %v7324_v46, 2 }
 0x1de   : > { %v1610_v56 = vrot.slane %v1608_v35, 6  ;;  %v1613_v4 = vrot.slane %v1611_v38, 7  ;;  %v1303_v9 = vadd.f32 %v7286_v13, %v1263_v44  ;;  %v3848_v35 = vrot.slane %v3743_v6, 2 }
 0x1df   : > { %v2454_v33 = vsel %vm516_vm0, %v8921_v10, %v8920_v30  ;;  %v7409_v12 = vsel %vm516_vm0, %v8923_v21, %v8922_v23  ;;  %v7414_v44 = vsel %vm516_vm0, %v3742_v52, %v8819_v7  ;;  %v6332_v30 = vld [vmem:[#allocation2 + $0x8] sm:$0xff]  }
 0x1e0   : > { %8924 = vst [vmem:[#allocation27_spill] sm:$0xff] %v7409_v12  ;;  %v1614_v38 = vor.u32 %v1613_v4, %v1610_v56  ;;  %v1339_v42 = vmax.f32 %v1303_v9, 0.0  ;;  %2915 = vmatmul.bf16.gmra.mxu1 %v2454_v33  ;;  %3158 = vmatmul.bf16.gmra.mxu2 %v6332_v30  ;;  %v8818_v3 = vrot.slane %v7414_v44, 2  ;;  %v7422_v6 = vsel %vm1039_vm1, %v8925_v25, %v3848_v35  ;;  %v7434_v30 = vpop.f32.mrf.mxu3 }
 0x1e1   : > { %2747 = vmatmul.bf16.gmra.mxu3 %v7409_v12  ;;  %8926 = vst [vmem:[#allocation28_spill] sm:$0xff] %v7422_v6  ;;  %v858_v4 = vadd.f32 %v857_v22, %v6839_v43 }
 0x1e2   : > { %v1615_v52 = vsel %vm6922_vm9, %v1606_v41, %v1614_v38  ;;  %v1375_v10 = vpack.c.bf16 %v1339_v42, %v1339_v42  ;;  %v7430_v56 = vsel %vm1039_vm1, %v3848_v35, %v8818_v3  ;;  %v8928_v41 = vrot.slane %v7361_v18, 1 }
 0x1e3   : > { %8927 = vst [vmem:[#allocation29_spill] sm:$0xff] %v7430_v56  ;;  %v1207_v9 = vpop.f32.mrf.mxu2  ;;  %v7432_v33 = vld [vmem:[#allocation2 + $0x50] sm:$0xff]  ;;  %v1616_v3 = vrot.slane %v1614_v38, 4 }
 0x1e4   : > { %1826 = vst [vmem:[#allocation2 + $0x58] sm:$0xf] %v1615_v52  ;;  %v1618_v23 = vshrl.u32 %v1375_v10, 16  ;;  %v1621_v46 = vshll.u32 %v1375_v10, 16  ;;  %v1264_v21 = vadd.f32 %v1207_v9, %v858_v4  ;;  %v2472_v43 = vsel %vm516_vm0, %v8928_v41, %v8820_v57  ;;  %v7446_v56 = vld [vmem:[#allocation2 + $0x50] sm:$0xff] }
 0x1e5   : > { %v859_v22 = vpop.f32.mrf.mxu1  ;;  %2841 = vmatmul.bf16.gmra.mxu0 %v2472_v43  ;;  %v2149_v35 = vshll.u32 %v7432_v33, 16  ;;  %v2145_v4 = vshrl.u32 %v7367_v37, 16 }
 0x1e6   : > { %v1620_v42 = vrot.slane %v1618_v23, 6  ;;  %v1623_v25 = vrot.slane %v1621_v46, 7  ;;  %v1304_v52 = vadd.f32 %v7286_v13, %v1264_v21  ;;  %v860_v57 = vadd.f32 %v859_v22, %v6844_v47 }
 0x1e7   : > { %v7444_v9 = vrot.slane %v2149_v35, 1  ;;  %v2147_v35 = vor.u32 %v2145_v4, %v7377_v48  ;;  %v8823_v47 = vrot.slane %v7446_v56, 1  ;;  %v8930_v21 = vrot.slane %v7162_v15, 1 }
 0x1e8   : > { %v1624_v7 = vor.u32 %v1623_v25, %v1620_v42  ;;  %v1340_v10 = vmax.f32 %v1304_v52, 0.0  ;;  %v8931_v48 = vrot.slane %v7093_v20, 1 }
 0x1ea   : > { %v1625_v41 = vsel %vm6922_vm9, %v1616_v3, %v1624_v7  ;;  %v1376_v43 = vpack.c.bf16 %v1340_v10, %v1340_v10  ;;  %v7458_v3 = vsel %vm2068_vm3, %v2147_v35, %v7444_v9  ;;  %v1626_v23 = vrot.slane %v1624_v7, 4 }
 0x1eb   : > { %v1889_v6 = vld [vmem:[#allocation2 + $0x58] sm:$0x6]  ;;  %1827 = vst [vmem:[#allocation2 + $0x5c] sm:$0xf] %v1625_v41  ;;  %v1209_v46 = vpop.f32.mrf.mxu2  ;;  %v2713_v41 = vpop.f32.mrf.mxu3  ;;  %v2458_v4 = vsel %vm516_vm0, %v8931_v48, %v8930_v21  ;;  %v8824_v21 = vrot.slane %v7458_v3, 1 }
 0x1ec   : > { %v1890_v38 = vsel %vm6940_vm12, 0, %v1889_v6  ;;  %v1628_v42 = vshrl.u32 %v1376_v43, 16  ;;  %v1631_v25 = vshll.u32 %v1376_v43, 16  ;;  %v1265_v52 = vadd.f32 %v1209_v46, %v860_v57  ;;  %8929 = vst [vmem:[#allocation30_spill] sm:$0xff] %v7458_v3 }
 0x1ed   : > { %1891 = vst [vmem:[#allocation2 + $0x58] sm:$0x6] %v1890_v38  ;;  %v862_v18 = vpop.f32.mrf.mxu1  ;;  %v8932_v57 = vrot.slane %v7432_v33, 1  ;;  %v8933_v43 = vrot.slane %v7367_v37, 1  ;;  %v8935_v46 = vrot.slane %v7379_v11, 1 }
 0x1ee   : > { %v1630_v22 = vrot.slane %v1628_v42, 6  ;;  %v1633_v10 = vrot.slane %v1631_v25, 7  ;;  %v1305_v6 = vadd.f32 %v7286_v13, %v1265_v52  ;;  %v6333_v25 = vld [vmem:[#allocation2 + $0x10] sm:$0xff]  ;;  %v863_v11 = vadd.f32 %v862_v18, %v6849_v50 }
 0x1ef   : > { %v7472_v38 = vsel %vm516_vm0, %v8933_v43, %v8932_v57  ;;  %v7479_v35 = vsel %vm516_vm0, %v8935_v46, %v8823_v47 }
 0x1f0   : > { %8934 = vst [vmem:[#allocation31_spill] sm:$0xff] %v7472_v38  ;;  %v1634_v7 = vor.u32 %v1633_v10, %v1630_v22  ;;  %v1341_v42 = vmax.f32 %v1305_v6, 0.0  ;;  %2920 = vmatmul.bf16.gmra.mxu1 %v2458_v4  ;;  %3163 = vmatmul.bf16.gmra.mxu2 %v6333_v25  ;;  %v8822_v52 = vrot.slane %v7479_v35, 2  ;;  %v8936_v22 = vrot.slane %v7414_v44, 2 }
 0x1f1   : > { %2752 = vmatmul.bf16.gmra.mxu3 %v7472_v38 }
 0x1f2   : > { %v1635_v37 = vsel %vm6922_vm9, %v1626_v23, %v1634_v7  ;;  %v1377_v48 = vpack.c.bf16 %v1341_v42, %v1341_v42  ;;  %v7492_v10 = vsel %vm1039_vm1, %v8936_v22, %v8822_v52  ;;  %v8938_v23 = vrot.slane %v7392_v40, 1 }
 0x1f3   : > { %8937 = vst [vmem:[#allocation32_spill] sm:$0xff] %v7492_v10  ;;  %v1212_v6 = vpop.f32.mrf.mxu2  ;;  %v1636_v22 = vrot.slane %v1634_v7, 4  ;;  %v7503_v10 = vpop.f32.mrf.mxu3 }
 0x1f4   : > { %1828 = vst [vmem:[#allocation2 + $0x60] sm:$0xf] %v1635_v37  ;;  %v7494_v4 = vld [vmem:[#allocation2 + $0x58] sm:$0xff]  ;;  %v1638_v57 = vshrl.u32 %v1377_v48, 16  ;;  %v1641_v43 = vshll.u32 %v1377_v48, 16  ;;  %v1266_v46 = vadd.f32 %v1212_v6, %v863_v11  ;;  %v2476_v50 = vsel %vm516_vm0, %v8938_v23, %v8824_v21 }
 0x1f5   : > { %v864_v18 = vpop.f32.mrf.mxu1  ;;  %2846 = vmatmul.bf16.gmra.mxu0 %v2476_v50  ;;  %v2157_v44 = vshll.u32 %v7494_v4, 16  ;;  %v2153_v48 = vshrl.u32 %v7432_v33, 16  ;;  %v7508_v6 = vld [vmem:[#allocation2 + $0x58] sm:$0xff] }
 0x1f6   : > { %v1640_v42 = vrot.slane %v1638_v57, 6  ;;  %v1643_v25 = vrot.slane %v1641_v43, 7  ;;  %v1306_v37 = vadd.f32 %v7286_v13, %v1266_v46  ;;  %v865_v46 = vadd.f32 %v864_v18, %v6854_v55 }
 0x1f7   : > { %v7506_v11 = vrot.slane %v2157_v44, 1  ;;  %v8829_v44 = vrot.slane %v7494_v4, 1  ;;  %v2155_v21 = vor.u32 %v2153_v48, %v7444_v9  ;;  %v8941_v9 = vrot.slane %v7162_v15, 1 }
 0x1f8   : > { %v1644_v52 = vor.u32 %v1643_v25, %v1640_v42  ;;  %v1342_v47 = vmax.f32 %v1306_v37, 0.0 }
 0x1f9   : > { %v7522_v55 = vsel %vm2068_vm3, %v2155_v21, %v7506_v11 }
 0x1fa   : > { %v1645_v57 = vsel %vm6922_vm9, %v1636_v22, %v1644_v52  ;;  %v1378_v43 = vpack.c.bf16 %v1342_v47, %v1342_v47  ;;  %v2812_v7 = vpop.f32.mrf.mxu0  ;;  %8939 = vst [vmem:[#allocation33_spill] sm:$0xff] %v7522_v55  ;;  %v8827_v47 = vrot.slane %v7508_v6, 1 }
 0x1fb   : > { %v1892_v50 = vld [vmem:[#allocation2 + $0x60] sm:$0xc]  ;;  %1829 = vst [vmem:[#allocation2 + $0x64] sm:$0xf] %v1645_v57  ;;  %v1214_v25 = vpop.f32.mrf.mxu2  ;;  %v7516_v37 = vadd.f32 %v2812_v7, %v2713_v41  ;;  %v1646_v57 = vrot.slane %v1644_v52, 4  ;;  %v8940_v7 = vrot.slane %v7227_v24, 1 }
 0x1fc   : > { %v1893_v42 = vsel %vm6977_vm15, 0, %v1892_v50  ;;  %v1648_v23 = vshrl.u32 %v1378_v43, 16  ;;  %v1651_v40 = vshll.u32 %v1378_v43, 16  ;;  %v1267_v49 = vadd.f32 %v1214_v25, %v865_v46  ;;  %v6334_v46 = vld [vmem:[#allocation2 + $0x18] sm:$0xff] }
 0x1fd   : > { %1894 = vst [vmem:[#allocation2 + $0x60] sm:$0xc] %v1893_v42  ;;  %v867_v22 = vpop.f32.mrf.mxu1  ;;  %v2462_v48 = vsel %vm516_vm0, %v8941_v9, %v8940_v7  ;;  %v8942_v43 = vrot.slane %v7432_v33, 1  ;;  %v8830_v42 = vrot.slane %v7522_v55, 1  ;;  %v7550_v9 = vpop.f32.mrf.mxu3 }
 0x1fe   : > { %v1650_v18 = vrot.slane %v1648_v23, 6  ;;  %v1653_v50 = vrot.slane %v1651_v40, 7  ;;  %v1307_v41 = vadd.f32 %v7286_v13, %v1267_v49  ;;  %v8944_v40 = vrot.slane %v7446_v56, 1 }
 0x1ff   : > { %v7536_v21 = vsel %vm516_vm0, %v8942_v43, %v8829_v44  ;;  %v868_v56 = vadd.f32 %v867_v22, %v6860_v58  ;;  %v5982_v22 = vld [vmem:[#allocation8 + $0x58] sm:$0xff]  ;;  %v2161_v44 = vshrl.u32 %v7494_v4, 16 }
 0x200   : > { %8943 = vst [vmem:[#allocation34_spill] sm:$0xff] %v7536_v21  ;;  %v7543_v49 = vsel %vm516_vm0, %v8944_v40, %v8827_v47  ;;  %v1654_v52 = vor.u32 %v1653_v50, %v1650_v18  ;;  %v1343_v23 = vmax.f32 %v1307_v41, 0.0  ;;  %2925 = vmatmul.bf16.gmra.mxu1 %v2462_v48  ;;  %3168 = vmatmul.bf16.gmra.mxu2 %v6334_v46  ;;  %v8945_v18 = vrot.slane %v7479_v35, 2 }
 0x201   : > { %v8828_v25 = vrot.slane %v7543_v49, 2  ;;  %2757 = vmatmul.bf16.gmra.mxu3 %v7536_v21 }
 0x202   : > { %v1655_v33 = vsel %vm6922_vm9, %v1646_v57, %v1654_v52  ;;  %v1379_v7 = vpack.c.bf16 %v1343_v23, %v1343_v23  ;;  %v8947_v57 = vrot.slane %v7458_v3, 1  ;;  %v5990_v23 = vld [vmem:[#allocation8 + $0x98] sm:$0xff]  ;;  %3248 = vmatpush.bf16.msra.mxu3 %v5982_v22  ;;  %v8949_v22 = vrot.slane %v7294_v5, 1 }
 0x203   : > { %v7558_v50 = vsel %vm1039_vm1, %v8945_v18, %v8828_v25  ;;  %1830 = vst [vmem:[#allocation2 + $0x68] sm:$0xf] %v1655_v33  ;;  %v1217_v41 = vpop.f32.mrf.mxu2  ;;  %3347 = vmatpush.bf16.msra.mxu0 %v5990_v23  ;;  %v2163_v23 = vor.u32 %v2161_v44, %v7506_v11  ;;  %v8950_v11 = vrot.slane %v7227_v24, 1 }
 0x204   : > { %8946 = vst [vmem:[#allocation35_spill] sm:$0xff] %v7558_v50  ;;  %v7560_v48 = vld [vmem:[#allocation2 + $0x60] sm:$0xff]  ;;  %v1658_v43 = vshrl.u32 %v1379_v7, 16  ;;  %v1661_v40 = vshll.u32 %v1379_v7, 16  ;;  %v1268_v46 = vadd.f32 %v1217_v41, %v868_v56  ;;  %v2480_v58 = vsel %vm516_vm0, %v8947_v57, %v8830_v42 }
 0x205   : > { %v869_v47 = vpop.f32.mrf.mxu1  ;;  %2851 = vmatmul.bf16.gmra.mxu0 %v2480_v58  ;;  %v2165_v35 = vshll.u32 %v7560_v48, 16  ;;  %v1656_v7 = vrot.slane %v1654_v52, 4  ;;  %v7572_v57 = vld [vmem:[#allocation2 + $0x60] sm:$0xff]  ;;  %v8951_v44 = vrot.slane %v7560_v48, 1 }
 0x206   : > { %v1660_v18 = vrot.slane %v1658_v43, 6  ;;  %v1663_v33 = vrot.slane %v1661_v40, 7  ;;  %v1308_v25 = vadd.f32 %v7286_v13, %v1268_v46  ;;  %v7576_v43 = vpop.f32.mrf.mxu0  ;;  %v870_v40 = vadd.f32 %v869_v47, %v6877_v62 }
 0x207   : > { %v7570_v50 = vrot.slane %v2165_v35, 1  ;;  %v8834_v47 = vrot.slane %v7572_v57, 1 }
 0x208   : > { %v1664_v56 = vor.u32 %v1663_v33, %v1660_v18  ;;  %v1344_v41 = vmax.f32 %v1308_v25, 0.0  ;;  %v2720_v33 = vpop.f32.mrf.mxu3 }
 0x209   : > { %v7586_v62 = vsel %vm2068_vm3, %v2163_v23, %v7570_v50 }
 0x20a   : > { %v1895_v42 = vld [vmem:[#allocation2 + $0x68] sm:$0x8]  ;;  %v1665_v58 = vsel %vm6922_vm9, %v1656_v7, %v1664_v56  ;;  %v1380_v3 = vpack.c.bf16 %v1344_v41, %v1344_v41  ;;  %8948 = vst [vmem:[#allocation36_spill] sm:$0xff] %v7586_v62  ;;  %v1666_v15 = vrot.slane %v1664_v56, 4 }
 0x20b   : > { %v1896_v52 = vsel %vm7029_vm7, 0, %v1895_v42  ;;  %1831 = vst [vmem:[#allocation2 + $0x6c] sm:$0xf] %v1665_v58  ;;  %v1219_v25 = vpop.f32.mrf.mxu2 }
 0x20c   : > { %1897 = vst [vmem:[#allocation2 + $0x68] sm:$0x8] %v1896_v52  ;;  %v1668_v35 = vshrl.u32 %v1380_v3, 16  ;;  %v1671_v18 = vshll.u32 %v1380_v3, 16  ;;  %v1269_v7 = vadd.f32 %v1219_v25, %v870_v40  ;;  %v2466_v3 = vsel %vm516_vm0, %v8950_v11, %v8949_v22 }
 0x20d   : > { %v872_v41 = vpop.f32.mrf.mxu1  ;;  %v8952_v40 = vrot.slane %v7494_v4, 1  ;;  %v8954_v25 = vrot.slane %v7508_v6, 1  ;;  %v8835_v22 = vrot.slane %v7586_v62, 1 }
 0x20e   : > { %v1670_v46 = vrot.slane %v1668_v35, 6  ;;  %v1673_v42 = vrot.slane %v1671_v18, 7  ;;  %v1309_v58 = vadd.f32 %v7286_v13, %v1269_v7  ;;  %v6335_v18 = vld [vmem:[#allocation2 + $0x20] sm:$0xff]  ;;  %v873_v6 = vadd.f32 %v872_v41, %v6889_v14 }
 0x20f   : > { %v7600_v52 = vsel %vm516_vm0, %v8952_v40, %v8951_v44  ;;  %v7607_v23 = vsel %vm516_vm0, %v8954_v25, %v8834_v47 }
 0x210   : > { %8953 = vst [vmem:[#allocation37_spill] sm:$0xff] %v7600_v52  ;;  %v1674_v56 = vor.u32 %v1673_v42, %v1670_v46  ;;  %v1345_v35 = vmax.f32 %v1309_v58, 0.0  ;;  %2930 = vmatmul.bf16.gmra.mxu1 %v2466_v3  ;;  %3173 = vmatmul.bf16.gmra.mxu2 %v6335_v18  ;;  %v8833_v7 = vrot.slane %v7607_v23, 2  ;;  %v8955_v46 = vrot.slane %v7543_v49, 2 }
 0x211   : > { %2762 = vmatmul.bf16.gmra.mxu3 %v7600_v52  ;;  %v8957_v49 = vrot.slane %v7522_v55, 1  ;;  %v6336_v55 = vld [vmem:[#allocation2 + $0x28] sm:$0xff] }
 0x212   : > { %v1898_v4 = vld [vmem:[#allocation2 + $0x6c] sm:$0x1]  ;;  %v1675_v11 = vsel %vm6922_vm9, %v1666_v15, %v1674_v56  ;;  %v1381_v44 = vpack.c.bf16 %v1345_v35, %v1345_v35  ;;  %v2817_v40 = vpop.f32.mrf.mxu0  ;;  %v7620_v42 = vsel %vm1039_vm1, %v8955_v46, %v8833_v7  ;;  %v2723_v41 = vpop.f32.mrf.mxu3  ;;  %v1676_v47 = vrot.slane %v1674_v56, 4 }
 0x213   : > { %8956 = vst [vmem:[#allocation38_spill] sm:$0xff] %v7620_v42  ;;  %v1899_v58 = vsel %vm7059_vm11, 0, %v1898_v4  ;;  %v1222_v3 = vpop.f32.mrf.mxu2  ;;  %v7625_v25 = vadd.f32 %v2817_v40, %v7550_v9  ;;  %v2484_v18 = vsel %vm516_vm0, %v8957_v49, %v8835_v22  ;;  %v8837_v42 = vrot.slane %v7355_v31, 1 }
 0x214   : > { %1832 = vst [vmem:[#allocation2 + $0x70] sm:$0xf] %v1675_v11  ;;  %v1678_v15 = vshrl.u32 %v1381_v44, 16  ;;  %v1681_v35 = vshll.u32 %v1381_v44, 16  ;;  %v1270_v14 = vadd.f32 %v1222_v3, %v873_v6 }
 0x215   : > { %1900 = vst [vmem:[#allocation2 + $0x6c] sm:$0x1] %v1899_v58  ;;  %v874_v46 = vpop.f32.mrf.mxu1  ;;  %2856 = vmatmul.bf16.gmra.mxu0 %v2484_v18 }
 0x216   : > { %v1680_v7 = vrot.slane %v1678_v15, 6  ;;  %v1683_v4 = vrot.slane %v1681_v35, 7  ;;  %v1310_v11 = vadd.f32 %v7286_v13, %v1270_v14  ;;  %v875_v58 = vadd.f32 %v874_v46, %v6896_v8 }
 0x218   : > { %v1684_v9 = vor.u32 %v1683_v4, %v1680_v7  ;;  %v1346_v40 = vmax.f32 %v1310_v11, 0.0 }
 0x21a   : > { %v1685_v44 = vsel %vm6922_vm9, %v1676_v47, %v1684_v9  ;;  %v1382_v6 = vpack.c.bf16 %v1346_v40, %v1346_v40  ;;  %v2819_v3 = vpop.f32.mrf.mxu0  ;;  %v2725_v7 = vpop.f32.mrf.mxu3  ;;  %v2169_v47 = vshrl.u32 %v7560_v48, 16 }
 0x21b   : > { %1833 = vst [vmem:[#allocation2 + $0x74] sm:$0xf] %v1685_v44  ;;  %v1224_v49 = vpop.f32.mrf.mxu2  ;;  %v7637_v22 = vadd.f32 %v2819_v3, %v2720_v33  ;;  %v8958_v33 = vrot.slane %v7294_v5, 1 }
 0x21c   : > { %v7639_v15 = vld [vmem:[#allocation2 + $0x68] sm:$0xff]  ;;  %v1688_v35 = vshrl.u32 %v1382_v6, 16  ;;  %v1691_v14 = vshll.u32 %v1382_v6, 16  ;;  %v1271_v56 = vadd.f32 %v1224_v49, %v875_v58  ;;  %v8959_v6 = vrot.slane %v7560_v48, 1 }
 0x21d   : > { %v877_v18 = vpop.f32.mrf.mxu1  ;;  %v8838_v4 = vrot.slane %v7639_v15, 1  ;;  %v2173_v8 = vshll.u32 %v7639_v15, 16  ;;  %v2470_v44 = vsel %vm516_vm0, %v8958_v33, %v8837_v42  ;;  %v2171_v3 = vor.u32 %v2169_v47, %v7570_v50  ;;  %v7665_v42 = vld [vmem:[#allocation2 + $0x68] sm:$0xff] }
 0x21e   : > { %v1690_v46 = vrot.slane %v1688_v35, 6  ;;  %v1693_v11 = vrot.slane %v1691_v14, 7  ;;  %v1311_v40 = vadd.f32 %v7286_v13, %v1271_v56  ;;  %v1686_v35 = vrot.slane %v1684_v9, 4 }
 0x21f   : > { %v7655_v58 = vsel %vm516_vm0, %v8959_v6, %v8838_v4  ;;  %v7658_v49 = vrot.slane %v2173_v8, 1  ;;  %v878_v9 = vadd.f32 %v877_v18, %v7244_v32  ;;  %v5981_v18 = vld [vmem:[#allocation8 + $0x50] sm:$0xff] }
 0x220   : > { %v1694_v14 = vor.u32 %v1693_v11, %v1690_v46  ;;  %v1347_v56 = vmax.f32 %v1311_v40, 0.0  ;;  %2935 = vmatmul.bf16.gmra.mxu1 %v2470_v44  ;;  %3178 = vmatmul.bf16.gmra.mxu2 %v6336_v55 }
 0x221   : > { %2767 = vmatmul.bf16.gmra.mxu3 %v7655_v58  ;;  %v7663_v33 = vsel %vm2068_vm3, %v2171_v3, %v7658_v49 }
 0x222   : > { %8960 = vst [vmem:[#allocation39_spill] sm:$0xff] %v7663_v33  ;;  %v1901_v6 = vld [vmem:[#allocation2 + $0x74] sm:$0x3]  ;;  %v1695_v50 = vsel %vm6922_vm9, %v1686_v35, %v1694_v14  ;;  %v1383_v47 = vpack.c.bf16 %v1347_v56, %v1347_v56  ;;  %v2822_v8 = vpop.f32.mrf.mxu0  ;;  %v8843_v46 = vrot.slane %v7663_v33, 1  ;;  %v2728_v5 = vpop.f32.mrf.mxu3  ;;  %v8961_v35 = vrot.slane %v7586_v62, 1  ;;  %v5989_v56 = vld [vmem:[#allocation8 + $0x90] sm:$0xff]  ;;  %3249 = vmatpush.bf16.msra.mxu3 %v5981_v18 }
 0x223   : > { %v1902_v55 = vsel %vm7100_vm14, 0, %v1901_v6  ;;  %1834 = vst [vmem:[#allocation2 + $0x78] sm:$0xf] %v1695_v50  ;;  %v1227_v11 = vpop.f32.mrf.mxu2  ;;  %v7673_v40 = vadd.f32 %v2822_v8, %v2723_v41  ;;  %v8841_v6 = vrot.slane %v7665_v42, 1  ;;  %3348 = vmatpush.bf16.msra.mxu0 %v5989_v56  ;;  %v8963_v56 = vrot.slane %v7607_v23, 2 }
 0x224   : > { %1903 = vst [vmem:[#allocation2 + $0x74] sm:$0x3] %v1902_v55  ;;  %v1698_v44 = vshrl.u32 %v1383_v47, 16  ;;  %v1701_v3 = vshll.u32 %v1383_v47, 16  ;;  %v1272_v4 = vadd.f32 %v1227_v11, %v878_v9  ;;  %v2488_v32 = vsel %vm516_vm0, %v8961_v35, %v8843_v46 }
 0x225   : > { %v879_v24 = vpop.f32.mrf.mxu1  ;;  %2861 = vmatmul.bf16.gmra.mxu0 %v2488_v32  ;;  %v8962_v47 = vrot.slane %v7572_v57, 1  ;;  %v1696_v55 = vrot.slane %v1694_v14, 4  ;;  %v8845_v14 = vrot.slane %v7409_v12, 1  ;;  %v2177_v23 = vshrl.u32 %v7639_v15, 16 }
 0x226   : > { %v1700_v50 = vrot.slane %v1698_v44, 6  ;;  %v1703_v41 = vrot.slane %v1701_v3, 7  ;;  %v1312_v8 = vadd.f32 %v7286_v13, %v1272_v4  ;;  %v880_v4 = vadd.f32 %v879_v24, %v7275_v51 }
 0x227   : > { %v7687_v9 = vsel %vm516_vm0, %v8962_v47, %v8841_v6 }
 0x228   : > { %v1704_v11 = vor.u32 %v1703_v41, %v1700_v50  ;;  %v1348_v35 = vmax.f32 %v1312_v8, 0.0  ;;  %v8842_v32 = vrot.slane %v7687_v9, 2 }
 0x22a   : > { %v1705_v44 = vsel %vm6922_vm9, %v1696_v55, %v1704_v11  ;;  %v1384_v3 = vpack.c.bf16 %v1348_v35, %v1348_v35  ;;  %v2824_v18 = vpop.f32.mrf.mxu0  ;;  %v7698_v57 = vsel %vm1039_vm1, %v8963_v56, %v8842_v32  ;;  %v2730_v24 = vpop.f32.mrf.mxu3 }
 0x22b   : > { %8964 = vst [vmem:[#allocation40_spill] sm:$0xff] %v7698_v57  ;;  %v1229_v50 = vpop.f32.mrf.mxu2  ;;  %v7701_v41 = vadd.f32 %v2824_v18, %v2725_v7  ;;  %v7703_v8 = vld [vmem:[#allocation2 + $0x70] sm:$0xff]  ;;  %v8965_v7 = vrot.slane %v7355_v31, 1 }
 0x22c   : > { %1835 = vst [vmem:[#allocation2 + $0x7c] sm:$0xf] %v1705_v44  ;;  %v1708_v47 = vshrl.u32 %v1384_v3, 16  ;;  %v1711_v55 = vshll.u32 %v1384_v3, 16  ;;  %v1273_v35 = vadd.f32 %v1229_v50, %v880_v4  ;;  %v8846_v6 = vrot.slane %v7703_v8, 1 }
 0x22d   : > { %v882_v51 = vpop.f32.mrf.mxu1  ;;  %v2181_v56 = vshll.u32 %v7703_v8, 16  ;;  %v2474_v18 = vsel %vm516_vm0, %v8965_v7, %v8845_v14  ;;  %v8966_v3 = vrot.slane %v7639_v15, 1  ;;  %v2179_v50 = vor.u32 %v2177_v23, %v7658_v49  ;;  %v7727_v7 = vld [vmem:[#allocation2 + $0x70] sm:$0xff] }
 0x22e   : > { %v1710_v32 = vrot.slane %v1708_v47, 6  ;;  %v1713_v46 = vrot.slane %v1711_v55, 7  ;;  %v1313_v44 = vadd.f32 %v7286_v13, %v1273_v35  ;;  %v1706_v47 = vrot.slane %v1704_v11, 4 }
 0x22f   : > { %v7719_v4 = vsel %vm516_vm0, %v8966_v3, %v8846_v6  ;;  %v2183_v57 = vrot.slane %v2181_v56, 1  ;;  %v883_v49 = vadd.f32 %v882_v51, %v7317_v60  ;;  %v8847_v1 = vrot.slane %v7727_v7, 1 }
 0x230   : > { %v1714_v55 = vor.u32 %v1713_v46, %v1710_v32  ;;  %v1349_v62 = vmax.f32 %v1313_v44, 0.0  ;;  %2940 = vmatmul.bf16.gmra.mxu1 %v2474_v18  ;;  %3183 = vmatmul.bf16.gmra.mxu2 %v7210_v19 }
 0x231   : > { %2772 = vmatmul.bf16.gmra.mxu3 %v7719_v4  ;;  %v7725_v35 = vsel %vm2068_vm3, %v2179_v50, %v2183_v57 }
 0x232   : > { %8967 = vst [vmem:[#allocation41_spill] sm:$0xff] %v7725_v35  ;;  %v1715_v3 = vsel %vm6922_vm9, %v1706_v47, %v1714_v55  ;;  %v1385_v6 = vpack.c.bf16 %v1349_v62, %v1349_v62  ;;  %v2827_v11 = vpop.f32.mrf.mxu0  ;;  %v8849_v46 = vrot.slane %v7725_v35, 1  ;;  %v2733_v50 = vpop.f32.mrf.mxu3  ;;  %v8968_v62 = vrot.slane %v7663_v33, 1 }
 0x233   : > { %v1904_v14 = vld [vmem:[#allocation2 + $0x7c] sm:$0x6]  ;;  %1836 = vst [vmem:[#allocation2 + $0x80] sm:$0xf] %v1715_v3  ;;  %v1232_v32 = vpop.f32.mrf.mxu2  ;;  %v7735_v23 = vadd.f32 %v2827_v11, %v2728_v5 }
 0x234   : > { %v1905_v19 = vsel %vm6940_vm12, 0, %v1904_v14  ;;  %v1718_v56 = vshrl.u32 %v1385_v6, 16  ;;  %v1721_v44 = vshll.u32 %v1385_v6, 16  ;;  %v1274_v18 = vadd.f32 %v1232_v32, %v883_v49 }
 0x235   : > { %1906 = vst [vmem:[#allocation2 + $0x7c] sm:$0x6] %v1905_v19  ;;  %v2492_v60 = vsel %vm516_vm0, %v8968_v62, %v8849_v46  ;;  %v884_v51 = vpop.f32.mrf.mxu1  ;;  %v8969_v6 = vrot.slane %v7665_v42, 1  ;;  %v1716_v49 = vrot.slane %v1714_v55, 4  ;;  %v8853_v55 = vrot.slane %v7472_v38, 1 }
 0x236   : > { %2866 = vmatmul.bf16.gmra.mxu0 %v2492_v60  ;;  %v1720_v14 = vrot.slane %v1718_v56, 6  ;;  %v1723_v47 = vrot.slane %v1721_v44, 7  ;;  %v1314_v5 = vadd.f32 %v7286_v13, %v1274_v18  ;;  %v885_v56 = vadd.f32 %v884_v51, %v7357_v36 }
 0x237   : > { %v7749_v3 = vsel %vm516_vm0, %v8969_v6, %v8847_v1  ;;  %v8970_v18 = vrot.slane %v7687_v9, 2  ;;  %v2185_v9 = vshrl.u32 %v7703_v8, 16 }
 0x238   : > { %v1724_v11 = vor.u32 %v1723_v47, %v1720_v14  ;;  %v1350_v19 = vmax.f32 %v1314_v5, 0.0  ;;  %v8848_v32 = vrot.slane %v7749_v3, 2 }
 0x23a   : > { %v1725_v62 = vsel %vm6922_vm9, %v1716_v49, %v1724_v11  ;;  %v1386_v60 = vpack.c.bf16 %v1350_v19, %v1350_v19  ;;  %v2829_v44 = vpop.f32.mrf.mxu0  ;;  %v7760_v42 = vsel %vm1039_vm1, %v8970_v18, %v8848_v32  ;;  %v2735_v36 = vpop.f32.mrf.mxu3 }
 0x23b   : > { %8971 = vst [vmem:[#allocation42_spill] sm:$0xff] %v7760_v42  ;;  %v1234_v14 = vpop.f32.mrf.mxu2  ;;  %v7763_v47 = vadd.f32 %v2829_v44, %v2730_v24  ;;  %v8972_v24 = vrot.slane %v7409_v12, 1 }
 0x23c   : > { %1837 = vst [vmem:[#allocation2 + $0x84] sm:$0xf] %v1725_v62  ;;  %v7765_v5 = vld [vmem:[#allocation2 + $0x78] sm:$0xff]  ;;  %v1728_v6 = vshrl.u32 %v1386_v60, 16  ;;  %v1731_v49 = vshll.u32 %v1386_v60, 16  ;;  %v1275_v19 = vadd.f32 %v1234_v14, %v885_v56  ;;  %v8973_v60 = vrot.slane %v7703_v8, 1 }
 0x23d   : > { %v887_v51 = vpop.f32.mrf.mxu1  ;;  %v8851_v1 = vrot.slane %v7765_v5, 1  ;;  %v2189_v18 = vshll.u32 %v7765_v5, 16  ;;  %v2478_v44 = vsel %vm516_vm0, %v8972_v24, %v8853_v55  ;;  %v2187_v14 = vor.u32 %v2185_v9, %v2183_v57 }
 0x23e   : > { %v1730_v32 = vrot.slane %v1728_v6, 6  ;;  %v1733_v46 = vrot.slane %v1731_v49, 7  ;;  %v1315_v62 = vadd.f32 %v7286_v13, %v1275_v19  ;;  %v1726_v6 = vrot.slane %v1724_v11, 4  ;;  %v7791_v19 = vld [vmem:[#allocation2 + $0x78] sm:$0xff] }
 0x23f   : > { %v7781_v56 = vsel %vm516_vm0, %v8973_v60, %v8851_v1  ;;  %v7783_v42 = vrot.slane %v2189_v18, 1  ;;  %v888_v11 = vadd.f32 %v887_v51, %v7385_v54  ;;  %v8855_v26 = vrot.slane %v7791_v19, 1 }
 0x240   : > { %v1734_v49 = vor.u32 %v1733_v46, %v1730_v32  ;;  %v1351_v33 = vmax.f32 %v1315_v62, 0.0  ;;  %2945 = vmatmul.bf16.gmra.mxu1 %v2478_v44  ;;  %3188 = vmatmul.bf16.gmra.mxu2 %v7273_v59 }
 0x241   : > { %2777 = vmatmul.bf16.gmra.mxu3 %v7781_v56  ;;  %v7789_v13 = vsel %vm2068_vm3, %v2187_v14, %v7783_v42 }
 0x242   : > { %8974 = vst [vmem:[#allocation43_spill] sm:$0xff] %v7789_v13  ;;  %v1735_v57 = vsel %vm6922_vm9, %v1726_v6, %v1734_v49  ;;  %v1387_v9 = vpack.c.bf16 %v1351_v33, %v1351_v33  ;;  %v2832_v46 = vpop.f32.mrf.mxu0  ;;  %v8852_v32 = vrot.slane %v7789_v13, 1  ;;  %v2738_v1 = vpop.f32.mrf.mxu3  ;;  %v8975_v33 = vrot.slane %v7725_v35, 1 }
 0x243   : > { %v1907_v24 = vld [vmem:[#allocation2 + $0x84] sm:$0xc]  ;;  %1838 = vst [vmem:[#allocation2 + $0x88] sm:$0xf] %v1735_v57  ;;  %v1237_v18 = vpop.f32.mrf.mxu2  ;;  %v7799_v62 = vadd.f32 %v2832_v46, %v2733_v50  ;;  %v6337_v50 = vld [vmem:[%s8799_s2] ss:$0 sm:$0xff] }
 0x244   : > { %v1908_v59 = vsel %vm6977_vm15, 0, %v1907_v24  ;;  %v1738_v44 = vshrl.u32 %v1387_v9, 16  ;;  %v1741_v60 = vshll.u32 %v1387_v9, 16  ;;  %v1276_v14 = vadd.f32 %v1237_v18, %v888_v11  ;;  %v5980_v9 = vld [vmem:[#allocation8 + $0x48] sm:$0xff] }
 0x245   : > { %1909 = vst [vmem:[#allocation2 + $0x84] sm:$0xc] %v1908_v59  ;;  %v2496_v54 = vsel %vm516_vm0, %v8975_v33, %v8852_v32  ;;  %v889_v51 = vpop.f32.mrf.mxu1  ;;  %v5988_v11 = vld [vmem:[#allocation8 + $0x88] sm:$0xff]  ;;  %v8976_v46 = vrot.slane %v7727_v7, 1  ;;  %v1736_v18 = vrot.slane %v1734_v49, 4  ;;  %3250 = vmatpush.bf16.msra.mxu3 %v5980_v9  ;;  %v8977_v7 = vrot.slane %v7749_v3, 2 }
 0x246   : > { %2871 = vmatmul.bf16.gmra.mxu0 %v2496_v54  ;;  %v1740_v6 = vrot.slane %v1738_v44, 6  ;;  %v1743_v24 = vrot.slane %v1741_v60, 7  ;;  %v1316_v57 = vadd.f32 %v6337_v50, %v1276_v14  ;;  %v890_v32 = vadd.f32 %v889_v51, %v7434_v30 }
 0x247   : > { %v7815_v59 = vsel %vm516_vm0, %v8976_v46, %v8855_v26  ;;  %3349 = vmatpush.bf16.msra.mxu0 %v5988_v11  ;;  %v2193_v3 = vshrl.u32 %v7765_v5, 16 }
 0x248   : > { %v1744_v33 = vor.u32 %v1743_v24, %v1740_v6  ;;  %v1352_v54 = vmax.f32 %v1316_v57, 0.0  ;;  %v8854_v44 = vrot.slane %v7815_v59, 2 }
 0x24a   : > { %v1745_v60 = vsel %vm6922_vm9, %v1736_v18, %v1744_v33  ;;  %v1388_v14 = vpack.c.bf16 %v1352_v54, %v1352_v54  ;;  %v2834_v55 = vpop.f32.mrf.mxu0  ;;  %v7826_v46 = vsel %vm1039_vm1, %v8977_v7, %v8854_v44  ;;  %v2740_v30 = vpop.f32.mrf.mxu3 }
 0x24b   : > { %8978 = vst [vmem:[#allocation44_spill] sm:$0xff] %v7826_v46  ;;  %v1239_v6 = vpop.f32.mrf.mxu2  ;;  %v7829_v24 = vadd.f32 %v2834_v55, %v2735_v36  ;;  %v8979_v55 = vrot.slane %v7536_v21, 1  ;;  %v8980_v36 = vrot.slane %v7472_v38, 1  ;;  %v2195_v46 = vor.u32 %v2193_v3, %v7783_v42 }
 0x24c   : > { %1839 = vst [vmem:[#allocation2 + $0x8c] sm:$0xf] %v1745_v60  ;;  %v7831_v57 = vld [vmem:[#allocation2 + $0x80] sm:$0xff]  ;;  %v1748_v9 = vshrl.u32 %v1388_v14, 16  ;;  %v1751_v11 = vshll.u32 %v1388_v14, 16  ;;  %v1277_v18 = vadd.f32 %v1239_v6, %v890_v32  ;;  %v8981_v32 = vrot.slane %v7765_v5, 1 }
 0x24d   : > { %v2911_v51 = vpop.f32.mrf.mxu1  ;;  %v8856_v54 = vrot.slane %v7831_v57, 1  ;;  %v2197_v7 = vshll.u32 %v7831_v57, 16  ;;  %v2482_v14 = vsel %vm516_vm0, %v8980_v36, %v8979_v55 }
 0x24e   : > { %v1750_v44 = vrot.slane %v1748_v9, 6  ;;  %v1753_v26 = vrot.slane %v1751_v11, 7  ;;  %v1317_v49 = vadd.f32 %v6337_v50, %v1277_v18  ;;  %v2912_v60 = vadd.f32 %v2911_v51, %v7516_v37  ;;  %v7858_v51 = vld [vmem:[#allocation2 + $0x80] sm:$0xff] }
 0x24f   : > { %v7847_v6 = vsel %vm516_vm0, %v8981_v32, %v8856_v54  ;;  %v7850_v9 = vrot.slane %v2197_v7, 1  ;;  %v1746_v50 = vrot.slane %v1744_v33, 4  ;;  %v2815_v33 = vadd.f32 %v7576_v43, %v7503_v10  ;;  %v1842_v54 = vld [vmem:[#allocation2 + $0x98] sm:$0x3] }
 0x250   : > { %v1754_v11 = vor.u32 %v1753_v26, %v1750_v44  ;;  %v1353_v37 = vmax.f32 %v1317_v49, 0.0  ;;  %2950 = vmatmul.bf16.gmra.mxu1 %v2482_v14  ;;  %3193 = vmatmul.bf16.gmra.mxu2 %v7340_v16  ;;  %v3758_v61 = vrot.slane %v7858_v51, 1 }
 0x251   : > { %2782 = vmatmul.bf16.gmra.mxu3 %v7847_v6  ;;  %v7856_v18 = vsel %vm2068_vm3, %v2195_v46, %v7850_v9 }
 0x252   : > { %8982 = vst [vmem:[#allocation45_spill] sm:$0xff] %v7856_v18  ;;  %v1755_v42 = vsel %vm6922_vm9, %v1746_v50, %v1754_v11  ;;  %v1389_v3 = vpack.c.bf16 %v1353_v37, %v1353_v37  ;;  %v2837_v7 = vpop.f32.mrf.mxu0  ;;  %v2499_v26 = vrot.slane %v7856_v18, 1  ;;  %v8983_v50 = vrot.slane %v7789_v13, 1 }
 0x253   : > { %v1910_v55 = vld [vmem:[#allocation2 + $0x8c] sm:$0x8]  ;;  %1840 = vst [vmem:[#allocation2 + $0x90] sm:$0xf] %v1755_v42  ;;  %v7867_v44 = vadd.f32 %v2837_v7, %v2738_v1  ;;  %v3154_v46 = vpop.f32.mrf.mxu2  ;;  %v8984_v7 = vrot.slane %v7791_v19, 1  ;;  %v8985_v19 = vrot.slane %v7815_v59, 2 }
 0x254   : > { %v1911_v16 = vsel %vm7029_vm7, 0, %v1910_v55  ;;  %v1758_v49 = vshrl.u32 %v1389_v3, 16  ;;  %v1761_v36 = vshll.u32 %v1389_v3, 16  ;;  %v7869_v14 = vadd.f32 %v3154_v46, %v2912_v60  ;;  %v2743_v32 = vpop.f32.mrf.mxu3  ;;  %v5979_v42 = vld [vmem:[#allocation8 + $0x40] sm:$0xff] }
 0x255   : > { %1912 = vst [vmem:[#allocation2 + $0x8c] sm:$0x8] %v1911_v16  ;;  %v2500_v37 = vsel %vm516_vm0, %v8983_v50, %v2499_v26  ;;  %v2913_v10 = vpop.f32.mrf.mxu1  ;;  %v7880_v60 = vsel %vm516_vm0, %v8984_v7, %v3758_v61  ;;  %v1756_v3 = vrot.slane %v1754_v11, 4  ;;  %3251 = vmatpush.bf16.msra.mxu3 %v5979_v42  ;;  %v8857_v50 = vrot.slane %v7600_v52, 1 }
 0x256   : > { %2876 = vmatmul.bf16.gmra.mxu0 %v2500_v37  ;;  %v1760_v43 = vrot.slane %v1758_v49, 6  ;;  %v1763_v1 = vrot.slane %v1761_v36, 7  ;;  %v2914_v55 = vadd.f32 %v2913_v10, %v2815_v33  ;;  %v8858_v46 = vrot.slane %v7880_v60, 2 }
 0x258   : > { %v1764_v16 = vor.u32 %v1763_v1, %v1760_v43  ;;  %v7891_v36 = vsel %vm1039_vm1, %v8985_v19, %v8858_v46 }
 0x259   : > { %8986 = vst [vmem:[#allocation46_spill] sm:$0xff] %v7891_v36 }
 0x25a   : > { %v1913_v37 = vld [vmem:[#allocation2 + $0x90] sm:$0x1]  ;;  %v1765_v51 = vsel %vm6922_vm9, %v1756_v3, %v1764_v16  ;;  %v1766_v49 = vrot.slane %v1764_v16, 4  ;;  %v2839_v33 = vpop.f32.mrf.mxu0 }
 0x25b   : > { %v1914_v11 = vsel %vm7059_vm11, 0, %v1913_v37  ;;  %1841 = vst [vmem:[#allocation2 + $0x94] sm:$0xf] %v1765_v51  ;;  %v7895_v10 = vadd.f32 %v2839_v33, %v2740_v30  ;;  %v3156_v43 = vpop.f32.mrf.mxu2  ;;  %v2201_v30 = vshrl.u32 %v7831_v57, 16  ;;  %v8988_v51 = vrot.slane %v7536_v21, 1 }
 0x25c   : > { %v7897_v1 = vld [vmem:[#allocation2 + $0x88] sm:$0xff]  ;;  %1915 = vst [vmem:[#allocation2 + $0x90] sm:$0x1] %v1914_v11  ;;  %v1843_v42 = vsel %vm6871_vm4, %v1766_v49, %v1842_v54  ;;  %v7903_v7 = vadd.f32 %v3156_v43, %v2914_v55  ;;  %v2745_v59 = vpop.f32.mrf.mxu3  ;;  %v8989_v54 = vrot.slane %v7831_v57, 1 }
 0x25d   : > { %v7899_v63 = vld [vmem:[#allocation2 + $0x88] sm:$0xff]  ;;  %1844 = vst [vmem:[#allocation2 + $0x98] sm:$0x3] %v1843_v42  ;;  %v2916_v3 = vpop.f32.mrf.mxu1  ;;  %v7906_v45 = vrot.slane %v7897_v1, 1  ;;  %v2205_v16 = vshll.u32 %v7897_v1, 16  ;;  %v2486_v2 = vsel %vm516_vm0, %v8988_v51, %v8857_v50  ;;  %v2203_v49 = vor.u32 %v2201_v30, %v7850_v9 }
 0x25e   : > { %v2917_v37 = vadd.f32 %v2916_v3, %v7625_v25  ;;  %v3760_v19 = vrot.slane %v7899_v63, 1  ;;  %v6338_v11 = vld [vmem:[#allocation2 + $0x48] sm:$0xff] }
 0x25f   : > { %8987 = vst [vmem:[#allocation47_spill] sm:$0xff] %v7906_v45  ;;  %v7920_v55 = vsel %vm516_vm0, %v8989_v54, %v7906_v45  ;;  %v2207_v33 = vrot.slane %v2205_v16, 1  ;;  %v5987_v43 = vld [vmem:[#allocation8 + $0x80] sm:$0xff] }
 0x260   : > { %2955 = vmatmul.bf16.gmra.mxu1 %v2486_v2  ;;  %3198 = vmatmul.bf16.gmra.mxu2 %v6338_v11  ;;  %v3761_v9 = vsel %vm516_vm0, %v3758_v61, %v3760_v19  ;;  %v2209_v61 = vshrl.u32 %v7897_v1, 16 }
 0x261   : > { %2787 = vmatmul.bf16.gmra.mxu3 %v7920_v55  ;;  %v7926_v25 = vsel %vm2068_vm3, %v2203_v49, %v2207_v33  ;;  %3350 = vmatpush.bf16.msra.mxu0 %v5987_v43 }
 0x262   : > { %8990 = vst [vmem:[#allocation48_spill] sm:$0xff] %v7926_v25  ;;  %v2842_v42 = vpop.f32.mrf.mxu0  ;;  %v2503_v3 = vrot.slane %v7926_v25, 1  ;;  %v7946_v36 = vor.u32 %v2209_v61, %v2207_v33  ;;  %v3902_v25 = vrot.slane %v3761_v9, 2  ;;  %v8993_v61 = vrot.slane %v7880_v60, 2  ;;  %v6339_v60 = vld [vmem:[#allocation2 + $0x50] sm:$0xff] }
 0x263   : > { %v7929_v51 = vadd.f32 %v2842_v42, %v2743_v32  ;;  %v3159_v54 = vpop.f32.mrf.mxu2  ;;  %v7931_v50 = vld [vmem:[#allocation2 + $0x90] sm:$0xff] }
 0x264   : > { %v1916_v63 = vld [vmem:[#allocation2 + $0x98] sm:$0x3]  ;;  %v7934_v30 = vadd.f32 %v3159_v54, %v2917_v37  ;;  %v2748_v16 = vpop.f32.mrf.mxu3  ;;  %v2504_v2 = vsel %vm516_vm0, %v2499_v26, %v2503_v3  ;;  %v2370_v32 = vshll.u32 %v7931_v50, 16  ;;  %v3479_v37 = vld [vmem:[#allocation2 + $0xa0] sm:$0x7]  ;;  %v6035_v54 = vld [vmem:[#allocation2 + $0x90] sm:$0xff] }
 0x265   : > { %v1917_v49 = vsel %vm7100_vm14, 0, %v1916_v63  ;;  %v2918_v11 = vpop.f32.mrf.mxu1  ;;  %8991 = vst [vmem:[#allocation49_spill] sm:$0xff] %v7946_v36  ;;  %v8864_v26 = vrot.slane %v7655_v58, 1 }
 0x266   : > { %2881 = vmatmul.bf16.gmra.mxu0 %v2504_v2  ;;  %1918 = vst [vmem:[#allocation2 + $0x98] sm:$0x3] %v1917_v49  ;;  %v2919_v43 = vadd.f32 %v2918_v11, %v7637_v22  ;;  %v7944_v42 = vrot.slane %v2370_v32, 1  ;;  %v3575_v2 = vunpack.c.l.b16 %v3479_v37  ;;  %v7954_v22 = vrot.slane %v7931_v50, 1 }
 0x267   : > { %v8995_v37 = vrot.slane %v7600_v52, 1 }
 0x268   : > { %v7959_v11 = vsel %vm2068_vm3, %v7946_v36, %v7944_v42  ;;  %v7973_v13 = vpack.c.b16 %v3575_v2, %v3575_v2 }
 0x269   : > { %v8869_v36 = vrot.slane %v7959_v11, 1 }
 0x26a   : > { %v2844_v46 = vpop.f32.mrf.mxu0  ;;  %8996 = vst [vmem:[#allocation52_spill] sm:$0xff] %v7973_v13 }
 0x26b   : > { %v7949_v39 = vadd.f32 %v2844_v46, %v2745_v59  ;;  %v3161_v63 = vpop.f32.mrf.mxu2  ;;  %v7964_v46 = vsel %vm1039_vm1, %v8993_v61, %v3902_v25  ;;  %v3762_v59 = vrot.slane %v6035_v54, 1 }
 0x26c   : > { %v7951_v18 = vadd.f32 %v3161_v63, %v2919_v43  ;;  %v2750_v49 = vpop.f32.mrf.mxu3  ;;  %8994 = vst [vmem:[#allocation51_spill] sm:$0xff] %v7964_v46  ;;  %v2490_v63 = vsel %vm516_vm0, %v8995_v37, %v8864_v26 }
 0x26d   : > { %v2921_v33 = vpop.f32.mrf.mxu1  ;;  %v2345_v32 = vld [vmem:[#allocation2 + $0x98] sm:$0x3]  ;;  %v3763_v35 = vsel %vm516_vm0, %v3760_v19, %v3762_v59 }
 0x26e   : > { %8992 = vst [vmem:[#allocation50_spill] sm:$0xff] %v7951_v18  ;;  %v2922_v9 = vadd.f32 %v2921_v33, %v7673_v40  ;;  %v2359_v43 = vunpack.c.l.b16 %v2345_v32  ;;  %v7979_v40 = vsel %vm516_vm0, %v7906_v45, %v7954_v22  ;;  %v6036_v33 = vld [vmem:[#allocation2 + $0x98] sm:$0xff]  ;;  %v3908_v32 = vrot.slane %v3763_v35, 2 }
 0x26f   : > { %v2344_v61 = vld [vmem:[#allocation2 + $0x98] sm:$0x1]  ;;  %v3764_v21 = vrot.slane %v6036_v33, 1  ;;  %v2493_v18 = vrot.slane %v7719_v4, 1 }
 0x270   : > { %2960 = vmatmul.bf16.gmra.mxu1 %v2490_v63  ;;  %3203 = vmatmul.bf16.gmra.mxu2 %v6339_v60  ;;  %v7981_v54 = vpack.c.b16 %v2359_v43, %v2359_v43  ;;  %v2508_v63 = vsel %vm516_vm0, %v2503_v3, %v8869_v36  ;;  %v7991_v60 = vsel %vm1039_vm1, %v3902_v25, %v3908_v32  ;;  %v3766_v43 = vrot.slane %v7973_v13, 1 }
 0x271   : > { %2792 = vmatmul.bf16.gmra.mxu3 %v7979_v40  ;;  %8997 = vst [vmem:[#allocation53_spill] sm:$0xff] %v7991_v60  ;;  %v2354_v45 = vunpack.c.l.b16 %v2344_v61  ;;  %v6052_v60 = vld [vmem:[#allocation8 + $0x1f8] sm:$0xff]  ;;  %v2374_v13 = vshrl.u32 %v7931_v50, 16 }
 0x272   : > { %v2847_v37 = vpop.f32.mrf.mxu0  ;;  %v2392_v2 = vrot.slane %v7981_v54, 1  ;;  %v2378_v38 = vshll.u32 %v7981_v54, 16  ;;  %4225 = vmatpush.bf16.msrb.mxu2 %v6052_v60 }
 0x273   : > { %v7985_v26 = vadd.f32 %v2847_v37, %v2748_v16  ;;  %v3164_v19 = vpop.f32.mrf.mxu2  ;;  %v8872_v16 = vrot.slane %v7979_v40, 1  ;;  %v2357_v33 = vpack.c.b16 %v2354_v45, %v2354_v45 }
 0x274   : > { %v7994_v46 = vadd.f32 %v3164_v19, %v2922_v9  ;;  %v2753_v35 = vpop.f32.mrf.mxu3  ;;  %v2393_v52 = vsel %vm516_vm0, %v7954_v22, %v2392_v2  ;;  %v2519_v36 = vrot.slane %v2392_v2, 1  ;;  %v3765_v19 = vsel %vm516_vm0, %v3762_v59, %v3764_v21 }
 0x275   : > { %v2923_v37 = vpop.f32.mrf.mxu1  ;;  %v2513_v3 = vrot.slane %v2393_v52, 1  ;;  %v2380_v52 = vrot.slane %v2378_v38, 1  ;;  %v3914_v2 = vrot.slane %v3765_v19, 2  ;;  %v2515_v50 = vrot.slane %v2357_v33, 1  ;;  %v6060_v38 = vld [vmem:[#allocation8 + $0x238] sm:$0xff] }
 0x276   : > { %8998 = vst [vmem:[#allocation54_spill] sm:$0xff] %v7994_v46  ;;  %2886 = vmatmul.bf16.gmra.mxu0 %v2508_v63  ;;  %v2924_v25 = vadd.f32 %v2923_v37, %v7701_v41  ;;  %v3926_v63 = vrot.slane %v3766_v43, 2  ;;  %v3767_v41 = vsel %vm516_vm0, %v3764_v21, %v3766_v43  ;;  %4324 = vmatpush.bf16.msrb.mxu3 %v6060_v38  ;;  %v6044_v33 = vld [vmem:[#allocation8 + $0x1b8] sm:$0xff]  ;;  %v9002_v38 = vrot.slane %v7959_v11, 1 }
 0x277   : > { %v8004_v9 = vsel %vm516_vm0, %v8872_v16, %v2513_v3  ;;  %v8007_v61 = vsel %vm516_vm0, %v2513_v3, %v2519_v36  ;;  %v3920_v46 = vrot.slane %v3767_v41, 2  ;;  %v2376_v36 = vor.u32 %v2374_v13, %v7944_v42  ;;  %v6340_v42 = vld [vmem:[#allocation2 + $0x58] sm:$0xff]  ;;  %4126 = vmatpush.bf16.msrb.mxu1 %v6044_v33 }
 0x278   : > { %v8017_v45 = vsel %vm1039_vm1, %v3908_v32, %v3914_v2  ;;  %v9001_v13 = vrot.slane %v7655_v58, 1  ;;  %v2516_v32 = vsel %vm516_vm0, %v7954_v22, %v2515_v50  ;;  %v6086_v50 = vld [vmem:[#allocation9 + $0x38] sm:$0xff]  ;;  %v2497_v33 = vrot.slane %v7781_v56, 1 }
 0x279   : > { %v8022_v3 = vsel %vm1039_vm1, %v3914_v2, %v3920_v46  ;;  %v8025_v21 = vsel %vm1039_vm1, %v3920_v46, %v3926_v63  ;;  %4752 = vmatpush.bf16.msrb.mxu0 %v6086_v50 }
 0x27a   : > { %v2849_v37 = vpop.f32.mrf.mxu0  ;;  %8999 = vst [vmem:[#allocation55_spill] sm:$0xff] %v8022_v3  ;;  %v6080_v3 = vld [vmem:[#allocation9 + $0x8] sm:$0xff] }
 0x27b   : > { %v8013_v16 = vadd.f32 %v2849_v37, %v2750_v49  ;;  %v3166_v12 = vpop.f32.mrf.mxu2  ;;  %9000 = vst [vmem:[#allocation56_spill] sm:$0xff] %v8025_v21  ;;  %v2381_v49 = vsel %vm2068_vm3, %v2376_v36, %v2380_v52  ;;  %v2498_v21 = vsel %vm516_vm0, %v2493_v18, %v2497_v33 }
 0x27c   : > { %v8019_v59 = vadd.f32 %v3166_v12, %v2924_v25  ;;  %v2755_v60 = vpop.f32.mrf.mxu3  ;;  %v2494_v12 = vsel %vm516_vm0, %v9001_v13, %v2493_v18  ;;  %v2511_v25 = vrot.slane %v2381_v49, 1  ;;  %v6191_v18 = vld [vmem:[#allocation2] sm:$0xf0] }
 0x27d   : > { %v2926_v43 = vpop.f32.mrf.mxu1 }
 0x27e   : > { %v2927_v19 = vadd.f32 %v2926_v43, %v7735_v23  ;;  %v6341_v23 = vld [vmem:[#allocation2] sm:$0xff]   ;;  %v2512_v43 = vsel %vm516_vm0, %v9002_v38, %v2511_v25 }
 0x27f   : > { %v2072_v41 = vshll.u32 %v6341_v23, 16  ;;  %v2070_v49 = vshrl.u32 %v6341_v23, 16 }
 0x280   : > { %2965 = vmatmul.bf16.gmra.mxu1 %v2494_v12  ;;  %3208 = vmatmul.bf16.gmra.mxu2 %v6340_v42  ;;  %v8042_v42 = vld [vmem:[#allocation2 + $0x8] sm:$0xff]  }
 0x281   : > { %2797 = vmatmul.bf16.gmra.mxu3 %v2516_v32  ;;  %v2074_v12 = vrot.slane %v2072_v41, 1 }
 0x282   : > { %v2852_v46 = vpop.f32.mrf.mxu0 }
 0x283   : > { %v8034_v63 = vadd.f32 %v2852_v46, %v2753_v35  ;;  %v3169_v2 = vpop.f32.mrf.mxu2  ;;  %v2077_v35 = vshll.u32 %v8042_v42, 16 }
 0x284   : > { %v8036_v37 = vadd.f32 %v3169_v2, %v2927_v19  ;;  %v2758_v36 = vpop.f32.mrf.mxu3  ;;  %v2382_v19 = vshrl.u32 %v7981_v54, 16  ;;  %v2075_v2 = vor.u32 %v2074_v12, %v2070_v49 }
 0x285   : > { %v2928_v13 = vpop.f32.mrf.mxu1 }
 0x286   : > { %2891 = vmatmul.bf16.gmra.mxu0 %v2512_v43  ;;  %v2929_v22 = vadd.f32 %v2928_v13, %v7763_v47  ;;  %v2079_v43 = vrot.slane %v2077_v35, 1  ;;  %v2384_v23 = vor.u32 %v2382_v19, %v2380_v52  ;;  %v2501_v19 = vrot.slane %v7847_v6, 1 }
 0x288   : > { %v2080_v54 = vsel %vm2068_vm3, %v2075_v2, %v2079_v43  ;;  %v2517_v50 = vrot.slane %v2384_v23, 1 }
 0x28a   : > { %v2854_v32 = vpop.f32.mrf.mxu0  ;;  %v2518_v52 = vsel %vm516_vm0, %v2511_v25, %v2517_v50 }
 0x28b   : > { %v8047_v11 = vadd.f32 %v2854_v32, %v2755_v60  ;;  %v3171_v46 = vpop.f32.mrf.mxu2 }
 0x28c   : > { %v8049_v38 = vadd.f32 %v3171_v46, %v2929_v22  ;;  %v2760_v47 = vpop.f32.mrf.mxu3 }
 0x28d   : > { %v2931_v41 = vpop.f32.mrf.mxu1 }
 0x28e   : > { %v2932_v13 = vadd.f32 %v2931_v41, %v7799_v62  ;;  %v2081_v41 = vshrl.u32 %v8042_v42, 16 }
 0x290   : > { %2970 = vmatmul.bf16.gmra.mxu1 %v2498_v21  ;;  %3213 = vmatmul.bf16.gmra.mxu2 %v7560_v48  ;;  %v6192_v21 = vld [vmem:[#allocation2] sm:$0xe]  ;;  %v2083_v50 = vor.u32 %v2081_v41, %v2079_v43  ;;  %v2505_v41 = vrot.slane %v7920_v55, 1 }
 0x291   : > { %3252 = vmatmul.bf16.vlgmr.msra.gmra.mxu3 %v2080_v54 }
 0x292   : > { %v2857_v60 = vpop.f32.mrf.mxu0 }
 0x293   : > { %v8055_v32 = vadd.f32 %v2857_v60, %v2758_v36  ;;  %v3174_v22 = vpop.f32.mrf.mxu2  ;;  %v6051_v60 = vld [vmem:[#allocation8 + $0x1f0] sm:$0xff] }
 0x294   : > { %v8057_v49 = vadd.f32 %v3174_v22, %v2932_v13  ;;  %v2763_v12 = vpop.f32.mrf.mxu3  ;;  %v6193_v13 = vor.u32 %v6192_v21, %v6191_v18  ;;  %4226 = vmatpush.bf16.msrb.mxu2 %v6051_v60 }
 0x295   : > { %v2933_v35 = vpop.f32.mrf.mxu1 }
 0x296   : > { %2896 = vmatmul.bf16.gmra.mxu0 %v2518_v52  ;;  %v2934_v62 = vadd.f32 %v2933_v35, %v7829_v24  ;;  %v2502_v24 = vsel %vm516_vm0, %v2497_v33, %v2501_v19  ;;  %v2238_v22 = vrot.slane %v6193_v13, 1  ;;  %v2239_v52 = vrot.slane %v8042_v42, 1  ;;  %v6059_v35 = vld [vmem:[#allocation8 + $0x230] sm:$0xff] }
 0x297   : > { %4325 = vmatpush.bf16.msrb.mxu3 %v6059_v35  ;;  %v6085_v42 = vld [vmem:[#allocation9 + $0x30] sm:$0xff] }
 0x298   : > { %v2240_v21 = vsel %vm516_vm0, %v2238_v22, %v2239_v52  ;;  %4753 = vmatpush.bf16.msrb.mxu0 %v6085_v42 }
 0x29a   : > { %v2859_v48 = vpop.f32.mrf.mxu0 }
 0x29b   : > { %v8062_v46 = vadd.f32 %v2859_v48, %v2760_v47  ;;  %v3176_v2 = vpop.f32.mrf.mxu2  ;;  %v2088_v47 = vsel %vm2068_vm3, %v2083_v50, %v6999_v29 }
 0x29c   : > { %v8064_v36 = vadd.f32 %v3176_v2, %v2934_v62  ;;  %v2765_v23 = vpop.f32.mrf.mxu3 }
 0x29d   : > { %v2936_v54 = vpop.f32.mrf.mxu1 }
 0x29e   : > { %v2937_v25 = vadd.f32 %v2936_v54, %v7867_v44 }
 0x2a0   : > { %2975 = vmatmul.bf16.gmra.mxu1 %v2502_v24  ;;  %3218 = vmatmul.bf16.gmra.mxu2 %v7639_v15  ;;  %v6043_v15 = vld [vmem:[#allocation8 + $0x1b0] sm:$0xff]  ;;  %v2506_v24 = vsel %vm516_vm0, %v2501_v19, %v2505_v41  ;;  %v6042_v19 = vld [vmem:[#allocation8 + $0x1a8] sm:$0xff] }
 0x2a1   : > { %3257 = vmatmul.bf16.gmra.mxu3 %v2088_v47  ;;  %4127 = vmatpush.bf16.msrb.mxu1 %v6043_v15 }
 0x2a2   : > { %v2862_v62 = vpop.f32.mrf.mxu0 }
 0x2a3   : > { %v8073_v18 = vadd.f32 %v2862_v62, %v2763_v12  ;;  %v3179_v44 = vpop.f32.mrf.mxu2  ;;  %v2242_v62 = vsel %vm516_vm0, %v2239_v52, %v6963_v17  ;;  %v6049_v17 = vld [vmem:[#allocation8 + $0x1e0] sm:$0xff]  ;;  %v9003_v52 = vrot.slane %v7979_v40, 1 }
 0x2a4   : > { %v8075_v43 = vadd.f32 %v3179_v44, %v2937_v25  ;;  %v2768_v33 = vpop.f32.mrf.mxu3 }
 0x2a5   : > { %v2938_v48 = vpop.f32.mrf.mxu1  ;;  %4128 = vmatpush.bf16.msrb.mxu1 %v6042_v19 }
 0x2a6   : > { %3351 = vmatmul.bf16.vlgmr.msra.gmra.mxu0 %v2240_v21  ;;  %v2939_v29 = vadd.f32 %v2938_v48, %v7895_v10  ;;  %v6050_v21 = vld [vmem:[#allocation8 + $0x1e8] sm:$0xff] }
 0x2a7   : > { %4227 = vmatpush.bf16.msrb.mxu2 %v6050_v21 }
 0x2aa   : > { %v2864_v2 = vpop.f32.mrf.mxu0 }
 0x2ab   : > { %v8080_v13 = vadd.f32 %v2864_v2, %v2765_v23  ;;  %v3181_v12 = vpop.f32.mrf.mxu2  ;;  %v6041_v2 = vld [vmem:[#allocation8 + $0x1a0] sm:$0xff]  ;;  %4228 = vmatpush.bf16.msrb.mxu2 %v6049_v17 }
 0x2ac   : > { %v8082_v54 = vadd.f32 %v3181_v12, %v2939_v29  ;;  %v2770_v25 = vpop.f32.mrf.mxu3  ;;  %4129 = vmatpush.bf16.msrb.mxu1 %v6041_v2  ;;  %v6040_v12 = vld [vmem:[#allocation8 + $0x198] sm:$0xff] }
 0x2ad   : > { %v2941_v50 = vpop.f32.mrf.mxu1 }
 0x2ae   : > { %v2942_v60 = vadd.f32 %v2941_v50, %v7929_v51  ;;  %v6048_v50 = vld [vmem:[#allocation8 + $0x1d8] sm:$0xff] }
 0x2af   : > { %4229 = vmatpush.bf16.msrb.mxu2 %v6048_v50 }
 0x2b0   : > { %2980 = vmatmul.bf16.gmra.mxu1 %v2506_v24  ;;  %3223 = vmatmul.bf16.gmra.mxu2 %v7703_v8 }
 0x2b1   : > { %3262 = vmatmul.bf16.gmra.mxu3 %v7036_v27  ;;  %4130 = vmatpush.bf16.msrb.mxu1 %v6040_v12  ;;  %v3442_v12 = vld [vmem:[#allocation2 + $0x10] sm:$0xc] }
 0x2b3   : > { %v2867_v10 = vpop.f32.mrf.mxu0  ;;  %v3184_v22 = vpop.f32.mrf.mxu2 }
 0x2b4   : > { %v8088_v47 = vadd.f32 %v2867_v10, %v2768_v33  ;;  %v8090_v23 = vadd.f32 %v3184_v22, %v2942_v60  ;;  %v2773_v35 = vpop.f32.mrf.mxu3  ;;  %v6058_v22 = vld [vmem:[#allocation8 + $0x228] sm:$0xff] }
 0x2b5   : > { %v2943_v44 = vpop.f32.mrf.mxu1  ;;  %4326 = vmatpush.bf16.msrb.mxu3 %v6058_v22 }
 0x2b6   : > { %3356 = vmatmul.bf16.gmra.mxu0 %v2242_v62  ;;  %v2944_v51 = vadd.f32 %v2943_v44, %v7949_v39  ;;  %v2510_v39 = vsel %vm516_vm0, %v2505_v41, %v9003_v52  ;;  %v6047_v41 = vld [vmem:[#allocation8 + $0x1d0] sm:$0xff]  ;;  %v6038_v62 = vld [vmem:[#allocation8 + $0x188] sm:$0xff] }
 0x2b7   : > { %4230 = vmatpush.bf16.msrb.mxu2 %v6047_v41  ;;  %v8132_v41 = vld [vmem:[#allocation2 + $0x18] sm:$0xff] }
 0x2bb   : > { %v2869_v8 = vpop.f32.mrf.mxu0  ;;  %v3186_v33 = vpop.f32.mrf.mxu2 }
 0x2bc   : > { %v8095_v27 = vadd.f32 %v2869_v8, %v2770_v25  ;;  %v8097_v15 = vadd.f32 %v3186_v33, %v2944_v51  ;;  %v2775_v48 = vpop.f32.mrf.mxu3 }
 0x2bd   : > { %v2946_v29 = vpop.f32.mrf.mxu1 }
 0x2be   : > { %v2947_v42 = vadd.f32 %v2946_v29, %v7985_v26  ;;  %v6045_v29 = vld [vmem:[#allocation8 + $0x1c0] sm:$0xff] }
 0x2c0   : > { %2985 = vmatmul.bf16.gmra.mxu1 %v2510_v39  ;;  %3228 = vmatmul.bf16.gmra.mxu2 %v7765_v5 }
 0x2c1   : > { %3267 = vmatmul.bf16.gmra.mxu3 %v7108_v34  ;;  %v6039_v34 = vld [vmem:[#allocation8 + $0x190] sm:$0xff] }
 0x2c2   : > { %4131 = vmatpush.bf16.msrb.mxu1 %v6039_v34 }
 0x2c3   : > { %v2872_v25 = vpop.f32.mrf.mxu0  ;;  %v3189_v24 = vpop.f32.mrf.mxu2 }
 0x2c4   : > { %v8105_v60 = vadd.f32 %v2872_v25, %v2773_v35  ;;  %v8107_v26 = vadd.f32 %v3189_v24, %v2947_v42  ;;  %v2778_v10 = vpop.f32.mrf.mxu3  ;;  %v6046_v35 = vld [vmem:[#allocation8 + $0x1c8] sm:$0xff]  ;;  %v3518_v25 = vunpack.c.l.b16 %v3442_v12  ;;  %v6057_v12 = vld [vmem:[#allocation8 + $0x220] sm:$0xff] }
 0x2c5   : > { %v2948_v40 = vpop.f32.mrf.mxu1  ;;  %4231 = vmatpush.bf16.msrb.mxu2 %v6046_v35  ;;  %v6084_v42 = vld [vmem:[#allocation9 + $0x28] sm:$0xff]  ;;  %v9005_v35 = vld [vmem:[#allocation20_spill] sm:$0xff]  ;;  %4327 = vmatpush.bf16.msrb.mxu3 %v6057_v12 }
 0x2c6   : > { %3361 = vmatmul.bf16.gmra.mxu0 %v7020_v0  ;;  %v2949_v5 = vadd.f32 %v2948_v40, %v8013_v16  ;;  %4132 = vmatpush.bf16.msrb.mxu1 %v6038_v62  ;;  %v6037_v16 = vld [vmem:[#allocation8 + $0x180] sm:$0xff]  ;;  %v8137_v62 = vld [vmem:[#allocation2 + $0x20] sm:$0xff] }
 0x2c7   : > { %4754 = vmatpush.bf16.msrb.mxu0 %v6084_v42  ;;  %v9006_v42 = vld [vmem:[#allocation17_spill] sm:$0xff] }
 0x2c9   : > { %4232 = vmatpush.bf16.msrb.mxu2 %v6045_v29 }
 0x2ca   : > { %4133 = vmatpush.bf16.msrb.mxu1 %v6037_v16 }
 0x2cb   : > { %v2874_v44 = vpop.f32.mrf.mxu0  ;;  %v3191_v19 = vpop.f32.mrf.mxu2 }
 0x2cc   : > { %v8111_v51 = vadd.f32 %v2874_v44, %v2775_v48  ;;  %v8113_v21 = vadd.f32 %v3191_v19, %v2949_v5  ;;  %v2780_v8 = vpop.f32.mrf.mxu3  ;;  %v3593_v44 = vshll.u32 %v8137_v62, 16 }
 0x2cd   : > { %v2951_v33 = vpop.f32.mrf.mxu1 }
 0x2ce   : > { %v2952_v0 = vadd.f32 %v2951_v33, %v8034_v63  ;;  %v3595_v29 = vrot.slane %v3593_v44, 1 }
 0x2d0   : > { %2990 = vmatmul.bf16.gmra.mxu1 %v8004_v9  ;;  %3233 = vmatmul.bf16.gmra.mxu2 %v7831_v57 }
 0x2d1   : > { %3272 = vmatmul.bf16.gmra.mxu3 %v7171_v53 }
 0x2d3   : > { %v2877_v48 = vpop.f32.mrf.mxu0  ;;  %v3194_v17 = vpop.f32.mrf.mxu2 }
 0x2d4   : > { %v8119_v2 = vadd.f32 %v2877_v48, %v2778_v10  ;;  %v8121_v52 = vadd.f32 %v3194_v17, %v2952_v0  ;;  %v2783_v63 = vpop.f32.mrf.mxu3  ;;  %v9004_v10 = vunpack.c.l.b16 %v6995_v28 }
 0x2d5   : > { %v2953_v39 = vpop.f32.mrf.mxu1 }
 0x2d6   : > { %3366 = vmatmul.bf16.gmra.mxu0 %v7093_v20  ;;  %v2954_v9 = vadd.f32 %v2953_v39, %v8047_v11  ;;  %v3555_v40 = vpack.c.b16 %v9004_v10, %v3518_v25  ;;  %v3585_v20 = vshll.u32 %v8132_v41, 16 }
 0x2d8   : > { %v3580_v11 = vshll.u32 %v3555_v40, 16  ;;  %v3587_v19 = vrot.slane %v3585_v20, 1  ;;  %v3578_v17 = vshrl.u32 %v3555_v40, 16  ;;  %v3817_v44 = vrot.slane %v3555_v40, 2 }
 0x2da   : > { %v3582_v16 = vrot.slane %v3580_v11, 1 }
 0x2db   : > { %v2879_v57 = vpop.f32.mrf.mxu0  ;;  %v3196_v53 = vpop.f32.mrf.mxu2 }
 0x2dc   : > { %v8125_v50 = vadd.f32 %v2879_v57, %v2780_v8  ;;  %v8127_v24 = vadd.f32 %v3196_v53, %v2954_v9  ;;  %v2785_v22 = vpop.f32.mrf.mxu3  ;;  %v3583_v9 = vor.u32 %v3582_v16, %v3578_v17  ;;  %v3597_v17 = vshrl.u32 %v8137_v62, 16 }
 0x2dd   : > { %v2956_v5 = vpop.f32.mrf.mxu1 }
 0x2de   : > { %v2957_v34 = vadd.f32 %v2956_v5, %v8055_v32  ;;  %v3588_v57 = vsel %vm2068_vm3, %v3583_v9, %v3587_v19  ;;  %v3818_v5 = vrot.slane %v8132_v41, 2  ;;  %v9008_v9 = vld [vmem:[#allocation19_spill] sm:$0xff] }
 0x2e0   : > { %2995 = vmatmul.bf16.gmra.mxu1 %v8007_v61  ;;  %3238 = vmatmul.bf16.gmra.mxu2 %v7897_v1  ;;  %v3589_v61 = vshrl.u32 %v8132_v41, 16  ;;  %v9007_v41 = vld [vmem:[#allocation23_spill] sm:$0xff] }
 0x2e1   : > { %3277 = vmatmul.bf16.gmra.mxu3 %v9005_v35  ;;  %v3820_v35 = vrot.slane %v3588_v57, 2 }
 0x2e2   : > { %v3591_v39 = vor.u32 %v3589_v61, %v3587_v19  ;;  %v6083_v61 = vld [vmem:[#allocation9 + $0x20] sm:$0xff] }
 0x2e3   : > { %v2882_v28 = vpop.f32.mrf.mxu0  ;;  %v3199_v32 = vpop.f32.mrf.mxu2  ;;  %4755 = vmatpush.bf16.msrb.mxu0 %v6083_v61  ;;  %v9009_v61 = vld [vmem:[#allocation25_spill] sm:$0xff] }
 0x2e4   : > { %v8141_v8 = vadd.f32 %v2882_v28, %v2783_v63  ;;  %v8143_v33 = vadd.f32 %v3199_v32, %v2957_v34  ;;  %v2788_v0 = vpop.f32.mrf.mxu3  ;;  %v3596_v63 = vsel %vm2068_vm3, %v3591_v39, %v3595_v29  ;;  %v3819_v32 = vsel %vm1039_vm1, %v3817_v44, %v3818_v5 }
 0x2e5   : > { %v2958_v1 = vpop.f32.mrf.mxu1  ;;  %v3821_v34 = vrot.slane %v3596_v63, 2  ;;  %v3826_v44 = vrot.slane %v8137_v62, 2 }
 0x2e6   : > { %3371 = vmatmul.bf16.gmra.mxu0 %v9006_v42  ;;  %v2959_v48 = vadd.f32 %v2958_v1, %v8062_v46 }
 0x2e7   : > { %v3822_v16 = vsel %vm1039_vm1, %v3820_v35, %v3821_v34 }
 0x2eb   : > { %v2884_v25 = vpop.f32.mrf.mxu0  ;;  %v3201_v10 = vpop.f32.mrf.mxu2 }
 0x2ec   : > { %v8150_v53 = vadd.f32 %v2884_v25, %v2785_v22  ;;  %v8153_v20 = vadd.f32 %v3201_v10, %v2959_v48  ;;  %v2790_v11 = vpop.f32.mrf.mxu3  ;;  %v8158_v22 = vld [vmem:[#allocation2 + $0x28] sm:$0xff]  ;;  %v3599_v25 = vor.u32 %v3597_v17, %v3595_v29  ;;  %v8178_v29 = vld [vmem:[#allocation2 + $0x30] sm:$0xff] }
 0x2ed   : > { %v2961_v46 = vpop.f32.mrf.mxu1  ;;  %v3601_v19 = vshll.u32 %v8158_v22, 16 }
 0x2ee   : > { %v2962_v28 = vadd.f32 %v2961_v46, %v8073_v18 }
 0x2ef   : > { %v3603_v39 = vrot.slane %v3601_v19, 1 }
 0x2f0   : > { %4134 = vmatmul.bf16.vlgmr.msrb.gmra.mxu1 %v3819_v32  ;;  %4233 = vmatmul.bf16.vlgmr.msrb.gmra.mxu2 %v3822_v16 }
 0x2f1   : > { %3282 = vmatmul.bf16.gmra.mxu3 %v9007_v41  ;;  %v3604_v57 = vsel %vm2068_vm3, %v3599_v25, %v3603_v39  ;;  %v3827_v41 = vsel %vm1039_vm1, %v3818_v5, %v3826_v44 }
 0x2f2   : > { %v3828_v35 = vrot.slane %v3604_v57, 2 }
 0x2f3   : > { %v2887_v1 = vpop.f32.mrf.mxu0  ;;  %v3204_v40 = vpop.f32.mrf.mxu2 }
 0x2f4   : > { %v8162_v42 = vadd.f32 %v2887_v1, %v2788_v0  ;;  %v8164_v48 = vadd.f32 %v3204_v40, %v2962_v28  ;;  %v2793_v18 = vpop.f32.mrf.mxu3 }
 0x2f5   : > { %v2963_v12 = vpop.f32.mrf.mxu1 }
 0x2f6   : > { %3376 = vmatmul.bf16.gmra.mxu0 %v9008_v9  ;;  %v2964_v63 = vadd.f32 %v2963_v12, %v8080_v13  ;;  %v3829_v13 = vsel %vm1039_vm1, %v3821_v34, %v3828_v35  ;;  %v9010_v34 = vld [vmem:[#allocation22_spill] sm:$0xff] }
 0x2fb   : > { %v2889_v10 = vpop.f32.mrf.mxu0  ;;  %v3206_v0 = vpop.f32.mrf.mxu2 }
 0x2fc   : > { %v8170_v46 = vadd.f32 %v2889_v10, %v2790_v11  ;;  %v8173_v28 = vadd.f32 %v3206_v0, %v2964_v63  ;;  %v2795_v32 = vpop.f32.mrf.mxu3  ;;  %v3609_v11 = vshll.u32 %v8178_v29, 16 }
 0x2fd   : > { %v2966_v16 = vpop.f32.mrf.mxu1 }
 0x2fe   : > { %v2967_v19 = vadd.f32 %v2966_v16, %v8088_v47  ;;  %v3605_v47 = vshrl.u32 %v8158_v22, 16  ;;  %v3611_v5 = vrot.slane %v3609_v11, 1  ;;  %v3832_v16 = vrot.slane %v8158_v22, 2  ;;  %v6056_v11 = vld [vmem:[#allocation8 + $0x218] sm:$0xff]  ;;  %v9011_v22 = vld [vmem:[#allocation26_spill] sm:$0xff] }
 0x2ff   : > { %4328 = vmatpush.bf16.msrb.mxu3 %v6056_v11 }
 0x300   : > { %4139 = vmatmul.bf16.gmra.mxu1 %v3827_v41  ;;  %4238 = vmatmul.bf16.gmra.mxu2 %v3829_v13  ;;  %v3607_v25 = vor.u32 %v3605_v47, %v3603_v39  ;;  %v8198_v39 = vld [vmem:[#allocation2 + $0x38] sm:$0xff] }
 0x301   : > { %3287 = vmatmul.bf16.gmra.mxu3 %v9009_v61 }
 0x302   : > { %v3612_v57 = vsel %vm2068_vm3, %v3607_v25, %v3611_v5 }
 0x303   : > { %v2892_v62 = vpop.f32.mrf.mxu0  ;;  %v3209_v40 = vpop.f32.mrf.mxu2 }
 0x304   : > { %v8182_v1 = vadd.f32 %v2892_v62, %v2793_v18  ;;  %v8184_v17 = vadd.f32 %v3209_v40, %v2967_v19  ;;  %v2798_v12 = vpop.f32.mrf.mxu3  ;;  %v3834_v19 = vrot.slane %v3612_v57, 2  ;;  %v3833_v40 = vsel %vm1039_vm1, %v3826_v44, %v3832_v16 }
 0x305   : > { %v2968_v9 = vpop.f32.mrf.mxu1  ;;  %v3613_v44 = vshrl.u32 %v8178_v29, 16 }
 0x306   : > { %3381 = vmatmul.bf16.gmra.mxu0 %v9010_v34  ;;  %v2969_v63 = vadd.f32 %v2968_v9, %v8095_v27  ;;  %v3835_v27 = vsel %vm1039_vm1, %v3828_v35, %v3834_v19 }
 0x30b   : > { %v2894_v10 = vpop.f32.mrf.mxu0  ;;  %v3211_v18 = vpop.f32.mrf.mxu2 }
 0x30c   : > { %v8190_v0 = vadd.f32 %v2894_v10, %v2795_v32  ;;  %v8193_v41 = vadd.f32 %v3211_v18, %v2969_v63  ;;  %v2800_v13 = vpop.f32.mrf.mxu3  ;;  %v3617_v32 = vshll.u32 %v8198_v39, 16  ;;  %v3615_v18 = vor.u32 %v3613_v44, %v3611_v5 }
 0x30d   : > { %v2971_v61 = vpop.f32.mrf.mxu1 }
 0x30e   : > { %v2972_v62 = vadd.f32 %v2971_v61, %v8105_v60  ;;  %v3619_v25 = vrot.slane %v3617_v32, 1  ;;  %v6082_v61 = vld [vmem:[#allocation9 + $0x18] sm:$0xff] }
 0x30f   : > { %4756 = vmatpush.bf16.msrb.mxu0 %v6082_v61 }
 0x310   : > { %4144 = vmatmul.bf16.gmra.mxu1 %v3833_v40  ;;  %4243 = vmatmul.bf16.gmra.mxu2 %v3835_v27  ;;  %v3620_v11 = vsel %vm2068_vm3, %v3615_v18, %v3619_v25  ;;  %v3838_v27 = vrot.slane %v8178_v29, 2  ;;  %v9012_v29 = vld [vmem:[#allocation30_spill] sm:$0xff] }
 0x311   : > { %3292 = vmatmul.bf16.gmra.mxu3 %v9011_v22  ;;  %v3840_v22 = vrot.slane %v3620_v11, 2  ;;  %v9013_v11 = vld [vmem:[#allocation27_spill] sm:$0xff] }
 0x312   : > { %v3839_v5 = vsel %vm1039_vm1, %v3832_v16, %v3838_v27 }
 0x313   : > { %v2897_v47 = vpop.f32.mrf.mxu0  ;;  %v3214_v34 = vpop.f32.mrf.mxu2 }
 0x314   : > { %v8202_v9 = vadd.f32 %v2897_v47, %v2798_v12  ;;  %v8204_v63 = vadd.f32 %v3214_v34, %v2972_v62  ;;  %v3253_v60 = vpop.f32.mrf.mxu3  ;;  %v3841_v34 = vsel %vm1039_vm1, %v3834_v19, %v3840_v22 }
 0x315   : > { %v3254_v35 = vadd.f32 %v3253_v60, %v7869_v14  ;;  %v2973_v57 = vpop.f32.mrf.mxu1 }
 0x316   : > { %3386 = vmatmul.bf16.gmra.mxu0 %v7355_v31  ;;  %v2974_v10 = vadd.f32 %v2973_v57, %v8111_v51 }
 0x31b   : > { %v2899_v12 = vpop.f32.mrf.mxu0  ;;  %v3216_v62 = vpop.f32.mrf.mxu2 }
 0x31c   : > { %v8211_v40 = vadd.f32 %v2899_v12, %v2800_v13  ;;  %v8214_v32 = vadd.f32 %v3216_v62, %v2974_v10  ;;  %v3255_v14 = vpop.f32.mrf.mxu3  ;;  %v8220_v13 = vld [vmem:[#allocation2 + $0x40] sm:$0xff] }
 0x31d   : > { %v3256_v47 = vadd.f32 %v3255_v14, %v7903_v7  ;;  %v2976_v31 = vpop.f32.mrf.mxu1  ;;  %v3625_v60 = vshll.u32 %v8220_v13, 16 }
 0x31e   : > { %v2977_v51 = vadd.f32 %v2976_v31, %v8119_v2  ;;  %v3621_v2 = vshrl.u32 %v8198_v39, 16 }
 0x31f   : > { %v3627_v16 = vrot.slane %v3625_v60, 1 }
 0x320   : > { %4149 = vmatmul.bf16.gmra.mxu1 %v3839_v5  ;;  %4248 = vmatmul.bf16.gmra.mxu2 %v3841_v34  ;;  %v3623_v62 = vor.u32 %v3621_v2, %v3619_v25  ;;  %v8242_v2 = vld [vmem:[#allocation2 + $0x48] sm:$0xff] }
 0x321   : > { %3297 = vmatmul.bf16.gmra.mxu3 %v9012_v29 }
 0x322   : > { %v3628_v14 = vsel %vm2068_vm3, %v3623_v62, %v3627_v16 }
 0x323   : > { %v3352_v44 = vpop.f32.mrf.mxu0  ;;  %v3219_v57 = vpop.f32.mrf.mxu2  ;;  %v3846_v34 = vrot.slane %v3628_v14, 2 }
 0x324   : > { %v8224_v10 = vadd.f32 %v3352_v44, %v3254_v35  ;;  %v8226_v7 = vadd.f32 %v3219_v57, %v2977_v51  ;;  %v3258_v18 = vpop.f32.mrf.mxu3  ;;  %v3844_v51 = vrot.slane %v8198_v39, 2  ;;  %v9014_v44 = vld [vmem:[#allocation50_spill] sm:$0xff] }
 0x325   : > { %v3259_v19 = vadd.f32 %v3258_v18, %v7934_v30  ;;  %v2978_v61 = vpop.f32.mrf.mxu1  ;;  %v3847_v25 = vsel %vm1039_vm1, %v3840_v22, %v3846_v34  ;;  %v6055_v39 = vld [vmem:[#allocation8 + $0x210] sm:$0xff] }
 0x326   : > { %3391 = vmatmul.bf16.gmra.mxu0 %v9013_v11  ;;  %v2979_v12 = vadd.f32 %v2978_v61, %v8125_v50  ;;  %v3845_v50 = vsel %vm1039_vm1, %v3838_v27, %v3844_v51  ;;  %v9015_v61 = vld [vmem:[#allocation33_spill] sm:$0xff]  ;;  %4329 = vmatpush.bf16.msrb.mxu3 %v6055_v39  ;;  %v3629_v27 = vshrl.u32 %v8220_v13, 16 }
 0x32b   : > { %v3354_v31 = vpop.f32.mrf.mxu0  ;;  %v3221_v5 = vpop.f32.mrf.mxu2 }
 0x32c   : > { %v8233_v35 = vadd.f32 %v3354_v31, %v3256_v47  ;;  %v8236_v29 = vadd.f32 %v3221_v5, %v2979_v12  ;;  %v3260_v60 = vpop.f32.mrf.mxu3  ;;  %v3633_v47 = vshll.u32 %v8242_v2, 16  ;;  %v9016_v31 = vld [vmem:[#allocation54_spill] sm:$0xff] }
 0x32d   : > { %v3261_v30 = vadd.f32 %v3260_v60, %v9014_v44  ;;  %v2981_v57 = vpop.f32.mrf.mxu1  ;;  %v9017_v44 = vld [vmem:[#allocation31_spill] sm:$0xff] }
 0x32e   : > { %v2982_v18 = vadd.f32 %v2981_v57, %v8141_v8  ;;  %v3635_v22 = vrot.slane %v3633_v47, 1 }
 0x330   : > { %4154 = vmatmul.bf16.gmra.mxu1 %v3845_v50  ;;  %4253 = vmatmul.bf16.gmra.mxu2 %v3847_v25  ;;  %v3631_v50 = vor.u32 %v3629_v27, %v3627_v16  ;;  %v6081_v25 = vld [vmem:[#allocation9 + $0x10] sm:$0xff] }
 0x331   : > { %3302 = vmatmul.bf16.gmra.mxu3 %v9015_v61  ;;  %4757 = vmatpush.bf16.msrb.mxu0 %v6081_v25 }
 0x332   : > { %v3636_v39 = vsel %vm2068_vm3, %v3631_v50, %v3635_v22 }
 0x333   : > { %v3357_v11 = vpop.f32.mrf.mxu0  ;;  %v3224_v12 = vpop.f32.mrf.mxu2 }
 0x334   : > { %v8246_v62 = vadd.f32 %v3357_v11, %v3259_v19  ;;  %v8248_v14 = vadd.f32 %v3224_v12, %v2982_v18  ;;  %v3263_v8 = vpop.f32.mrf.mxu3  ;;  %v3850_v11 = vrot.slane %v8220_v13, 2  ;;  %v3852_v12 = vrot.slane %v3636_v39, 2  ;;  %v9018_v13 = vld [vmem:[#allocation36_spill] sm:$0xff] }
 0x335   : > { %v3264_v5 = vadd.f32 %v3263_v8, %v9016_v31  ;;  %v2983_v60 = vpop.f32.mrf.mxu1  ;;  %4758 = vmatpush.bf16.msrb.mxu0 %v6080_v3 }
 0x336   : > { %3396 = vmatmul.bf16.gmra.mxu0 %v9017_v44  ;;  %v2984_v57 = vadd.f32 %v2983_v60, %v8150_v53  ;;  %v3851_v16 = vsel %vm1039_vm1, %v3844_v51, %v3850_v11  ;;  %v3853_v27 = vsel %vm1039_vm1, %v3846_v34, %v3852_v12  ;;  %v8264_v60 = vld [vmem:[#allocation2 + $0x50] sm:$0xff] }
 0x33b   : > { %v3359_v19 = vpop.f32.mrf.mxu0  ;;  %v3226_v61 = vpop.f32.mrf.mxu2 }
 0x33c   : > { %v8255_v18 = vadd.f32 %v3359_v19, %v3261_v30  ;;  %v8258_v47 = vadd.f32 %v3226_v61, %v2984_v57  ;;  %v3265_v8 = vpop.f32.mrf.mxu3  ;;  %v3641_v30 = vshll.u32 %v8264_v60, 16  ;;  %v9019_v61 = vld [vmem:[#allocation34_spill] sm:$0xff] }
 0x33d   : > { %v3266_v31 = vadd.f32 %v3265_v8, %v8019_v59  ;;  %v2986_v44 = vpop.f32.mrf.mxu1 }
 0x33e   : > { %v2987_v53 = vadd.f32 %v2986_v44, %v8162_v42  ;;  %v3637_v42 = vshrl.u32 %v8242_v2, 16  ;;  %v3643_v51 = vrot.slane %v3641_v30, 1 }
 0x340   : > { %4159 = vmatmul.bf16.gmra.mxu1 %v3851_v16  ;;  %4258 = vmatmul.bf16.gmra.mxu2 %v3853_v27  ;;  %v3639_v44 = vor.u32 %v3637_v42, %v3635_v22  ;;  %v8286_v42 = vld [vmem:[#allocation2 + $0x58] sm:$0xff] }
 0x341   : > { %3307 = vmatmul.bf16.gmra.mxu3 %v9018_v13 }
 0x342   : > { %v3644_v16 = vsel %vm2068_vm3, %v3639_v44, %v3643_v51 }
 0x343   : > { %v3362_v57 = vpop.f32.mrf.mxu0  ;;  %v3229_v50 = vpop.f32.mrf.mxu2 }
 0x344   : > { %v8268_v25 = vadd.f32 %v3362_v57, %v3264_v5  ;;  %v8270_v59 = vadd.f32 %v3229_v50, %v2987_v53  ;;  %v3268_v39 = vpop.f32.mrf.mxu3  ;;  %v3856_v53 = vrot.slane %v8242_v2, 2  ;;  %v3858_v57 = vrot.slane %v3644_v16, 2  ;;  %v9020_v2 = vld [vmem:[#allocation39_spill] sm:$0xff] }
 0x345   : > { %v3269_v34 = vadd.f32 %v3268_v39, %v8036_v37  ;;  %v2988_v19 = vpop.f32.mrf.mxu1 }
 0x346   : > { %3401 = vmatmul.bf16.gmra.mxu0 %v9019_v61  ;;  %v2989_v8 = vadd.f32 %v2988_v19, %v8170_v46  ;;  %v3857_v46 = vsel %vm1039_vm1, %v3850_v11, %v3856_v53  ;;  %v3859_v22 = vsel %vm1039_vm1, %v3852_v12, %v3858_v57 }
 0x34b   : > { %v3364_v27 = vpop.f32.mrf.mxu0  ;;  %v3231_v13 = vpop.f32.mrf.mxu2 }
 0x34c   : > { %v8277_v5 = vadd.f32 %v3364_v27, %v3266_v31  ;;  %v8280_v50 = vadd.f32 %v3231_v13, %v2989_v8  ;;  %v3270_v30 = vpop.f32.mrf.mxu3  ;;  %v3649_v31 = vshll.u32 %v8286_v42, 16  ;;  %v9021_v13 = vld [vmem:[#allocation37_spill] sm:$0xff] }
 0x34d   : > { %v3271_v37 = vadd.f32 %v3270_v30, %v8049_v38  ;;  %v2991_v39 = vpop.f32.mrf.mxu1  ;;  %v6054_v30 = vld [vmem:[#allocation8 + $0x208] sm:$0xff] }
 0x34e   : > { %v2992_v61 = vadd.f32 %v2991_v39, %v8182_v1  ;;  %v3645_v1 = vshrl.u32 %v8264_v60, 16  ;;  %v3651_v11 = vrot.slane %v3649_v31, 1  ;;  %4330 = vmatpush.bf16.msrb.mxu3 %v6054_v30 }
 0x350   : > { %4164 = vmatmul.bf16.gmra.mxu1 %v3857_v46  ;;  %4263 = vmatmul.bf16.gmra.mxu2 %v3859_v22  ;;  %v3647_v46 = vor.u32 %v3645_v1, %v3643_v51 }
 0x351   : > { %3312 = vmatmul.bf16.gmra.mxu3 %v9020_v2 }
 0x352   : > { %v3652_v22 = vsel %vm2068_vm3, %v3647_v46, %v3651_v11 }
 0x353   : > { %v3367_v19 = vpop.f32.mrf.mxu0  ;;  %v3234_v8 = vpop.f32.mrf.mxu2 }
 0x354   : > { %v8290_v44 = vadd.f32 %v3367_v19, %v3269_v34  ;;  %v8292_v38 = vadd.f32 %v3234_v8, %v2992_v61  ;;  %v3273_v16 = vpop.f32.mrf.mxu3  ;;  %v3862_v19 = vrot.slane %v8264_v60, 2  ;;  %v3864_v8 = vrot.slane %v3652_v22, 2 }
 0x355   : > { %v3274_v12 = vadd.f32 %v3273_v16, %v8057_v49  ;;  %v2993_v27 = vpop.f32.mrf.mxu1 }
 0x356   : > { %3406 = vmatmul.bf16.gmra.mxu0 %v9021_v13  ;;  %v2994_v39 = vadd.f32 %v2993_v27, %v8190_v0  ;;  %v3863_v51 = vsel %vm1039_vm1, %v3856_v53, %v3862_v19  ;;  %v3865_v1 = vsel %vm1039_vm1, %v3858_v57, %v3864_v8  ;;  %v9022_v27 = vld [vmem:[#allocation41_spill] sm:$0xff]  ;;  %v3653_v53 = vshrl.u32 %v8286_v42, 16 }
 0x35b   : > { %v3369_v34 = vpop.f32.mrf.mxu0  ;;  %v3236_v2 = vpop.f32.mrf.mxu2 }
 0x35c   : > { %v8299_v61 = vadd.f32 %v3369_v34, %v3271_v37  ;;  %v8302_v31 = vadd.f32 %v3236_v2, %v2994_v39  ;;  %v3275_v49 = vpop.f32.mrf.mxu3  ;;  %v8308_v37 = vld [vmem:[#allocation2 + $0x60] sm:$0xff]  ;;  %v3655_v2 = vor.u32 %v3653_v53, %v3651_v11  ;;  %v8329_v11 = vld [vmem:[#allocation2 + $0x68] sm:$0xff] }
 0x35d   : > { %v3276_v16 = vadd.f32 %v3275_v49, %v8064_v36  ;;  %v2996_v13 = vpop.f32.mrf.mxu1  ;;  %v3657_v60 = vshll.u32 %v8308_v37, 16 }
 0x35e   : > { %v2997_v0 = vadd.f32 %v2996_v13, %v8202_v9 }
 0x35f   : > { %v3659_v22 = vrot.slane %v3657_v60, 1 }
 0x360   : > { %4169 = vmatmul.bf16.gmra.mxu1 %v3863_v51  ;;  %4268 = vmatmul.bf16.gmra.mxu2 %v3865_v1 }
 0x361   : > { %3317 = vmatmul.bf16.gmra.mxu3 %v9022_v27  ;;  %v3660_v49 = vsel %vm2068_vm3, %v3655_v2, %v3659_v22 }
 0x362   : > { %v3870_v1 = vrot.slane %v3660_v49, 2  ;;  %v6053_v49 = vld [vmem:[#allocation8 + $0x200] sm:$0xff] }
 0x363   : > { %v3372_v30 = vpop.f32.mrf.mxu0  ;;  %v3239_v39 = vpop.f32.mrf.mxu2  ;;  %4331 = vmatpush.bf16.msrb.mxu3 %v6053_v49 }
 0x364   : > { %v8312_v36 = vadd.f32 %v3372_v30, %v3274_v12  ;;  %v8314_v46 = vadd.f32 %v3239_v39, %v2997_v0  ;;  %v3278_v9 = vpop.f32.mrf.mxu3  ;;  %v3868_v0 = vrot.slane %v8286_v42, 2  ;;  %v9023_v39 = vld [vmem:[#allocation43_spill] sm:$0xff] }
 0x365   : > { %v3279_v3 = vadd.f32 %v3278_v9, %v8075_v43  ;;  %v2998_v57 = vpop.f32.mrf.mxu1 }
 0x366   : > { %3411 = vmatmul.bf16.gmra.mxu0 %v7655_v58  ;;  %v2999_v34 = vadd.f32 %v2998_v57, %v8211_v40  ;;  %v3869_v58 = vsel %vm1039_vm1, %v3862_v19, %v3868_v0  ;;  %v3871_v40 = vsel %vm1039_vm1, %v3864_v8, %v3870_v1 }
 0x36b   : > { %v3374_v13 = vpop.f32.mrf.mxu0  ;;  %v3241_v51 = vpop.f32.mrf.mxu2 }
 0x36c   : > { %v8321_v12 = vadd.f32 %v3374_v13, %v3276_v16  ;;  %v8324_v27 = vadd.f32 %v3241_v51, %v2999_v34  ;;  %v3280_v60 = vpop.f32.mrf.mxu3  ;;  %v3665_v16 = vshll.u32 %v8329_v11, 16  ;;  %v3661_v34 = vshrl.u32 %v8308_v37, 16 }
 0x36d   : > { %v3281_v43 = vadd.f32 %v3280_v60, %v8082_v54  ;;  %v4135_v30 = vpop.f32.mrf.mxu1 }
 0x36e   : > { %v3667_v19 = vrot.slane %v3665_v16, 1  ;;  %v3663_v13 = vor.u32 %v3661_v34, %v3659_v22 }
 0x370   : > { %4174 = vmatmul.bf16.gmra.mxu1 %v3869_v58  ;;  %4273 = vmatmul.bf16.gmra.mxu2 %v3871_v40  ;;  %v3668_v51 = vsel %vm2068_vm3, %v3663_v13, %v3667_v19 }
 0x371   : > { %3322 = vmatmul.bf16.gmra.mxu3 %v9023_v39  ;;  %v3876_v40 = vrot.slane %v3668_v51, 2 }
 0x373   : > { %v3377_v42 = vpop.f32.mrf.mxu0  ;;  %v4234_v53 = vpop.f32.mrf.mxu2  ;;  %v3877_v22 = vsel %vm1039_vm1, %v3870_v1, %v3876_v40 }
 0x374   : > { %v8333_v9 = vadd.f32 %v3377_v42, %v3279_v3  ;;  %v8335_v57 = vadd.f32 %v4234_v53, %v4135_v30  ;;  %v3283_v54 = vpop.f32.mrf.mxu3  ;;  %v3874_v30 = vrot.slane %v8308_v37, 2  ;;  %v8349_v53 = vld [vmem:[#allocation2 + $0x70] sm:$0xff] }
 0x375   : > { %v3284_v8 = vadd.f32 %v3283_v54, %v8090_v23  ;;  %v4137_v2 = vpop.f32.mrf.mxu1  ;;  %v9024_v54 = vld [vmem:[#allocation45_spill] sm:$0xff]  ;;  %v6079_v37 = vld [vmem:[#allocation9] sm:$0xff] }
 0x376   : > { %3416 = vmatmul.bf16.gmra.mxu0 %v7719_v4  ;;  %v3875_v4 = vsel %vm1039_vm1, %v3868_v0, %v3874_v30  ;;  %v3669_v0 = vshrl.u32 %v8329_v11, 16 }
 0x377   : > { %4759 = vmatpush.bf16.msrb.mxu0 %v6079_v37 }
 0x37b   : > { %v3379_v60 = vpop.f32.mrf.mxu0  ;;  %v4236_v58 = vpop.f32.mrf.mxu2 }
 0x37c   : > { %v8341_v3 = vadd.f32 %v3379_v60, %v3281_v43  ;;  %v8344_v39 = vadd.f32 %v4236_v58, %v4137_v2  ;;  %v3285_v16 = vpop.f32.mrf.mxu3  ;;  %v3673_v43 = vshll.u32 %v8349_v53, 16  ;;  %v3671_v58 = vor.u32 %v3669_v0, %v3667_v19  ;;  %v8369_v19 = vld [vmem:[#allocation2 + $0x78] sm:$0xff] }
 0x37d   : > { %v3286_v23 = vadd.f32 %v3285_v16, %v8097_v15  ;;  %v4140_v42 = vpop.f32.mrf.mxu1 }
 0x37e   : > { %v3675_v1 = vrot.slane %v3673_v43, 1 }
 0x380   : > { %4179 = vmatmul.bf16.gmra.mxu1 %v3875_v4  ;;  %4278 = vmatmul.bf16.gmra.mxu2 %v3877_v22  ;;  %v3676_v16 = vsel %vm2068_vm3, %v3671_v58, %v3675_v1 }
 0x381   : > { %3327 = vmatmul.bf16.gmra.mxu3 %v9024_v54  ;;  %v3880_v54 = vrot.slane %v8329_v11, 2  ;;  %v9026_v11 = vld [vmem:[#allocation48_spill] sm:$0xff] }
 0x383   : > { %v3382_v34 = vpop.f32.mrf.mxu0  ;;  %v4239_v49 = vpop.f32.mrf.mxu2 }
 0x384   : > { %v8353_v2 = vadd.f32 %v3382_v34, %v3284_v8  ;;  %v8355_v15 = vadd.f32 %v4239_v49, %v4140_v42  ;;  %v3288_v13 = vpop.f32.mrf.mxu3  ;;  %v3882_v42 = vrot.slane %v3676_v16, 2 }
 0x385   : > { %v3289_v51 = vadd.f32 %v3288_v13, %v8107_v26  ;;  %v4142_v60 = vpop.f32.mrf.mxu1  ;;  %v1955_v26 = vld [vmem:[#allocation2 + $0x90] sm:$0x1]  ;;  %v3881_v13 = vsel %vm1039_vm1, %v3874_v30, %v3880_v54  ;;  %v3677_v30 = vshrl.u32 %v8349_v53, 16 }
 0x386   : > { %3421 = vmatmul.bf16.gmra.mxu0 %v7781_v56  ;;  %v3883_v56 = vsel %vm1039_vm1, %v3876_v40, %v3882_v42  ;;  %v2066_v0 = vunpack.c.l.b16 %v1955_v26 }
 0x388   : > { %v2067_v40 = vpack.c.b16 %v2066_v0, %v2066_v0 }
 0x38b   : > { %v3384_v4 = vpop.f32.mrf.mxu0  ;;  %v4241_v8 = vpop.f32.mrf.mxu2 }
 0x38c   : > { %v8361_v22 = vadd.f32 %v3384_v4, %v3286_v23  ;;  %v8364_v37 = vadd.f32 %v4241_v8, %v4142_v60  ;;  %v3290_v34 = vpop.f32.mrf.mxu3  ;;  %v3681_v23 = vshll.u32 %v8369_v19, 16 }
 0x38d   : > { %v3291_v43 = vadd.f32 %v3290_v34, %v8113_v21  ;;  %v4145_v49 = vpop.f32.mrf.mxu1 }
 0x38e   : > { %9025 = vst [vmem:[#allocation20_spill] sm:$0xff] %v8361_v22  ;;  %v3683_v8 = vrot.slane %v3681_v23, 1 }
 0x390   : > { %4184 = vmatmul.bf16.gmra.mxu1 %v3881_v13  ;;  %4283 = vmatmul.bf16.gmra.mxu2 %v3883_v56  ;;  %v3679_v56 = vor.u32 %v3677_v30, %v3675_v1  ;;  %v9029_v30 = vld [vmem:[#allocation49_spill] sm:$0xff] }
 0x391   : > { %3332 = vmatmul.bf16.gmra.mxu3 %v9026_v11  ;;  %v2213_v11 = vshll.u32 %v2067_v40, 16 }
 0x392   : > { %v3684_v26 = vsel %vm2068_vm3, %v3679_v56, %v3683_v8 }
 0x393   : > { %v3387_v60 = vpop.f32.mrf.mxu0  ;;  %v4244_v16 = vpop.f32.mrf.mxu2  ;;  %v2215_v0 = vrot.slane %v2213_v11, 1 }
 0x394   : > { %v8373_v58 = vadd.f32 %v3387_v60, %v3289_v51  ;;  %v8375_v21 = vadd.f32 %v4244_v16, %v4145_v49  ;;  %v3293_v4 = vpop.f32.mrf.mxu3  ;;  %v3886_v49 = vrot.slane %v8349_v53, 2  ;;  %v3888_v16 = vrot.slane %v3684_v26, 2 }
 0x395   : > { %v3294_v34 = vadd.f32 %v3293_v4, %v8121_v52  ;;  %v4147_v13 = vpop.f32.mrf.mxu1 }
 0x396   : > { %9027 = vst [vmem:[#allocation17_spill] sm:$0xff] %v8373_v58  ;;  %3426 = vmatmul.bf16.gmra.mxu0 %v7847_v6  ;;  %v3887_v6 = vsel %vm1039_vm1, %v3880_v54, %v3886_v49  ;;  %v3889_v1 = vsel %vm1039_vm1, %v3882_v42, %v3888_v16  ;;  %v3685_v54 = vshrl.u32 %v8369_v19, 16 }
 0x39b   : > { %v3389_v22 = vpop.f32.mrf.mxu0  ;;  %v4246_v60 = vpop.f32.mrf.mxu2 }
 0x39c   : > { %v8381_v51 = vadd.f32 %v3389_v22, %v3291_v43  ;;  %v8384_v58 = vadd.f32 %v4246_v60, %v4147_v13  ;;  %v3295_v23 = vpop.f32.mrf.mxu3  ;;  %v2216_v22 = vsel %vm2068_vm3, %v9029_v30, %v2215_v0  ;;  %v8391_v43 = vld [vmem:[#allocation2 + $0x80] sm:$0xff]  ;;  %v3687_v0 = vor.u32 %v3685_v54, %v3683_v8 }
 0x39d   : > { %v3296_v52 = vadd.f32 %v3295_v23, %v8127_v24  ;;  %v4150_v4 = vpop.f32.mrf.mxu1  ;;  %v3689_v53 = vshll.u32 %v8391_v43, 16  ;;  %v2273_v8 = vrot.slane %v2067_v40, 1  ;;  %v3693_v40 = vshrl.u32 %v8391_v43, 16 }
 0x39e   : > { %9028 = vst [vmem:[#allocation23_spill] sm:$0xff] %v8381_v51 }
 0x39f   : > { %v3691_v42 = vrot.slane %v3689_v53, 1 }
 0x3a0   : > { %4189 = vmatmul.bf16.gmra.mxu1 %v3887_v6  ;;  %4288 = vmatmul.bf16.gmra.mxu2 %v3889_v1 }
 0x3a1   : > { %3337 = vmatmul.bf16.gmra.mxu3 %v2216_v22  ;;  %v3692_v6 = vsel %vm2068_vm3, %v3687_v0, %v3691_v42  ;;  %v3892_v22 = vrot.slane %v8369_v19, 2 }
 0x3a3   : > { %v3392_v13 = vpop.f32.mrf.mxu0  ;;  %v4249_v26 = vpop.f32.mrf.mxu2 }
 0x3a4   : > { %v8394_v56 = vadd.f32 %v3392_v13, %v3294_v34  ;;  %v8396_v24 = vadd.f32 %v4249_v26, %v4150_v4  ;;  %v3298_v11 = vpop.f32.mrf.mxu3  ;;  %v3894_v4 = vrot.slane %v3692_v6, 2 }
 0x3a5   : > { %v3299_v60 = vadd.f32 %v3298_v11, %v8143_v33  ;;  %v4152_v23 = vpop.f32.mrf.mxu1  ;;  %v3893_v33 = vsel %vm1039_vm1, %v3886_v49, %v3892_v22  ;;  %v9032_v11 = vld [vmem:[#allocation16_spill] sm:$0xff] }
 0x3a6   : > { %9030 = vst [vmem:[#allocation19_spill] sm:$0xff] %v8394_v56  ;;  %3431 = vmatmul.bf16.gmra.mxu0 %v7920_v55  ;;  %v3895_v55 = vsel %vm1039_vm1, %v3888_v16, %v3894_v4  ;;  %v9034_v16 = vld [vmem:[#allocation47_spill] sm:$0xff] }
 0x3a7   : > { %v2274_v6 = vsel %vm516_vm0, %v9034_v16, %v2273_v8  ;;  %v3898_v8 = vrot.slane %v8391_v43, 2 }
 0x3ab   : > { %v3394_v1 = vpop.f32.mrf.mxu0  ;;  %v4251_v34 = vpop.f32.mrf.mxu2 }
 0x3ac   : > { %v8402_v30 = vadd.f32 %v3394_v1, %v3296_v52  ;;  %v8405_v13 = vadd.f32 %v4251_v34, %v4152_v23  ;;  %v3300_v26 = vpop.f32.mrf.mxu3  ;;  %v8410_v52 = vld [vmem:[#allocation2 + $0x88] sm:$0xff] }
 0x3ad   : > { %v3301_v53 = vadd.f32 %v3300_v26, %v8153_v20  ;;  %v4155_v56 = vpop.f32.mrf.mxu1  ;;  %v3697_v19 = vshll.u32 %v8410_v52, 16  ;;  %v3695_v26 = vor.u32 %v3693_v40, %v3691_v42 }
 0x3ae   : > { %9031 = vst [vmem:[#allocation25_spill] sm:$0xff] %v8402_v30 }
 0x3af   : > { %v3699_v1 = vrot.slane %v3697_v19, 1 }
 0x3b0   : > { %4194 = vmatmul.bf16.gmra.mxu1 %v3893_v33  ;;  %4293 = vmatmul.bf16.gmra.mxu2 %v3895_v55  ;;  %v5790_v55 = vld [vmem:[%s6729_s5 + $0x8] sm:$0xe] }
 0x3b1   : > { %4332 = vmatmul.bf16.vlgmr.msrb.gmra.mxu3 %v9032_v11  ;;  %v6061_v11 = vld [vmem:[%s6729_s5 + $0x8] sm:$0xf0] }
 0x3b3   : > { %v3397_v54 = vpop.f32.mrf.mxu0  ;;  %v4254_v20 = vpop.f32.mrf.mxu2 }
 0x3b4   : > { %v8414_v23 = vadd.f32 %v3397_v54, %v3299_v60  ;;  %v8416_v0 = vadd.f32 %v4254_v20, %v4155_v56  ;;  %v3303_v49 = vpop.f32.mrf.mxu3  ;;  %v3700_v60 = vsel %vm2068_vm3, %v3695_v26, %v3699_v1  ;;  %v5791_v56 = vor.u32 %v6061_v11, %v5790_v55  ;;  %v8434_v26 = vld [vmem:[#allocation2 + $0x90] sm:$0xff]  ;;  %v9036_v55 = vld [vmem:[#allocation18_spill] sm:$0xff] }
 0x3b5   : > { %v3304_v34 = vadd.f32 %v3303_v49, %v8164_v48  ;;  %v4157_v33 = vpop.f32.mrf.mxu1  ;;  %v3900_v16 = vrot.slane %v3700_v60, 2 }
 0x3b6   : > { %9033 = vst [vmem:[#allocation22_spill] sm:$0xff] %v8414_v23  ;;  %3436 = vmatmul.bf16.gmra.mxu0 %v2274_v6  ;;  %v6062_v23 = vld [vmem:[%s6729_s5 + $0x10] sm:$0xff]  ;;  %v4649_v42 = vrot.slane %v5791_v56, 1  ;;  %v3899_v6 = vsel %vm1039_vm1, %v3892_v22, %v3898_v8 }
 0x3b7   : > { %v4650_v49 = vrot.slane %v6062_v23, 1  ;;  %v3901_v40 = vsel %vm1039_vm1, %v3894_v4, %v3900_v16  ;;  %v3701_v4 = vshrl.u32 %v8410_v52, 16 }
 0x3b9   : > { %v3703_v56 = vor.u32 %v3701_v4, %v3699_v1 }
 0x3bb   : > { %v3399_v54 = vpop.f32.mrf.mxu0  ;;  %v4256_v30 = vpop.f32.mrf.mxu2 }
 0x3bc   : > { %v8426_v20 = vadd.f32 %v3399_v54, %v3301_v53  ;;  %v8429_v51 = vadd.f32 %v4256_v30, %v4157_v33  ;;  %v3305_v19 = vpop.f32.mrf.mxu3  ;;  %v3705_v53 = vshll.u32 %v8434_v26, 16  ;;  %v4651_v33 = vsel %vm516_vm0, %v4649_v42, %v4650_v49 }
 0x3bd   : > { %v3306_v48 = vadd.f32 %v3305_v19, %v8173_v28  ;;  %v4160_v43 = vpop.f32.mrf.mxu1  ;;  %v3904_v42 = vrot.slane %v8410_v52, 2 }
 0x3be   : > { %9035 = vst [vmem:[#allocation26_spill] sm:$0xff] %v8426_v20  ;;  %v3707_v60 = vrot.slane %v3705_v53, 1 }
 0x3c0   : > { %4199 = vmatmul.bf16.gmra.mxu1 %v3899_v6  ;;  %4298 = vmatmul.bf16.gmra.mxu2 %v3901_v40  ;;  %v3708_v19 = vsel %vm2068_vm3, %v3703_v56, %v3707_v60  ;;  %v6063_v40 = vld [vmem:[%s6729_s5 + $0x18] sm:$0xff] }
 0x3c1   : > { %4337 = vmatmul.bf16.gmra.mxu3 %v9036_v55 }
 0x3c3   : > { %v3402_v30 = vpop.f32.mrf.mxu0  ;;  %v4259_v23 = vpop.f32.mrf.mxu2 }
 0x3c4   : > { %v8439_v28 = vadd.f32 %v3402_v30, %v3304_v34  ;;  %v8441_v11 = vadd.f32 %v4259_v23, %v4160_v43  ;;  %v3308_v22 = vpop.f32.mrf.mxu3  ;;  %v3906_v43 = vrot.slane %v3708_v19, 2  ;;  %v3709_v19 = vshrl.u32 %v8434_v26, 16 }
 0x3c5   : > { %v3309_v54 = vadd.f32 %v3308_v22, %v8184_v17  ;;  %v4162_v55 = vpop.f32.mrf.mxu1  ;;  %v3905_v17 = vsel %vm1039_vm1, %v3898_v8, %v3904_v42  ;;  %v9038_v22 = vld [vmem:[#allocation21_spill] sm:$0xff] }
 0x3c6   : > { %9037 = vst [vmem:[#allocation30_spill] sm:$0xff] %v8439_v28  ;;  %4760 = vmatmul.bf16.vlgmr.msrb.gmra.mxu0 %v4651_v33  ;;  %v4652_v28 = vrot.slane %v6063_v40, 1  ;;  %v3907_v1 = vsel %vm1039_vm1, %v3900_v16, %v3906_v43  ;;  %v8455_v33 = vld [vmem:[#allocation2 + $0x98] sm:$0xff] }
 0x3c8   : > { %v4653_v4 = vsel %vm516_vm0, %v4650_v49, %v4652_v28 }
 0x3cb   : > { %v3404_v6 = vpop.f32.mrf.mxu0  ;;  %v4261_v34 = vpop.f32.mrf.mxu2 }
 0x3cc   : > { %v8447_v20 = vadd.f32 %v3404_v6, %v3306_v48  ;;  %v8450_v30 = vadd.f32 %v4261_v34, %v4162_v55  ;;  %v3310_v23 = vpop.f32.mrf.mxu3  ;;  %v3713_v48 = vshll.u32 %v8455_v33, 16  ;;  %v3711_v6 = vor.u32 %v3709_v19, %v3707_v60  ;;  %v6064_v34 = vld [vmem:[%s6729_s5 + $0x20] sm:$0xff] }
 0x3cd   : > { %v3311_v53 = vadd.f32 %v3310_v23, %v8193_v41 }
 0x3ce   : > { %v3715_v8 = vrot.slane %v3713_v48, 1 }
 0x3d0   : > { %4204 = vmatmul.bf16.gmra.mxu1 %v3905_v17  ;;  %4303 = vmatmul.bf16.gmra.mxu2 %v3907_v1  ;;  %v3716_v40 = vsel %vm2068_vm3, %v3711_v6, %v3715_v8  ;;  %v3910_v17 = vrot.slane %v8434_v26, 2  ;;  %v3717_v26 = vshrl.u32 %v8455_v33, 16 }
 0x3d1   : > { %4342 = vmatmul.bf16.gmra.mxu3 %v9038_v22  ;;  %v3912_v1 = vrot.slane %v3716_v40, 2  ;;  %v4654_v22 = vrot.slane %v6064_v34, 1  ;;  %v6065_v34 = vld [vmem:[%s6729_s5 + $0x28] sm:$0xff] }
 0x3d2   : > { %v3719_v6 = vor.u32 %v3717_v26, %v3715_v8 }
 0x3d3   : > { %v3407_v52 = vpop.f32.mrf.mxu0  ;;  %v3913_v48 = vsel %vm1039_vm1, %v3906_v43, %v3912_v1 }
 0x3d4   : > { %v8460_v56 = vadd.f32 %v3407_v52, %v3309_v54  ;;  %v3313_v41 = vpop.f32.mrf.mxu3  ;;  %v3911_v52 = vsel %vm1039_vm1, %v3904_v42, %v3910_v17 }
 0x3d5   : > { %v3314_v16 = vadd.f32 %v3313_v41, %v8204_v63  ;;  %v9039_v63 = vld [vmem:[#allocation52_spill] sm:$0xff]  ;;  %v4655_v41 = vsel %vm516_vm0, %v4652_v28, %v4654_v22 }
 0x3d6   : > { %4765 = vmatmul.bf16.gmra.mxu0 %v4653_v4  ;;  %v3721_v60 = vshll.u32 %v9039_v63, 16  ;;  %v9040_v4 = vld [vmem:[#allocation24_spill] sm:$0xff] }
 0x3d8   : > { %v3723_v40 = vrot.slane %v3721_v60, 1  ;;  %v9041_v60 = vld [vmem:[#allocation28_spill] sm:$0xff] }
 0x3da   : > { %v3724_v43 = vsel %vm2068_vm3, %v3719_v6, %v3723_v40 }
 0x3db   : > { %v3409_v55 = vpop.f32.mrf.mxu0 }
 0x3dc   : > { %v8466_v23 = vadd.f32 %v3409_v55, %v3311_v53  ;;  %v3315_v49 = vpop.f32.mrf.mxu3 }
 0x3dd   : > { %v3316_v54 = vadd.f32 %v3315_v49, %v8214_v32 }
 0x3e0   : > { %4209 = vmatmul.bf16.gmra.mxu1 %v3911_v52  ;;  %4308 = vmatmul.bf16.gmra.mxu2 %v3913_v48  ;;  %v3916_v52 = vrot.slane %v8455_v33, 2  ;;  %v3918_v48 = vrot.slane %v3724_v43, 2 }
 0x3e1   : > { %4347 = vmatmul.bf16.gmra.mxu3 %v9040_v4 }
 0x3e2   : > { %v3919_v8 = vsel %vm1039_vm1, %v3912_v1, %v3918_v48 }
 0x3e3   : > { %v3412_v53 = vpop.f32.mrf.mxu0 }
 0x3e4   : > { %v8476_v19 = vadd.f32 %v3412_v53, %v3314_v16  ;;  %v3318_v32 = vpop.f32.mrf.mxu3  ;;  %v4656_v16 = vrot.slane %v6065_v34, 1  ;;  %v3917_v53 = vsel %vm1039_vm1, %v3910_v17, %v3916_v52 }
 0x3e5   : > { %v3319_v42 = vadd.f32 %v3318_v32, %v8226_v7  ;;  %v3478_v7 = vld [vmem:[#allocation2 + $0xa0] sm:$0x3]  ;;  %v3725_v32 = vshrl.u32 %v9039_v63, 16 }
 0x3e6   : > { %4770 = vmatmul.bf16.gmra.mxu0 %v4655_v41  ;;  %v3554_v33 = vunpack.c.l.b16 %v3478_v7 }
 0x3e7   : > { %v3727_v1 = vor.u32 %v3725_v32, %v3723_v40 }
 0x3e8   : > { %v3573_v17 = vpack.c.b16 %v3554_v33, %v3554_v33  ;;  %v6067_v33 = vld [vmem:[%s6729_s5 + $0x38] sm:$0xff] }
 0x3eb   : > { %v3414_v55 = vpop.f32.mrf.mxu0 }
 0x3ec   : > { %v8481_v49 = vadd.f32 %v3414_v55, %v3316_v54  ;;  %v3320_v28 = vpop.f32.mrf.mxu3  ;;  %v4657_v54 = vsel %vm516_vm0, %v4654_v22, %v4656_v16  ;;  %v6066_v55 = vld [vmem:[%s6729_s5 + $0x30] sm:$0xff] }
 0x3ed   : > { %v3321_v4 = vadd.f32 %v3320_v28, %v8236_v29  ;;  %v3922_v28 = vrot.slane %v3573_v17, 2  ;;  %v9043_v17 = vld [vmem:[#allocation32_spill] sm:$0xff] }
 0x3ef   : > { %v3923_v7 = vsel %vm1039_vm1, %v3916_v52, %v3922_v28  ;;  %v6068_v28 = vld [vmem:[%s6729_s5 + $0x40] sm:$0xff] }
 0x3f0   : > { %4214 = vmatmul.bf16.gmra.mxu1 %v3917_v53  ;;  %4313 = vmatmul.bf16.gmra.mxu2 %v3919_v8  ;;  %v3924_v53 = vrot.slane %v3727_v1, 2 }
 0x3f1   : > { %4352 = vmatmul.bf16.gmra.mxu3 %v9041_v60 }
 0x3f2   : > { %v3925_v63 = vsel %vm1039_vm1, %v3918_v48, %v3924_v53 }
 0x3f3   : > { %v3417_v41 = vpop.f32.mrf.mxu0 }
 0x3f4   : > { %v8489_v26 = vadd.f32 %v3417_v41, %v3319_v42  ;;  %v3323_v29 = vpop.f32.mrf.mxu3  ;;  %v4658_v42 = vrot.slane %v6066_v55, 1 }
 0x3f5   : > { %v3324_v6 = vadd.f32 %v3323_v29, %v8248_v14  ;;  %v9042_v14 = vld [vmem:[#allocation29_spill] sm:$0xff]  ;;  %v4660_v29 = vrot.slane %v6067_v33, 1 }
 0x3f6   : > { %4775 = vmatmul.bf16.gmra.mxu0 %v4657_v54  ;;  %v4659_v60 = vsel %vm516_vm0, %v4656_v16, %v4658_v42 }
 0x3f7   : > { %v4661_v16 = vsel %vm516_vm0, %v4658_v42, %v4660_v29 }
 0x3fb   : > { %v3419_v43 = vpop.f32.mrf.mxu0 }
 0x3fc   : > { %v8494_v34 = vadd.f32 %v3419_v43, %v3321_v4  ;;  %v3325_v8 = vpop.f32.mrf.mxu3 }
 0x3fd   : > { %v3326_v22 = vadd.f32 %v3325_v8, %v8258_v47 }
 0x400   : > { %4219 = vmatmul.bf16.gmra.mxu1 %v3923_v7  ;;  %4318 = vmatmul.bf16.gmra.mxu2 %v3925_v63  ;;  %v9044_v7 = vld [vmem:[#allocation35_spill] sm:$0xff] }
 0x401   : > { %4357 = vmatmul.bf16.gmra.mxu3 %v9042_v14 }
 0x403   : > { %v3422_v40 = vpop.f32.mrf.mxu0 }
 0x404   : > { %v8501_v4 = vadd.f32 %v3422_v40, %v3324_v6  ;;  %v3328_v41 = vpop.f32.mrf.mxu3 }
 0x405   : > { %v3329_v54 = vadd.f32 %v3328_v41, %v8270_v59  ;;  %v6069_v41 = vld [vmem:[%s6729_s5 + $0x48] sm:$0xff] }
 0x406   : > { %4780 = vmatmul.bf16.gmra.mxu0 %v4659_v60  ;;  %v4664_v33 = vrot.slane %v6069_v41, 1  ;;  %v6071_v41 = vld [vmem:[%s6729_s5 + $0x58] sm:$0xff] }
 0x40b   : > { %v3424_v47 = vpop.f32.mrf.mxu0 }
 0x40c   : > { %v8505_v32 = vadd.f32 %v3424_v47, %v3326_v22  ;;  %v3330_v52 = vpop.f32.mrf.mxu3  ;;  %v4662_v22 = vrot.slane %v6068_v28, 1 }
 0x40d   : > { %v3331_v48 = vadd.f32 %v3330_v52, %v8280_v50  ;;  %v9045_v52 = vld [vmem:[#allocation38_spill] sm:$0xff] }
 0x40e   : > { %v4663_v42 = vsel %vm516_vm0, %v4660_v29, %v4662_v22  ;;  %v4665_v29 = vsel %vm516_vm0, %v4662_v22, %v4664_v33  ;;  %v9046_v22 = vld [vmem:[#allocation40_spill] sm:$0xff] }
 0x411   : > { %4362 = vmatmul.bf16.gmra.mxu3 %v9043_v17 }
 0x413   : > { %v3427_v1 = vpop.f32.mrf.mxu0 }
 0x414   : > { %v8510_v6 = vadd.f32 %v3427_v1, %v3329_v54  ;;  %v3333_v43 = vpop.f32.mrf.mxu3 }
 0x415   : > { %v3334_v59 = vadd.f32 %v3333_v43, %v8292_v38 }
 0x416   : > { %4785 = vmatmul.bf16.gmra.mxu0 %v4661_v16 }
 0x41b   : > { %v3429_v55 = vpop.f32.mrf.mxu0 }
 0x41c   : > { %v8514_v53 = vadd.f32 %v3429_v55, %v3331_v48  ;;  %v3335_v8 = vpop.f32.mrf.mxu3 }
 0x41d   : > { %v3336_v50 = vadd.f32 %v3335_v8, %v8302_v31 }
 0x421   : > { %4367 = vmatmul.bf16.gmra.mxu3 %v9044_v7 }
 0x423   : > { %v3432_v63 = vpop.f32.mrf.mxu0 }
 0x424   : > { %v8519_v14 = vadd.f32 %v3432_v63, %v3334_v59  ;;  %v3338_v40 = vpop.f32.mrf.mxu3  ;;  %v6070_v59 = vld [vmem:[%s6729_s5 + $0x50] sm:$0xff] }
 0x425   : > { %v3339_v38 = vadd.f32 %v3338_v40, %v8314_v46  ;;  %v4666_v8 = vrot.slane %v6070_v59, 1 }
 0x426   : > { %4790 = vmatmul.bf16.gmra.mxu0 %v4663_v42  ;;  %v8547_v42 = vld [vmem:[%s8801_s4] ss:$0 sm:$0xff] }
 0x42b   : > { %v3434_v60 = vpop.f32.mrf.mxu0 }
 0x42c   : > { %v8523_v54 = vadd.f32 %v3434_v60, %v3336_v50  ;;  %v3340_v47 = vpop.f32.mrf.mxu3 }
 0x42d   : > { %v3341_v31 = vadd.f32 %v3340_v47, %v8324_v27 }
 0x431   : > { %4372 = vmatmul.bf16.gmra.mxu3 %v9045_v52 }
 0x433   : > { %v3437_v48 = vpop.f32.mrf.mxu0 }
 0x434   : > { %v8528_v17 = vadd.f32 %v3437_v48, %v3339_v38  ;;  %v4333_v1 = vpop.f32.mrf.mxu3 }
 0x435   : > { %v4334_v46 = vadd.f32 %v4333_v1, %v8335_v57  ;;  %v4667_v57 = vsel %vm516_vm0, %v4664_v33, %v4666_v8 }
 0x436   : > { %4795 = vmatmul.bf16.gmra.mxu0 %v4665_v29 }
 0x437   : > { %v4423_v16 = vadd.f32 %v4334_v46, %v8224_v10  ;;  %v8542_v10 = vld [vmem:[%s8803_s6] ss:$0 sm:$0xff] }
 0x439   : > { %v4463_v38 = vadd.f32 %v8547_v42, %v4423_v16  ;;  %v9047_v16 = vld [vmem:[#allocation42_spill] sm:$0xff] }
 0x43b   : > { %v3439_v43 = vpop.f32.mrf.mxu0 }
 0x43c   : > { %v8533_v55 = vadd.f32 %v3439_v43, %v3341_v31  ;;  %v4335_v28 = vpop.f32.mrf.mxu3 }
 0x43d   : > { %v4336_v27 = vadd.f32 %v4335_v28, %v8344_v39 }
 0x43f   : > { %v4424_v50 = vadd.f32 %v4336_v27, %v8233_v35 }
 0x441   : > { %4377 = vmatmul.bf16.gmra.mxu3 %v9046_v22  ;;  %v4464_v31 = vadd.f32 %v8547_v42, %v4424_v50 }
 0x443   : > { %v4761_v7 = vpop.f32.mrf.mxu0 }
 0x444   : > { %v4338_v63 = vpop.f32.mrf.mxu3  ;;  %v4762_v35 = vadd.f32 %v8542_v10, %v4761_v7 }
 0x445   : > { %v4339_v39 = vadd.f32 %v4338_v63, %v8355_v15  ;;  %v4668_v15 = vrot.slane %v6071_v41, 1 }
 0x446   : > { %4800 = vmatmul.bf16.gmra.mxu0 %v4667_v57  ;;  %v4851_v47 = vadd.f32 %v4762_v35, %v4463_v38  ;;  %v6072_v57 = vld [vmem:[%s6729_s5 + $0x60] sm:$0xff] }
 0x447   : > { %v4425_v40 = vadd.f32 %v4339_v39, %v8246_v62  ;;  %v4669_v28 = vsel %vm516_vm0, %v4666_v8, %v4668_v15 }
 0x448   : > { %v4887_v1 = vmax.f32 %v4851_v47, 0.0 }
 0x44b   : > { %v4763_v60 = vpop.f32.mrf.mxu0 }
 0x44c   : > { %v4764_v33 = vadd.f32 %v8542_v10, %v4763_v60  ;;  %v4340_v52 = vpop.f32.mrf.mxu3 }
 0x44d   : > { %v4341_v29 = vadd.f32 %v4340_v52, %v8364_v37 }
 0x44e   : > { %v4852_v48 = vadd.f32 %v4764_v33, %v4464_v31 }
 0x44f   : > { %v4426_v62 = vadd.f32 %v4341_v29, %v8255_v18  ;;  %v4465_v18 = vadd.f32 %v8547_v42, %v4425_v40  ;;  %v9048_v40 = vld [vmem:[#allocation44_spill] sm:$0xff] }
 0x450   : > { %v4888_v46 = vmax.f32 %v4852_v48, 0.0 }
 0x451   : > { %4382 = vmatmul.bf16.gmra.mxu3 %v9047_v16  ;;  %v4466_v8 = vadd.f32 %v8547_v42, %v4426_v62  ;;  %v6073_v16 = vld [vmem:[%s6729_s5 + $0x68] sm:$0xff] }
 0x452   : > { %v6102_v43 = vpack.c.bf16 %v4888_v46, %v4887_v1  ;;  %v8579_v46 = vpop.f32.mrf.mxu2 }
 0x453   : > { %v4766_v59 = vpop.f32.mrf.mxu0 }
 0x454   : > { %6103 = vst [vmem:[%s8561_s15] sm:$0xff] %v6102_v43   ;;  %v4343_v27 = vpop.f32.mrf.mxu3  ;;  %v4767_v37 = vadd.f32 %v8542_v10, %v4766_v59 }
 0x455   : > { %v4344_v50 = vadd.f32 %v4343_v27, %v8375_v21  ;;  %v4670_v21 = vrot.slane %v6072_v57, 1  ;;  %v9049_v57 = vld [vmem:[#allocation46_spill] sm:$0xff] }
 0x456   : > { %4805 = vmatmul.bf16.gmra.mxu0 %v4669_v28  ;;  %v4853_v63 = vadd.f32 %v4767_v37, %v4465_v18  ;;  %v4672_v37 = vrot.slane %v6073_v16, 1  ;;  %v9050_v16 = vld [vmem:[#allocation51_spill] sm:$0xff] }
 0x457   : > { %v4427_v22 = vadd.f32 %v4344_v50, %v8268_v25  ;;  %v4671_v52 = vsel %vm516_vm0, %v4668_v15, %v4670_v21 }
 0x458   : > { %v4889_v41 = vmax.f32 %v4853_v63, 0.0 }
 0x459   : > { %v4467_v62 = vadd.f32 %v8547_v42, %v4427_v22 }
 0x45a   : > { %v8590_v63 = vpop.f32.mrf.mxu2 }
 0x45b   : > { %v4768_v7 = vpop.f32.mrf.mxu0 }
 0x45c   : > { %v4769_v39 = vadd.f32 %v8542_v10, %v4768_v7  ;;  %v4345_v35 = vpop.f32.mrf.mxu3 }
 0x45d   : > { %v4346_v60 = vadd.f32 %v4345_v35, %v8384_v58 }
 0x45e   : > { %v4854_v38 = vadd.f32 %v4769_v39, %v4466_v8  ;;  %v4673_v39 = vsel %vm516_vm0, %v4670_v21, %v4672_v37 }
 0x45f   : > { %v4428_v25 = vadd.f32 %v4346_v60, %v8277_v5  ;;  %v8582_v5 = vpop.f32.mrf.mxu1 }
 0x460   : > { %v4890_v47 = vmax.f32 %v4854_v38, 0.0 }
 0x461   : > { %4387 = vmatmul.bf16.gmra.mxu3 %v9048_v40  ;;  %v4468_v15 = vadd.f32 %v8547_v42, %v4428_v25  ;;  %v6074_v25 = vld [vmem:[%s6729_s5 + $0x70] sm:$0xff] }
 0x462   : > { %v6107_v31 = vpack.c.bf16 %v4890_v47, %v4889_v41 }
 0x463   : > { %v4771_v33 = vpop.f32.mrf.mxu0 }
 0x464   : > { %6194 = vst [vmem:[%s8561_s15 + $0x8] sm:$0xff] %v6107_v31   ;;  %v4348_v48 = vpop.f32.mrf.mxu3  ;;  %v4772_v1 = vadd.f32 %v8542_v10, %v4771_v33  ;;  %v8603_v33 = vpop.f32.mrf.mxu2 }
 0x465   : > { %v4349_v29 = vadd.f32 %v4348_v48, %v8396_v24 }
 0x466   : > { %4810 = vmatmul.bf16.gmra.mxu0 %v4671_v52  ;;  %v4855_v59 = vadd.f32 %v4772_v1, %v4467_v62  ;;  %v4674_v1 = vrot.slane %v6074_v25, 1 }
 0x467   : > { %v4429_v58 = vadd.f32 %v4349_v29, %v8290_v44  ;;  %v8594_v35 = vpop.f32.mrf.mxu1 }
 0x468   : > { %v4891_v44 = vmax.f32 %v4855_v59, 0.0 }
 0x46b   : > { %v4773_v43 = vpop.f32.mrf.mxu0 }
 0x46c   : > { %v4774_v28 = vadd.f32 %v8542_v10, %v4773_v43  ;;  %v4350_v24 = vpop.f32.mrf.mxu3 }
 0x46d   : > { %v4351_v50 = vadd.f32 %v4350_v24, %v8405_v13 }
 0x46e   : > { %v4856_v27 = vadd.f32 %v4774_v28, %v4468_v15  ;;  %v4675_v15 = vsel %vm516_vm0, %v4672_v37, %v4674_v1 }
 0x46f   : > { %v4430_v22 = vadd.f32 %v4351_v50, %v8299_v61  ;;  %v4469_v61 = vadd.f32 %v8547_v42, %v4429_v58  ;;  %v8606_v29 = vpop.f32.mrf.mxu1 }
 0x470   : > { %v4892_v18 = vmax.f32 %v4856_v27, 0.0 }
 0x471   : > { %4392 = vmatmul.bf16.gmra.mxu3 %v9049_v57  ;;  %v4470_v40 = vadd.f32 %v8547_v42, %v4430_v22  ;;  %v6075_v22 = vld [vmem:[%s6729_s5 + $0x78] sm:$0xff] }
 0x472   : > { %v6112_v7 = vpack.c.bf16 %v4892_v18, %v4891_v44 }
 0x473   : > { %v4776_v8 = vpop.f32.mrf.mxu0 }
 0x474   : > { %6195 = vst [vmem:[%s8561_s15 + $0x10] sm:$0xff] %v6112_v7   ;;  %v4353_v38 = vpop.f32.mrf.mxu3  ;;  %v4777_v60 = vadd.f32 %v8542_v10, %v4776_v8 }
 0x475   : > { %v4354_v13 = vadd.f32 %v4353_v38, %v8416_v0  ;;  %v4676_v38 = vrot.slane %v6075_v22, 1 }
 0x476   : > { %4815 = vmatmul.bf16.gmra.mxu0 %v4673_v39  ;;  %v4857_v31 = vadd.f32 %v4777_v60, %v4469_v61 }
 0x477   : > { %v4431_v41 = vadd.f32 %v4354_v13, %v8312_v36  ;;  %v8617_v44 = vpop.f32.mrf.mxu1 }
 0x478   : > { %v4893_v36 = vmax.f32 %v4857_v31, 0.0 }
 0x47b   : > { %v4778_v47 = vpop.f32.mrf.mxu0 }
 0x47c   : > { %v4779_v21 = vadd.f32 %v8542_v10, %v4778_v47  ;;  %v4355_v52 = vpop.f32.mrf.mxu3  ;;  %v9051_v47 = vld [vmem:[#allocation53_spill] sm:$0xff] }
 0x47d   : > { %v4356_v0 = vadd.f32 %v4355_v52, %v8429_v51  ;;  %v8613_v51 = vpop.f32.mrf.mxu2 }
 0x47e   : > { %v4858_v48 = vadd.f32 %v4779_v21, %v4470_v40  ;;  %v4677_v40 = vsel %vm516_vm0, %v4674_v1, %v4676_v38 }
 0x47f   : > { %v4432_v58 = vadd.f32 %v4356_v0, %v8321_v12  ;;  %v4471_v12 = vadd.f32 %v8547_v42, %v4431_v41  ;;  %v8628_v25 = vpop.f32.mrf.mxu1  ;;  %v6076_v0 = vld [vmem:[%s6729_s5 + $0x80] sm:$0xff] }
 0x480   : > { %v4894_v62 = vmax.f32 %v4858_v48, 0.0 }
 0x481   : > { %4397 = vmatmul.bf16.gmra.mxu3 %v9050_v16  ;;  %v4472_v37 = vadd.f32 %v8547_v42, %v4432_v58 }
 0x482   : > { %v6117_v43 = vpack.c.bf16 %v4894_v62, %v4893_v36 }
 0x483   : > { %v4781_v59 = vpop.f32.mrf.mxu0 }
 0x484   : > { %6196 = vst [vmem:[%s8561_s15 + $0x18] sm:$0xff] %v6117_v43   ;;  %v4358_v28 = vpop.f32.mrf.mxu3  ;;  %v4782_v27 = vadd.f32 %v8542_v10, %v4781_v59  ;;  %v4678_v59 = vrot.slane %v6076_v0, 1 }
 0x485   : > { %v4359_v24 = vadd.f32 %v4358_v28, %v8441_v11  ;;  %v8625_v61 = vpop.f32.mrf.mxu2 }
 0x486   : > { %4820 = vmatmul.bf16.gmra.mxu0 %v4675_v15  ;;  %v4859_v7 = vadd.f32 %v4782_v27, %v4471_v12  ;;  %v4265_v15 = vadd.f32 %v8579_v46, %v8582_v5  ;;  %v4267_v27 = vadd.f32 %v8590_v63, %v8594_v35  ;;  %v4679_v22 = vsel %vm516_vm0, %v4676_v38, %v4678_v59 }
 0x487   : > { %v4433_v50 = vadd.f32 %v4359_v24, %v8333_v9  ;;  %v8639_v43 = vpop.f32.mrf.mxu1 }
 0x488   : > { %v4895_v13 = vmax.f32 %v4859_v7, 0.0 }
 0x489   : > { %v4473_v52 = vadd.f32 %v8547_v42, %v4433_v50 }
 0x48b   : > { %v4783_v18 = vpop.f32.mrf.mxu0 }
 0x48c   : > { %v4784_v57 = vadd.f32 %v8542_v10, %v4783_v18  ;;  %v4360_v11 = vpop.f32.mrf.mxu3 }
 0x48d   : > { %v4361_v39 = vadd.f32 %v4360_v11, %v8450_v30  ;;  %v8634_v48 = vpop.f32.mrf.mxu2  ;;  %v9052_v11 = vld [vmem:[#allocation20_spill] sm:$0xff] }
 0x48e   : > { %v4860_v8 = vadd.f32 %v4784_v57, %v4472_v37 }
 0x48f   : > { %v4434_v60 = vadd.f32 %v4361_v39, %v8341_v3  ;;  %v8651_v5 = vpop.f32.mrf.mxu1  ;;  %v6077_v39 = vld [vmem:[%s6729_s5 + $0x88] sm:$0xff] }
 0x490   : > { %v4896_v9 = vmax.f32 %v4860_v8, 0.0 }
 0x491   : > { %4402 = vmatmul.bf16.gmra.mxu3 %v9051_v47  ;;  %v4474_v62 = vadd.f32 %v8547_v42, %v4434_v60  ;;  %v4680_v47 = vrot.slane %v6077_v39, 1 }
 0x492   : > { %v6122_v41 = vpack.c.bf16 %v4896_v9, %v4895_v13 }
 0x493   : > { %v4786_v31 = vpop.f32.mrf.mxu0 }
 0x494   : > { %6197 = vst [vmem:[%s8561_s15 + $0x20] sm:$0xff] %v6122_v41   ;;  %v4363_v21 = vpop.f32.mrf.mxu3  ;;  %v4787_v30 = vadd.f32 %v8542_v10, %v4786_v31  ;;  %v4270_v31 = vadd.f32 %v8603_v33, %v8606_v29  ;;  %v9055_v33 = vld [vmem:[#allocation23_spill] sm:$0xff] }
 0x495   : > { %v4364_v50 = vadd.f32 %v4363_v21, %v4265_v15  ;;  %v8648_v37 = vpop.f32.mrf.mxu2  ;;  %v9054_v15 = vld [vmem:[#allocation17_spill] sm:$0xff] }
 0x496   : > { %4825 = vmatmul.bf16.gmra.mxu0 %v4677_v40  ;;  %v4861_v36 = vadd.f32 %v4787_v30, %v4473_v52  ;;  %v4272_v52 = vadd.f32 %v8613_v51, %v8617_v44 }
 0x497   : > { %v4435_v46 = vadd.f32 %v4364_v50, %v8353_v2  ;;  %v4182_v30 = vpop.f32.mrf.mxu1 }
 0x498   : > { %v4897_v28 = vmax.f32 %v4861_v36, 0.0  ;;  %v9053_v36 = vld [vmem:[#allocation55_spill] sm:$0xff] }
 0x499   : > { %v4475_v8 = vadd.f32 %v8547_v42, %v4435_v46 }
 0x49b   : > { %v4788_v3 = vpop.f32.mrf.mxu0 }
 0x49c   : > { %v4789_v58 = vadd.f32 %v8542_v10, %v4788_v3  ;;  %v4365_v1 = vpop.f32.mrf.mxu3 }
 0x49d   : > { %v4366_v7 = vadd.f32 %v4365_v1, %v4267_v27  ;;  %v8659_v2 = vpop.f32.mrf.mxu2 }
 0x49e   : > { %v4862_v16 = vadd.f32 %v4789_v58, %v4474_v62  ;;  %v4681_v58 = vsel %vm516_vm0, %v4678_v59, %v4680_v47 }
 0x49f   : > { %v4436_v63 = vadd.f32 %v4366_v7, %v9052_v11  ;;  %v8674_v44 = vpop.f32.mrf.mxu1  ;;  %v4275_v11 = vadd.f32 %v8625_v61, %v8628_v25 }
 0x4a0   : > { %v4898_v24 = vmax.f32 %v4862_v16, 0.0 }
 0x4a1   : > { %4407 = vmatmul.bf16.gmra.mxu3 %v8017_v45  ;;  %v4476_v38 = vadd.f32 %v8547_v42, %v4436_v63 }
 0x4a2   : > { %v6127_v12 = vpack.c.bf16 %v4898_v24, %v4897_v28 }
 0x4a3   : > { %v4791_v18 = vpop.f32.mrf.mxu0 }
 0x4a4   : > { %6198 = vst [vmem:[%s8561_s15 + $0x28] sm:$0xff] %v6127_v12   ;;  %v4368_v57 = vpop.f32.mrf.mxu3  ;;  %v4792_v35 = vadd.f32 %v8542_v10, %v4791_v18  ;;  %v6078_v12 = vld [vmem:[%s6729_s5 + $0x90] sm:$0xff] }
 0x4a5   : > { %v4369_v3 = vadd.f32 %v4368_v57, %v4270_v31  ;;  %v8671_v27 = vpop.f32.mrf.mxu2  ;;  %v4682_v46 = vrot.slane %v6078_v12, 1  ;;  %v4535_v31 = vld [vmem:[%s6729_s5 + $0x98] sm:$0x1]  ;;  %v4282_v12 = vadd.f32 %v8659_v2, %v4182_v30  ;;  %s5007_s5 = scalar_lea.hbm %s8804_s7, %s6242_s22 }
 0x4a6   : > { %4830 = vmatmul.bf16.gmra.mxu0 %v4679_v22  ;;  %v4863_v13 = vadd.f32 %v4792_v35, %v4475_v8  ;;  %v4277_v8 = vadd.f32 %v8634_v48, %v8639_v43  ;;  %v4629_v25 = vunpack.c.l.b16 %v4535_v31  ;;  %v4285_v31 = vadd.f32 %v8671_v27, %v8674_v44  ;;  %s5010_s12 = sshll.u32 %s5007_s5, 4  ;;  %s5011_s12 = int_to_ptr.hbm [resolvable:$true] %s5010_s12 }
 0x4a7   : > { %v4437_v28 = vadd.f32 %v4369_v3, %v9054_v15  ;;  %v9058_v3 = vld [vmem:[#allocation25_spill] sm:$0xff]  ;;  %s6494_s19 = sshra.s32 %s5011_s12, 4  ;;  %s6495_s19 = int_to_ptr.hbm [resolvable:$true] %s6494_s19 }
 0x4a8   : > { %v4899_v40 = vmax.f32 %v4863_v13, 0.0  ;;  %v9056_v13 = vld [vmem:[#allocation56_spill] sm:$0xff]  ;;  %s6496_s20 = scalar_lea.hbm %s6495_s19, 144  ;;  %p6501_p11 = scmp.lt.s32.totalorder %s6495_s19, %s8804_s7 }
 0x4a9   : > { %v4477_v51 = vadd.f32 %v8547_v42, %v4437_v28  ;;  %p6497_p1 = scmp.ne.s32.totalorder %s6495_s19, %s6496_s20  ;;  %p6502_p9 = scmp.lt.s32.totalorder %s6500_s14, %s6496_s20 }
 0x4ab   : > { %v4793_v45 = vpop.f32.mrf.mxu0  ;;  %p6498_p4 = pnand %p6497_p1, %p6696_p7  ;;  %p6503_p2 = por %p6502_p9, %p6501_p11 }
 0x4ac   : > { %v4794_v9 = vadd.f32 %v8542_v10, %v4793_v45  ;;  %v4370_v60 = vpop.f32.mrf.mxu3 }
 0x4ad   : > { %v4371_v1 = vadd.f32 %v4370_v60, %v4272_v52  ;;  %v4683_v60 = vsel %vm516_vm0, %v4680_v47, %v4682_v46  ;;  %v9057_v52 = vld [vmem:[#allocation19_spill] sm:$0xff]  ;;  %p6499_p8 = pneg %p6498_p4 }
 0x4ae   : > { %v4864_v41 = vadd.f32 %v4794_v9, %v4476_v38  ;;  %v4286_v38 = vpop.f32.mrf.mxu2 }
 0x4af   : > { %v4438_v29 = vadd.f32 %v4371_v1, %v9055_v33  ;;  %p6504_p10 = pnand %p6503_p2, %p6499_p8 }
 0x4b0   : > { %v4900_v21 = vmax.f32 %v4864_v41, 0.0 }
 0x4b1   : > { %4412 = vmatmul.bf16.gmra.mxu3 %v9053_v36  ;;  %v4478_v59 = vadd.f32 %v8547_v42, %v4438_v29 }
 0x4b2   : > { %v6132_v0 = vpack.c.bf16 %v4900_v21, %v4899_v40  ;;  %v4187_v40 = vpop.f32.mrf.mxu1 }
 0x4b3   : > { %v4796_v62 = vpop.f32.mrf.mxu0 }
 0x4b4   : > { %6199 = vst [vmem:[%s8561_s15 + $0x30] sm:$0xff] %v6132_v0   ;;  %v4373_v16 = vpop.f32.mrf.mxu3  ;;  %v4797_v24 = vadd.f32 %v8542_v10, %v4796_v62  ;;  %v4648_v62 = vpack.c.b16 %v4629_v25, %v4629_v25  ;;  %v4287_v25 = vadd.f32 %v4286_v38, %v4187_v40 }
 0x4b5   : > { %v4374_v45 = vadd.f32 %v4373_v16, %v4275_v11 }
 0x4b6   : > { %4835 = vmatmul.bf16.gmra.mxu0 %v4681_v58  ;;  %v4865_v18 = vadd.f32 %v4797_v24, %v4477_v51  ;;  %v4289_v16 = vpop.f32.mrf.mxu2  ;;  %v4684_v29 = vrot.slane %v4648_v62, 1  ;;  %v4280_v24 = vadd.f32 %v8648_v37, %v8651_v5 }
 0x4b7   : > { %v4439_v61 = vadd.f32 %v4374_v45, %v9057_v52  ;;  %v9060_v45 = vld [vmem:[#allocation26_spill] sm:$0xff] }
 0x4b8   : > { %v4901_v63 = vmax.f32 %v4865_v18, 0.0 }
 0x4b9   : > { %v4479_v43 = vadd.f32 %v8547_v42, %v4439_v61 }
 0x4ba   : > { %v4190_v33 = vpop.f32.mrf.mxu1 }
 0x4bb   : > { %v4798_v50 = vpop.f32.mrf.mxu0 }
 0x4bc   : > { %v4799_v22 = vadd.f32 %v8542_v10, %v4798_v50  ;;  %v4375_v7 = vpop.f32.mrf.mxu3 }
 0x4bd   : > { %v4376_v41 = vadd.f32 %v4375_v7, %v4277_v8  ;;  %v4685_v7 = vsel %vm516_vm0, %v4682_v46, %v4684_v29 }
 0x4be   : > { %v4866_v57 = vadd.f32 %v4799_v22, %v4478_v59  ;;  %v4291_v8 = vpop.f32.mrf.mxu2 }
 0x4bf   : > { %v4440_v0 = vadd.f32 %v4376_v41, %v9058_v3 }
 0x4c0   : > { %v4902_v35 = vmax.f32 %v4866_v57, 0.0 }
 0x4c1   : > { %4417 = vmatmul.bf16.gmra.mxu3 %v9056_v13  ;;  %v4480_v47 = vadd.f32 %v8547_v42, %v4440_v0 }
 0x4c2   : > { %v6137_v39 = vpack.c.bf16 %v4902_v35, %v4901_v63  ;;  %v9059_v63 = vld [vmem:[#allocation22_spill] sm:$0xff]  ;;  %v4192_v5 = vpop.f32.mrf.mxu1 }
 0x4c3   : > { %v4801_v9 = vpop.f32.mrf.mxu0 }
 0x4c4   : > { %6200 = vst [vmem:[%s8561_s15 + $0x38] sm:$0xff] %v6137_v39   ;;  %v4378_v21 = vpop.f32.mrf.mxu3  ;;  %v4802_v48 = vadd.f32 %v8542_v10, %v4801_v9 }
 0x4c5   : > { %v4379_v18 = vadd.f32 %v4378_v21, %v4280_v24 }
 0x4c6   : > { %4840 = vmatmul.bf16.gmra.mxu0 %v4683_v60  ;;  %v4867_v58 = vadd.f32 %v4802_v48, %v4479_v43  ;;  %v4294_v61 = vpop.f32.mrf.mxu2 }
 0x4c7   : > { %v4441_v35 = vadd.f32 %v4379_v18, %v9059_v63 }
 0x4c8   : > { %v4903_v51 = vmax.f32 %v4867_v58, 0.0  ;;  %v9061_v58 = vld [vmem:[#allocation30_spill] sm:$0xff] }
 0x4c9   : > { %v4481_v13 = vadd.f32 %v8547_v42, %v4441_v35 }
 0x4ca   : > { %v4195_v48 = vpop.f32.mrf.mxu1 }
 0x4cb   : > { %v4803_v36 = vpop.f32.mrf.mxu0 }
 0x4cc   : > { %v4804_v1 = vadd.f32 %v8542_v10, %v4803_v36  ;;  %v4380_v15 = vpop.f32.mrf.mxu3 }
 0x4cd   : > { %v4381_v57 = vadd.f32 %v4380_v15, %v4282_v12  ;;  %v4290_v12 = vadd.f32 %v4289_v16, %v4190_v33 }
 0x4ce   : > { %v4868_v28 = vadd.f32 %v4804_v1, %v4480_v47  ;;  %v4296_v27 = vpop.f32.mrf.mxu2 }
 0x4cf   : > { %v4442_v39 = vadd.f32 %v4381_v57, %v9060_v45 }
 0x4d0   : > { %v4904_v50 = vmax.f32 %v4868_v28, 0.0 }
 0x4d1   : > { %v4482_v9 = vadd.f32 %v8547_v42, %v4442_v39 }
 0x4d2   : > { %v6142_v59 = vpack.c.bf16 %v4904_v50, %v4903_v51  ;;  %v4197_v24 = vpop.f32.mrf.mxu1 }
 0x4d3   : > { %v4806_v22 = vpop.f32.mrf.mxu0 }
 0x4d4   : > { %6201 = vst [vmem:[%s8561_s15 + $0x40] sm:$0xff] %v6142_v59   ;;  %v4383_v11 = vpop.f32.mrf.mxu3  ;;  %v4807_v37 = vadd.f32 %v8542_v10, %v4806_v22  ;;  %v4292_v22 = vadd.f32 %v4291_v8, %v4192_v5 }
 0x4d5   : > { %v4384_v3 = vadd.f32 %v4383_v11, %v4285_v31 }
 0x4d6   : > { %4845 = vmatmul.bf16.gmra.mxu0 %v4685_v7  ;;  %v4869_v30 = vadd.f32 %v4807_v37, %v4481_v13  ;;  %v4299_v63 = vpop.f32.mrf.mxu2 }
 0x4d7   : > { %v4443_v47 = vadd.f32 %v4384_v3, %v9061_v58 }
 0x4d8   : > { %v4905_v21 = vmax.f32 %v4869_v30, 0.0 }
 0x4d9   : > { %v4483_v28 = vadd.f32 %v8547_v42, %v4443_v47 }
 0x4da   : > { %v4200_v39 = vpop.f32.mrf.mxu1 }
 0x4db   : > { %v4808_v2 = vpop.f32.mrf.mxu0 }
 0x4dc   : > { %v4809_v46 = vadd.f32 %v8542_v10, %v4808_v2  ;;  %v4385_v60 = vpop.f32.mrf.mxu3 }
 0x4dd   : > { %v4386_v36 = vadd.f32 %v4385_v60, %v4287_v25  ;;  %v4295_v60 = vadd.f32 %v4294_v61, %v4195_v48 }
 0x4de   : > { %v4870_v41 = vadd.f32 %v4809_v46, %v4482_v9  ;;  %v4301_v46 = vpop.f32.mrf.mxu2 }
 0x4df   : > { %v4444_v1 = vadd.f32 %v4386_v36, %v8447_v20 }
 0x4e0   : > { %v4906_v52 = vmax.f32 %v4870_v41, 0.0 }
 0x4e1   : > { %v4484_v38 = vadd.f32 %v8547_v42, %v4444_v1 }
 0x4e2   : > { %v6147_v0 = vpack.c.bf16 %v4906_v52, %v4905_v21  ;;  %v4202_v31 = vpop.f32.mrf.mxu1  ;;  %v4297_v21 = vadd.f32 %v4296_v27, %v4197_v24 }
 0x4e3   : > { %v4811_v43 = vpop.f32.mrf.mxu0 }
 0x4e4   : > { %6202 = vst [vmem:[%s8561_s15 + $0x48] sm:$0xff] %v6147_v0   ;;  %v4388_v62 = vpop.f32.mrf.mxu3  ;;  %v4812_v15 = vadd.f32 %v8542_v10, %v4811_v43 }
 0x4e5   : > { %v4389_v20 = vadd.f32 %v4388_v62, %v4290_v12 }
 0x4e6   : > { %v4871_v29 = vadd.f32 %v4812_v15, %v4483_v28  ;;  %v4304_v58 = vpop.f32.mrf.mxu2 }
 0x4e7   : > { %v4445_v45 = vadd.f32 %v4389_v20, %v8460_v56 }
 0x4e8   : > { %v4907_v18 = vmax.f32 %v4871_v29, 0.0  ;;  %v4300_v29 = vadd.f32 %v4299_v63, %v4200_v39 }
 0x4e9   : > { %v4485_v2 = vadd.f32 %v8547_v42, %v4445_v45 }
 0x4ea   : > { %v4205_v61 = vpop.f32.mrf.mxu1 }
 0x4eb   : > { %v4813_v44 = vpop.f32.mrf.mxu0 }
 0x4ec   : > { %v4814_v40 = vadd.f32 %v8542_v10, %v4813_v44  ;;  %v4390_v51 = vpop.f32.mrf.mxu3 }
 0x4ed   : > { %v4391_v11 = vadd.f32 %v4390_v51, %v4292_v22 }
 0x4ee   : > { %v4872_v50 = vadd.f32 %v4814_v40, %v4484_v38  ;;  %v4302_v40 = vadd.f32 %v4301_v46, %v4202_v31  ;;  %v4306_v51 = vpop.f32.mrf.mxu2 }
 0x4ef   : > { %v4446_v37 = vadd.f32 %v4391_v11, %v8466_v23 }
 0x4f0   : > { %v4908_v59 = vmax.f32 %v4872_v50, 0.0 }
 0x4f1   : > { %v4486_v8 = vadd.f32 %v8547_v42, %v4446_v37 }
 0x4f2   : > { %v6152_v7 = vpack.c.bf16 %v4908_v59, %v4907_v18  ;;  %v4207_v18 = vpop.f32.mrf.mxu1 }
 0x4f3   : > { %v4816_v57 = vpop.f32.mrf.mxu0 }
 0x4f4   : > { %6203 = vst [vmem:[%s8561_s15 + $0x50] sm:$0xff] %v6152_v7   ;;  %v4393_v35 = vpop.f32.mrf.mxu3  ;;  %v4817_v13 = vadd.f32 %v8542_v10, %v4816_v57 }
 0x4f5   : > { %v4394_v23 = vadd.f32 %v4393_v35, %v4295_v60 }
 0x4f6   : > { %v4873_v33 = vadd.f32 %v4817_v13, %v4485_v2  ;;  %v4309_v39 = vpop.f32.mrf.mxu2 }
 0x4f7   : > { %v4447_v43 = vadd.f32 %v4394_v23, %v8476_v19 }
 0x4f8   : > { %v4909_v41 = vmax.f32 %v4873_v33, 0.0 }
 0x4f9   : > { %v4487_v47 = vadd.f32 %v8547_v42, %v4447_v43 }
 0x4fa   : > { %v4210_v2 = vpop.f32.mrf.mxu1 }
 0x4fb   : > { %v4818_v16 = vpop.f32.mrf.mxu0 }
 0x4fc   : > { %v4819_v5 = vadd.f32 %v8542_v10, %v4818_v16  ;;  %v4395_v30 = vpop.f32.mrf.mxu3  ;;  %v4305_v16 = vadd.f32 %v4304_v58, %v4205_v61 }
 0x4fd   : > { %v4396_v3 = vadd.f32 %v4395_v30, %v4297_v21 }
 0x4fe   : > { %v4874_v9 = vadd.f32 %v4819_v5, %v4486_v8  ;;  %v4307_v8 = vadd.f32 %v4306_v51, %v4207_v18 }
 0x4ff   : > { %v4448_v36 = vadd.f32 %v4396_v3, %v8481_v49 }
 0x500   : > { %v4910_v56 = vmax.f32 %v4874_v9, 0.0 }
 0x501   : > { %v4488_v15 = vadd.f32 %v8547_v42, %v4448_v36 }
 0x502   : > { %v6157_v52 = vpack.c.bf16 %v4910_v56, %v4909_v41  ;;  %v4311_v41 = vpop.f32.mrf.mxu2  ;;  %v4212_v21 = vpop.f32.mrf.mxu1 }
 0x503   : > { %v4821_v25 = vpop.f32.mrf.mxu0  ;;  %v4312_v61 = vadd.f32 %v4311_v41, %v4212_v21 }
 0x504   : > { %6204 = vst [vmem:[%s8561_s15 + $0x58] sm:$0xff] %v6157_v52   ;;  %v4398_v0 = vpop.f32.mrf.mxu3  ;;  %v4822_v62 = vadd.f32 %v8542_v10, %v4821_v25 }
 0x505   : > { %v4399_v49 = vadd.f32 %v4398_v0, %v4300_v29 }
 0x506   : > { %v4875_v1 = vadd.f32 %v4822_v62, %v4487_v47  ;;  %v4310_v62 = vadd.f32 %v4309_v39, %v4210_v2 }
 0x507   : > { %v4449_v22 = vadd.f32 %v4399_v49, %v8489_v26 }
 0x508   : > { %v4911_v38 = vmax.f32 %v4875_v1, 0.0 }
 0x509   : > { %v4489_v57 = vadd.f32 %v8547_v42, %v4449_v22 }
 0x50a   : > { %v4314_v47 = vpop.f32.mrf.mxu2  ;;  %v4215_v1 = vpop.f32.mrf.mxu1 }
 0x50b   : > { %v4823_v48 = vpop.f32.mrf.mxu0  ;;  %v4315_v22 = vadd.f32 %v4314_v47, %v4215_v1 }
 0x50c   : > { %v4824_v28 = vadd.f32 %v8542_v10, %v4823_v48  ;;  %v4400_v27 = vpop.f32.mrf.mxu3 }
 0x50d   : > { %v4401_v12 = vadd.f32 %v4400_v27, %v4302_v40 }
 0x50e   : > { %v4876_v44 = vadd.f32 %v4824_v28, %v4488_v15 }
 0x50f   : > { %v4450_v20 = vadd.f32 %v4401_v12, %v8494_v34 }
 0x510   : > { %v4912_v19 = vmax.f32 %v4876_v44, 0.0 }
 0x511   : > { %v4490_v35 = vadd.f32 %v8547_v42, %v4450_v20 }
 0x512   : > { %v6162_v24 = vpack.c.bf16 %v4912_v19, %v4911_v38  ;;  %v4316_v40 = vpop.f32.mrf.mxu2  ;;  %v4217_v12 = vpop.f32.mrf.mxu1 }
 0x513   : > { %v4826_v50 = vpop.f32.mrf.mxu0 }
 0x514   : > { %6205 = vst [vmem:[%s8561_s15 + $0x60] sm:$0xff] %v6162_v24   ;;  %v4403_v59 = vpop.f32.mrf.mxu3  ;;  %v4827_v7 = vadd.f32 %v8542_v10, %v4826_v50 }
 0x515   : > { %v4404_v34 = vadd.f32 %v4403_v59, %v4305_v16 }
 0x516   : > { %v4877_v63 = vadd.f32 %v4827_v7, %v4489_v57  ;;  %v4317_v7 = vadd.f32 %v4316_v40, %v4217_v12 }
 0x517   : > { %v4451_v60 = vadd.f32 %v4404_v34, %v8501_v4 }
 0x518   : > { %v4913_v33 = vmax.f32 %v4877_v63, 0.0 }
 0x519   : > { %v4491_v23 = vadd.f32 %v8547_v42, %v4451_v60 }
 0x51a   : > { %v4220_v39 = vpop.f32.mrf.mxu1 }
 0x51b   : > { %v4828_v11 = vpop.f32.mrf.mxu0 }
 0x51c   : > { %v4829_v45 = vadd.f32 %v8542_v10, %v4828_v11  ;;  %v4405_v37 = vpop.f32.mrf.mxu3 }
 0x51d   : > { %v4406_v9 = vadd.f32 %v4405_v37, %v4307_v8 }
 0x51e   : > { %v4878_v13 = vadd.f32 %v4829_v45, %v4490_v35  ;;  %v4319_v35 = vpop.f32.mrf.mxu2 }
 0x51f   : > { %v4452_v56 = vadd.f32 %v4406_v9, %v8505_v32  ;;  %v4320_v9 = vadd.f32 %v4319_v35, %v4220_v39 }
 0x520   : > { %v4914_v26 = vmax.f32 %v4878_v13, 0.0 }
 0x521   : > { %v4492_v3 = vadd.f32 %v8547_v42, %v4452_v56 }
 0x522   : > { %v6167_v5 = vpack.c.bf16 %v4914_v26, %v4913_v33  ;;  %v4222_v60 = vpop.f32.mrf.mxu1 }
 0x523   : > { %v4831_v30 = vpop.f32.mrf.mxu0 }
 0x524   : > { %6206 = vst [vmem:[%s8561_s15 + $0x68] sm:$0xff] %v6167_v5   ;;  %v4408_v46 = vpop.f32.mrf.mxu3  ;;  %v4832_v31 = vadd.f32 %v8542_v10, %v4831_v30 }
 0x525   : > { %v4409_v32 = vadd.f32 %v4408_v46, %v4310_v62 }
 0x526   : > { %v4879_v25 = vadd.f32 %v4832_v31, %v4491_v23  ;;  %v4321_v30 = vpop.f32.mrf.mxu2 }
 0x527   : > { %v4453_v44 = vadd.f32 %v4409_v32, %v8510_v6 }
 0x528   : > { %v4915_v58 = vmax.f32 %v4879_v25, 0.0 }
 0x529   : > { %v4493_v19 = vadd.f32 %v8547_v42, %v4453_v44 }
 0x52b   : > { %v4833_v52 = vpop.f32.mrf.mxu0 }
 0x52c   : > { %v4834_v0 = vadd.f32 %v8542_v10, %v4833_v52  ;;  %v4410_v43 = vpop.f32.mrf.mxu3 }
 0x52d   : > { %v4411_v28 = vadd.f32 %v4410_v43, %v4312_v61 }
 0x52e   : > { %v4880_v36 = vadd.f32 %v4834_v0, %v4492_v3 }
 0x52f   : > { %v4454_v29 = vadd.f32 %v4411_v28, %v8514_v53 }
 0x530   : > { %v4916_v4 = vmax.f32 %v4880_v36, 0.0 }
 0x531   : > { %v4494_v51 = vadd.f32 %v8547_v42, %v4454_v29 }
 0x532   : > { %v6172_v48 = vpack.c.bf16 %v4916_v4, %v4915_v58 }
 0x533   : > { %v4836_v15 = vpop.f32.mrf.mxu0 }
 0x534   : > { %6207 = vst [vmem:[%s8561_s15 + $0x70] sm:$0xff] %v6172_v48   ;;  %v4413_v27 = vpop.f32.mrf.mxu3  ;;  %v4837_v38 = vadd.f32 %v8542_v10, %v4836_v15 }
 0x535   : > { %v4414_v53 = vadd.f32 %v4413_v27, %v4315_v22 }
 0x536   : > { %v4881_v24 = vadd.f32 %v4837_v38, %v4493_v19 }
 0x537   : > { %v4455_v45 = vadd.f32 %v4414_v53, %v8519_v14 }
 0x538   : > { %v4917_v20 = vmax.f32 %v4881_v24, 0.0 }
 0x539   : > { %v4495_v16 = vadd.f32 %v8547_v42, %v4455_v45 }
 0x53b   : > { %v4838_v49 = vpop.f32.mrf.mxu0 }
 0x53c   : > { %v4839_v50 = vadd.f32 %v8542_v10, %v4838_v49  ;;  %v4415_v18 = vpop.f32.mrf.mxu3 }
 0x53d   : > { %v4416_v63 = vadd.f32 %v4415_v18, %v4317_v7 }
 0x53e   : > { %v4882_v59 = vadd.f32 %v4839_v50, %v4494_v51 }
 0x53f   : > { %v4456_v13 = vadd.f32 %v4416_v63, %v8523_v54  ;;  %v4322_v54 = vadd.f32 %v4321_v30, %v4222_v60 }
 0x540   : > { %v4918_v6 = vmax.f32 %v4882_v59, 0.0 }
 0x541   : > { %v4496_v8 = vadd.f32 %v8547_v42, %v4456_v13 }
 0x542   : > { %v6177_v57 = vpack.c.bf16 %v4918_v6, %v4917_v20 }
 0x543   : > { %v4841_v11 = vpop.f32.mrf.mxu0 }
 0x544   : > { %6208 = vst [vmem:[%s8561_s15 + $0x78] sm:$0xff] %v6177_v57   ;;  %v4418_v37 = vpop.f32.mrf.mxu3  ;;  %v4842_v2 = vadd.f32 %v8542_v10, %v4841_v11 }
 0x545   : > { %v4419_v56 = vadd.f32 %v4418_v37, %v4320_v9 }
 0x546   : > { %v4883_v26 = vadd.f32 %v4842_v2, %v4495_v16 }
 0x547   : > { %v4457_v52 = vadd.f32 %v4419_v56, %v8528_v17 }
 0x548   : > { %v4919_v14 = vmax.f32 %v4883_v26, 0.0 }
 0x549   : > { %v4497_v0 = vadd.f32 %v8547_v42, %v4457_v52 }
 0x54b   : > { %v4843_v33 = vpop.f32.mrf.mxu0 }
 0x54c   : > { %v4844_v34 = vadd.f32 %v8542_v10, %v4843_v33  ;;  %v4420_v41 = vpop.f32.mrf.mxu3 }
 0x54d   : > { %v4421_v23 = vadd.f32 %v4420_v41, %v4322_v54 }
 0x54e   : > { %v4884_v5 = vadd.f32 %v4844_v34, %v4496_v8 }
 0x54f   : > { %v4458_v25 = vadd.f32 %v4421_v23, %v8533_v55 }
 0x550   : > { %v4920_v46 = vmax.f32 %v4884_v5, 0.0 }
 0x551   : > { %v4498_v62 = vadd.f32 %v8547_v42, %v4458_v25 }
 0x552   : > { %v6182_v31 = vpack.c.bf16 %v4920_v46, %v4919_v14 }
 0x553   : > { %v4846_v21 = vpop.f32.mrf.mxu0 }
 0x554   : > { %6209 = vst [vmem:[%s8561_s15 + $0x80] sm:$0xff] %v6182_v31   ;;  %v4847_v3 = vadd.f32 %v8542_v10, %v4846_v21 }
 0x556   : > { %v4885_v36 = vadd.f32 %v4847_v3, %v4497_v0 }
 0x558   : > { %v4921_v55 = vmax.f32 %v4885_v36, 0.0 }
 0x55b   : > { %v4848_v43 = vpop.f32.mrf.mxu0 }
 0x55c   : > { %v4849_v58 = vadd.f32 %v8542_v10, %v4848_v43 }
 0x55e   : > { %v4886_v17 = vadd.f32 %v4849_v58, %v4498_v62 }
 0x560   : > { %v4922_v4 = vmax.f32 %v4886_v17, 0.0 }
 0x562   : > { %v6187_v47 = vpack.c.bf16 %v4922_v4, %v4921_v55 }
 0x564   : > { %6210 = vst [vmem:[%s8561_s15 + $0x88] sm:$0xff] %v6187_v47  }
 0x565   : > { %6507 = shalt.err (!%p6504_p10)
}
 0x566   : > { %s6562_s9 = smov 64   ;;  %s6563_s23 = smov 4  }
 0x567   : > { %6257 = dma.vmem_to_hbm [thread:$0]  (%p6696_p7), %s5009_s30, 2304, %s5011_s12, %s4996_s28, %s6562_s9, %s6562_s9, %s6563_s23  }
 0x568 PF: > { %s5025_s29 = sand.u32 1, %s6542_s24   ;;  %p9062_p12 = scmp.ge.s32.totalorder %s6554_s27, 2 }
 0x569   : > { %s5026_s15 = scalar_lea.sflag [#allocation5], %s5025_s29 }
 0x56a   : > { %p6274_p13 = pnand %p9062_p12, %p6639_p6 }
 0x56c   : > { %p6275_p0 = pneg %p6274_p13 }
 0x56e   : > { %6537 = dma.done.wait (%p6275_p0), %s5026_s15, 2304  }
 0x56f   : > { %6539 = vsyncadd (%p6275_p0), %s5026_s15, 4294964992  ;;  %p22_p3 = scmp.ge.s32.totalorder %s6677_s13, 4   ;;  %s9063_s24 = smov %s6546_s25 }
 0x570   : > { %s9064_s25 = smov %s6550_s26  ;;  %s9065_s26 = smov %s6692_s17 }
 0x571   : > { %s9066_s27 = smov %s6677_s13  ;;  %24 = sbr.rel (!%p22_p3) target bundleno = 11 (0xb), region = 109 }
 0x576   :  { %5032 = vsyncpa [#allocation4], 1 }
 0x577   :  { %5034 = vsyncpa [#allocation4 + $0x1], 1 }
 0x578   :  { %5035 = vsyncpa [#allocation7], 1 }
 0x579   :  { %5036 = vsyncpa [#allocation10], 1 }
 0x57a   :  { %5037 = vsyncpa [#allocation5], 1 }
 0x57b   :  { %5039 = vsyncpa [#allocation5 + $0x1], 1 }

</bundles_post_ra>
